<compile_context>
chip_gen: v7x
topology: tpu7x:2x2x1
jax: 0.10.0
libtpu: 0.0.40
codegen_flags: <defaults>
</compile_context>

<pallas_src>
import functools

import jax
import jax.numpy as jnp
from jax import lax
from jax.experimental import pallas as pl
from jax.experimental.pallas import tpu as pltpu


# ----------------------------------------------------------------------------
# helpers (JAX glue, run once per call)
# ----------------------------------------------------------------------------
def _round_up(x, m):
    return (x + m - 1) // m * m


def _fold_bn(gamma, beta, mean, var, eps=1e-5):
    scale = gamma * lax.rsqrt(var + eps)
    bias = beta - mean * scale
    return scale, bias


def _conv_taps(w_oihw, bn_scale, cin_p, cout_p):
    """(Cout, Cin, 3, 3) conv weight -> (9, cin_p, cout_p) bf16 tap matrices.

    Tap t = dy*3 + dx holds W[:, :, dy, dx].T with the eval-mode BN scale
    folded into the output channels.  Zero padded to lane-dense channel counts.
    """
    Cout, Cin, KH, KW = w_oihw.shape
    w = jnp.transpose(w_oihw, (2, 3, 1, 0)).reshape(KH * KW, Cin, Cout)
    w = w.astype(jnp.float32) * bn_scale[None, None, :]
    w = jnp.pad(w, ((0, 0), (0, cin_p - Cin), (0, cout_p - Cout)))
    return w.astype(jnp.bfloat16)


def _pad_bias(bias, cout_p):
    Cout = bias.shape[0]
    return jnp.pad(bias, (0, cout_p - Cout)).reshape(1, cout_p).astype(jnp.float32)


# ----------------------------------------------------------------------------
# Pallas kernel: whole BasicBlock for one batch element per grid step
# ----------------------------------------------------------------------------
def _basic_block_kernel(xp_ref, w1_ref, b1_ref, w2_ref, b2_ref, o_ref, mid_ref,
                        *, H, W, Cp, Pp):
    HW = H * W
    xp = xp_ref[0]                                      # (H+2, W+2, Cp) f32

    # ---- conv1 (3x3, pad 1) + bn1 (scale folded into w1) + relu ----
    acc1 = jnp.zeros((HW, Pp), jnp.float32)
    for t in range(9):
        dy, dx = divmod(t, 3)
        tap = xp[dy:dy + H, dx:dx + W, :].reshape(HW, Cp).astype(jnp.bfloat16)
        acc1 = acc1 + jnp.dot(tap, w1_ref[t], preferred_element_type=jnp.float32)
    out1 = jnp.maximum(acc1 + b1_ref[...], 0.0)         # (HW, Pp) f32

    # Stage out1 with a zero halo in VMEM so conv2's taps never touch HBM.
    # (Full zero each step keeps the halo valid on every core under megacore.)
    mid_ref[...] = jnp.zeros_like(mid_ref)
    mid_ref[1:H + 1, 1:W + 1, :] = out1.reshape(H, W, Pp)

    # ---- conv2 (3x3, pad 1) + bn2 (scale folded into w2) + residual + relu ----
    mid = mid_ref[...]                                  # (H+2, W+2, Pp) f32
    acc2 = jnp.zeros((HW, Pp), jnp.float32)
    for t in range(9):
        dy, dx = divmod(t, 3)
        tap = mid[dy:dy + H, dx:dx + W, :].reshape(HW, Pp).astype(jnp.bfloat16)
        acc2 = acc2 + jnp.dot(tap, w2_ref[t], preferred_element_type=jnp.float32)
    # residual = original (unpadded) x in f32; Cp == Pp because inplanes == planes.
    out2 = acc2 + b2_ref[...] + xp[1:H + 1, 1:W + 1, :].reshape(HW, Cp)
    o_ref[0] = jnp.maximum(out2, 0.0).reshape(H, W, Pp).astype(o_ref.dtype)


# ----------------------------------------------------------------------------
# BasicBlock forward (stride=1, no downsample, no TripletAttention)
# ----------------------------------------------------------------------------
def basic_block_forward(x_nchw, params):
    N, Cin, H, W = x_nchw.shape
    planes = params["conv1_w"].shape[0]
    if Cin != planes:
        raise NotImplementedError(
            "stride=1 / downsample=None path requires inplanes == planes")

    Cp = _round_up(Cin, 128)          # lane-dense channel count (shared in/out)
    Pp = Cp

    s1, b1 = _fold_bn(params["bn1_gamma"], params["bn1_beta"],
                      params["bn1_mean"], params["bn1_var"])
    s2, b2 = _fold_bn(params["bn2_gamma"], params["bn2_beta"],
                      params["bn2_mean"], params["bn2_var"])
    w1 = _conv_taps(params["conv1_w"], s1, Cp, Pp)      # (9, Cp, Pp) bf16
    w2 = _conv_taps(params["conv2_w"], s2, Pp, Pp)      # (9, Pp, Pp) bf16
    b1p = _pad_bias(b1, Pp)                             # (1, Pp) f32
    b2p = _pad_bias(b2, Pp)

    # NCHW -> NHWC, +1 spatial halo, channel pad to a multiple of 128.
    x = jnp.transpose(x_nchw, (0, 2, 3, 1)).astype(jnp.float32)
    xp = jnp.pad(x, ((0, 0), (1, 1), (1, 1), (0, Cp - Cin)))
    Hp, Wp = H + 2, W + 2

    kernel = functools.partial(_basic_block_kernel, H=H, W=W, Cp=Cp, Pp=Pp)

    # VMEM budget: double-buffered in/out blocks + resident weights + scratch.
    in_blk = Hp * Wp * Cp * 4
    out_blk = H * W * Pp * 4
    w_bytes = 2 * (w1.size + w2.size) * 2            # bf16, (conservatively) x2 buffers
    scratch_bytes = Hp * Wp * Pp * 4
    need = 2 * in_blk + 2 * out_blk + w_bytes + scratch_bytes + 4 * Pp * 4
    vmem_limit = int(min(max(2 * need, 16 * 1024 * 1024), 48 * 1024 * 1024))

    flops = 2 * N * H * W * 9 * (Cin * planes + planes * planes)
    bytes_accessed = xp.size * 4 + (w1.size + w2.size) * 2 + N * H * W * Pp * 4
    cost = pl.CostEstimate(flops=flops, transcendentals=0,
                           bytes_accessed=bytes_accessed)

    out = pl.pallas_call(
        kernel,
        out_shape=jax.ShapeDtypeStruct((N, H, W, Pp), jnp.float32),
        grid_spec=pltpu.PrefetchScalarGridSpec(
            num_scalar_prefetch=0,
            grid=(N,),
            in_specs=[
                pl.BlockSpec((1, Hp, Wp, Cp), lambda n: (n, 0, 0, 0)),  # padded x
                pl.BlockSpec((9, Cp, Pp), lambda n: (0, 0, 0)),         # w1 taps (resident)
                pl.BlockSpec((1, Pp), lambda n: (0, 0)),                # bn1 bias
                pl.BlockSpec((9, Pp, Pp), lambda n: (0, 0, 0)),         # w2 taps (resident)
                pl.BlockSpec((1, Pp), lambda n: (0, 0)),                # bn2 bias
            ],
            out_specs=pl.BlockSpec((1, H, W, Pp), lambda n: (n, 0, 0, 0)),
            scratch_shapes=[pltpu.VMEM((Hp, Wp, Pp), jnp.float32)],
        ),
        compiler_params=pltpu.CompilerParams(
            dimension_semantics=("parallel",),
            vmem_limit_bytes=vmem_limit,
        ),
        cost_estimate=cost,
    )(xp, w1, b1p, w2, b2p)

    out = out[..., :planes]                      # drop lane padding
    return jnp.transpose(out, (0, 3, 1, 2))      # NHWC -> NCHW


# ----------------------------------------------------------------------------
# Pure-JAX f32 reference (for the correctness check)
# ----------------------------------------------------------------------------
def ref_forward(x_nchw, params, eps=1e-5):
    def conv(x, w):
        return lax.conv_general_dilated(
            x, w, window_strides=(1, 1), padding=((1, 1), (1, 1)),
            dimension_numbers=("NCHW", "OIHW", "NCHW"))

    def bn(x, g, b, m, v):
        return (x - m[None, :, None, None]) * lax.rsqrt(v + eps)[None, :, None, None] \
               * g[None, :, None, None] + b[None, :, None, None]

    residual = x_nchw
    out = conv(x_nchw, params["conv1_w"])
    out = bn(out, params["bn1_gamma"], params["bn1_beta"],
             params["bn1_mean"], params["bn1_var"])
    out = jnp.maximum(out, 0.0)
    out = conv(out, params["conv2_w"])
    out = bn(out, params["bn2_gamma"], params["bn2_beta"],
             params["bn2_mean"], params["bn2_var"])
    out = out + residual
    return jnp.maximum(out, 0.0)


# ----------------------------------------------------------------------------
# Deterministic parameter init + driver
# ----------------------------------------------------------------------------
def init_params(key, inplanes, planes):
    ks = jax.random.split(key, 8)
    fan_in = inplanes * 9
    std = (2.0 / fan_in) ** 0.5
    return {
        "conv1_w": std * jax.random.normal(ks[0], (planes, inplanes, 3, 3), jnp.float32),
        "conv2_w": std * jax.random.normal(ks[1], (planes, planes, 3, 3), jnp.float32),
        "bn1_gamma": 1.0 + 0.1 * jax.random.normal(ks[2], (planes,), jnp.float32),
        "bn1_beta": 0.1 * jax.random.normal(ks[3], (planes,), jnp.float32),
        "bn1_mean": 0.05 * jax.random.normal(ks[4], (planes,), jnp.float32),
        "bn1_var": 1.0 + 0.1 * jnp.abs(jax.random.normal(ks[5], (planes,), jnp.float32)),
        "bn2_gamma": 1.0 + 0.1 * jax.random.normal(ks[6], (planes,), jnp.float32),
        "bn2_beta": 0.1 * jax.random.normal(ks[7], (planes,), jnp.float32),
        "bn2_mean": jnp.zeros((planes,), jnp.float32),
        "bn2_var": jnp.ones((planes,), jnp.float32),
    }


if __name__ == "__main__":
    N, C, H, W = 2, 4, 16, 16          # inplanes = planes = 4, stride = 1
    key = jax.random.PRNGKey(0)
    kx, kp = jax.random.split(key)
    x = jax.random.normal(kx, (N, C, H, W), jnp.float32)
    params = init_params(kp, C, C)

    out = jax.jit(basic_block_forward)(x, params)
    out = jax.block_until_ready(out)

    ref = ref_forward(x, params)
    assert out.shape == ref.shape == (N, C, H, W)
    max_err = float(jnp.max(jnp.abs(out - ref)))
    # bf16 MXU operands vs f32 reference -> relaxed tolerance.
    assert jnp.allclose(out, ref, atol=6e-2, rtol=6e-2), f"max abs err {max_err}"
    print("KERNEL_OK")
</pallas_src>

<mosaic_0001>
module attributes {stable_mosaic.version = 11 : i64} {
  func.func @_basic_block_kernel(%arg0: i32, %arg1: memref<1x18x18x128xf32, #tpu.memory_space<vmem>>, %arg2: memref<9x128x128xbf16, #tpu.memory_space<vmem>>, %arg3: memref<1x128xf32, #tpu.memory_space<vmem>>, %arg4: memref<9x128x128xbf16, #tpu.memory_space<vmem>>, %arg5: memref<1x128xf32, #tpu.memory_space<vmem>>, %arg6: memref<1x16x16x128xf32, #tpu.memory_space<vmem>>, %arg7: memref<18x18x128xf32, #tpu.memory_space<vmem>>) attributes {dimension_semantics = [#tpu.dimension_semantics<parallel>], iteration_bounds = array<i64: 2>, scalar_prefetch = 0 : i64, scratch_operands = 1 : i64, tpu.core_type = #tpu.core_type<tc>, window_params = [{transform_indices = @transform_0, window_bounds = array<i64: 1, 18, 18, 128>}, {pipeline_mode = #tpu.pipeline_mode<synchronous>, transform_indices = @transform_1, window_bounds = array<i64: 9, 128, 128>}, {pipeline_mode = #tpu.pipeline_mode<synchronous>, transform_indices = @transform_2, window_bounds = array<i64: 1, 128>}, {pipeline_mode = #tpu.pipeline_mode<synchronous>, transform_indices = @transform_3, window_bounds = array<i64: 9, 128, 128>}, {pipeline_mode = #tpu.pipeline_mode<synchronous>, transform_indices = @transform_4, window_bounds = array<i64: 1, 128>}, {transform_indices = @transform_5, window_bounds = array<i64: 1, 16, 16, 128>}]} {
    %c0 = arith.constant 0 : index
    %c0_0 = arith.constant 0 : index
    %c0_1 = arith.constant 0 : index
    %c0_2 = arith.constant 0 : index
    %0 = vector.load %arg1[%c0, %c0_0, %c0_1, %c0_2] : memref<1x18x18x128xf32, #tpu.memory_space<vmem>>, vector<1x18x18x128xf32>
    %1 = vector.shape_cast %0 : vector<1x18x18x128xf32> to vector<18x18x128xf32>
    %cst = arith.constant 0.000000e+00 : f32
    %2 = vector.broadcast %cst : f32 to vector<256x128xf32>
    %3 = vector.extract_strided_slice %1 {offsets = [0, 0, 0], sizes = [16, 16, 128], strides = [1, 1, 1]} : vector<18x18x128xf32> to vector<16x16x128xf32>
    %4 = vector.shape_cast %3 : vector<16x16x128xf32> to vector<256x128xf32>
    %5 = arith.truncf %4 : vector<256x128xf32> to vector<256x128xbf16>
    %c0_3 = arith.constant 0 : index
    %c0_4 = arith.constant 0 : index
    %c0_5 = arith.constant 0 : index
    %6 = vector.load %arg2[%c0_3, %c0_4, %c0_5] : memref<9x128x128xbf16, #tpu.memory_space<vmem>>, vector<1x128x128xbf16>
    %7 = vector.shape_cast %6 : vector<1x128x128xbf16> to vector<128x128xbf16>
    %cst_6 = arith.constant dense<0.000000e+00> : vector<256x128xf32>
    %8 = tpu.matmul %5, %7, %cst_6 {dimension_numbers = #tpu.dot_dimension_numbers<[1], [0], [0], [1], [0, 0, 1, 1], [], []>} : vector<256x128xbf16>, vector<128x128xbf16>, vector<256x128xf32> -> vector<256x128xf32>
    %9 = arith.addf %2, %8 : vector<256x128xf32>
    %10 = vector.extract_strided_slice %1 {offsets = [0, 1, 0], sizes = [16, 16, 128], strides = [1, 1, 1]} : vector<18x18x128xf32> to vector<16x16x128xf32>
    %11 = vector.shape_cast %10 : vector<16x16x128xf32> to vector<256x128xf32>
    %12 = arith.truncf %11 : vector<256x128xf32> to vector<256x128xbf16>
    %c1 = arith.constant 1 : index
    %c0_7 = arith.constant 0 : index
    %c0_8 = arith.constant 0 : index
    %13 = vector.load %arg2[%c1, %c0_7, %c0_8] : memref<9x128x128xbf16, #tpu.memory_space<vmem>>, vector<1x128x128xbf16>
    %14 = vector.shape_cast %13 : vector<1x128x128xbf16> to vector<128x128xbf16>
    %cst_9 = arith.constant dense<0.000000e+00> : vector<256x128xf32>
    %15 = tpu.matmul %12, %14, %cst_9 {dimension_numbers = #tpu.dot_dimension_numbers<[1], [0], [0], [1], [0, 0, 1, 1], [], []>} : vector<256x128xbf16>, vector<128x128xbf16>, vector<256x128xf32> -> vector<256x128xf32>
    %16 = arith.addf %9, %15 : vector<256x128xf32>
    %17 = vector.extract_strided_slice %1 {offsets = [0, 2, 0], sizes = [16, 16, 128], strides = [1, 1, 1]} : vector<18x18x128xf32> to vector<16x16x128xf32>
    %18 = vector.shape_cast %17 : vector<16x16x128xf32> to vector<256x128xf32>
    %19 = arith.truncf %18 : vector<256x128xf32> to vector<256x128xbf16>
    %c2 = arith.constant 2 : index
    %c0_10 = arith.constant 0 : index
    %c0_11 = arith.constant 0 : index
    %20 = vector.load %arg2[%c2, %c0_10, %c0_11] : memref<9x128x128xbf16, #tpu.memory_space<vmem>>, vector<1x128x128xbf16>
    %21 = vector.shape_cast %20 : vector<1x128x128xbf16> to vector<128x128xbf16>
    %cst_12 = arith.constant dense<0.000000e+00> : vector<256x128xf32>
    %22 = tpu.matmul %19, %21, %cst_12 {dimension_numbers = #tpu.dot_dimension_numbers<[1], [0], [0], [1], [0, 0, 1, 1], [], []>} : vector<256x128xbf16>, vector<128x128xbf16>, vector<256x128xf32> -> vector<256x128xf32>
    %23 = arith.addf %16, %22 : vector<256x128xf32>
    %24 = vector.extract_strided_slice %1 {offsets = [1, 0, 0], sizes = [16, 16, 128], strides = [1, 1, 1]} : vector<18x18x128xf32> to vector<16x16x128xf32>
    %25 = vector.shape_cast %24 : vector<16x16x128xf32> to vector<256x128xf32>
    %26 = arith.truncf %25 : vector<256x128xf32> to vector<256x128xbf16>
    %c3 = arith.constant 3 : index
    %c0_13 = arith.constant 0 : index
    %c0_14 = arith.constant 0 : index
    %27 = vector.load %arg2[%c3, %c0_13, %c0_14] : memref<9x128x128xbf16, #tpu.memory_space<vmem>>, vector<1x128x128xbf16>
    %28 = vector.shape_cast %27 : vector<1x128x128xbf16> to vector<128x128xbf16>
    %cst_15 = arith.constant dense<0.000000e+00> : vector<256x128xf32>
    %29 = tpu.matmul %26, %28, %cst_15 {dimension_numbers = #tpu.dot_dimension_numbers<[1], [0], [0], [1], [0, 0, 1, 1], [], []>} : vector<256x128xbf16>, vector<128x128xbf16>, vector<256x128xf32> -> vector<256x128xf32>
    %30 = arith.addf %23, %29 : vector<256x128xf32>
    %31 = vector.extract_strided_slice %1 {offsets = [1, 1, 0], sizes = [16, 16, 128], strides = [1, 1, 1]} : vector<18x18x128xf32> to vector<16x16x128xf32>
    %32 = vector.shape_cast %31 : vector<16x16x128xf32> to vector<256x128xf32>
    %33 = arith.truncf %32 : vector<256x128xf32> to vector<256x128xbf16>
    %c4 = arith.constant 4 : index
    %c0_16 = arith.constant 0 : index
    %c0_17 = arith.constant 0 : index
    %34 = vector.load %arg2[%c4, %c0_16, %c0_17] : memref<9x128x128xbf16, #tpu.memory_space<vmem>>, vector<1x128x128xbf16>
    %35 = vector.shape_cast %34 : vector<1x128x128xbf16> to vector<128x128xbf16>
    %cst_18 = arith.constant dense<0.000000e+00> : vector<256x128xf32>
    %36 = tpu.matmul %33, %35, %cst_18 {dimension_numbers = #tpu.dot_dimension_numbers<[1], [0], [0], [1], [0, 0, 1, 1], [], []>} : vector<256x128xbf16>, vector<128x128xbf16>, vector<256x128xf32> -> vector<256x128xf32>
    %37 = arith.addf %30, %36 : vector<256x128xf32>
    %38 = vector.extract_strided_slice %1 {offsets = [1, 2, 0], sizes = [16, 16, 128], strides = [1, 1, 1]} : vector<18x18x128xf32> to vector<16x16x128xf32>
    %39 = vector.shape_cast %38 : vector<16x16x128xf32> to vector<256x128xf32>
    %40 = arith.truncf %39 : vector<256x128xf32> to vector<256x128xbf16>
    %c5 = arith.constant 5 : index
    %c0_19 = arith.constant 0 : index
    %c0_20 = arith.constant 0 : index
    %41 = vector.load %arg2[%c5, %c0_19, %c0_20] : memref<9x128x128xbf16, #tpu.memory_space<vmem>>, vector<1x128x128xbf16>
    %42 = vector.shape_cast %41 : vector<1x128x128xbf16> to vector<128x128xbf16>
    %cst_21 = arith.constant dense<0.000000e+00> : vector<256x128xf32>
    %43 = tpu.matmul %40, %42, %cst_21 {dimension_numbers = #tpu.dot_dimension_numbers<[1], [0], [0], [1], [0, 0, 1, 1], [], []>} : vector<256x128xbf16>, vector<128x128xbf16>, vector<256x128xf32> -> vector<256x128xf32>
    %44 = arith.addf %37, %43 : vector<256x128xf32>
    %45 = vector.extract_strided_slice %1 {offsets = [2, 0, 0], sizes = [16, 16, 128], strides = [1, 1, 1]} : vector<18x18x128xf32> to vector<16x16x128xf32>
    %46 = vector.shape_cast %45 : vector<16x16x128xf32> to vector<256x128xf32>
    %47 = arith.truncf %46 : vector<256x128xf32> to vector<256x128xbf16>
    %c6 = arith.constant 6 : index
    %c0_22 = arith.constant 0 : index
    %c0_23 = arith.constant 0 : index
    %48 = vector.load %arg2[%c6, %c0_22, %c0_23] : memref<9x128x128xbf16, #tpu.memory_space<vmem>>, vector<1x128x128xbf16>
    %49 = vector.shape_cast %48 : vector<1x128x128xbf16> to vector<128x128xbf16>
    %cst_24 = arith.constant dense<0.000000e+00> : vector<256x128xf32>
    %50 = tpu.matmul %47, %49, %cst_24 {dimension_numbers = #tpu.dot_dimension_numbers<[1], [0], [0], [1], [0, 0, 1, 1], [], []>} : vector<256x128xbf16>, vector<128x128xbf16>, vector<256x128xf32> -> vector<256x128xf32>
    %51 = arith.addf %44, %50 : vector<256x128xf32>
    %52 = vector.extract_strided_slice %1 {offsets = [2, 1, 0], sizes = [16, 16, 128], strides = [1, 1, 1]} : vector<18x18x128xf32> to vector<16x16x128xf32>
    %53 = vector.shape_cast %52 : vector<16x16x128xf32> to vector<256x128xf32>
    %54 = arith.truncf %53 : vector<256x128xf32> to vector<256x128xbf16>
    %c7 = arith.constant 7 : index
    %c0_25 = arith.constant 0 : index
    %c0_26 = arith.constant 0 : index
    %55 = vector.load %arg2[%c7, %c0_25, %c0_26] : memref<9x128x128xbf16, #tpu.memory_space<vmem>>, vector<1x128x128xbf16>
    %56 = vector.shape_cast %55 : vector<1x128x128xbf16> to vector<128x128xbf16>
    %cst_27 = arith.constant dense<0.000000e+00> : vector<256x128xf32>
    %57 = tpu.matmul %54, %56, %cst_27 {dimension_numbers = #tpu.dot_dimension_numbers<[1], [0], [0], [1], [0, 0, 1, 1], [], []>} : vector<256x128xbf16>, vector<128x128xbf16>, vector<256x128xf32> -> vector<256x128xf32>
    %58 = arith.addf %51, %57 : vector<256x128xf32>
    %59 = vector.extract_strided_slice %1 {offsets = [2, 2, 0], sizes = [16, 16, 128], strides = [1, 1, 1]} : vector<18x18x128xf32> to vector<16x16x128xf32>
    %60 = vector.shape_cast %59 : vector<16x16x128xf32> to vector<256x128xf32>
    %61 = arith.truncf %60 : vector<256x128xf32> to vector<256x128xbf16>
    %c8 = arith.constant 8 : index
    %c0_28 = arith.constant 0 : index
    %c0_29 = arith.constant 0 : index
    %62 = vector.load %arg2[%c8, %c0_28, %c0_29] : memref<9x128x128xbf16, #tpu.memory_space<vmem>>, vector<1x128x128xbf16>
    %63 = vector.shape_cast %62 : vector<1x128x128xbf16> to vector<128x128xbf16>
    %cst_30 = arith.constant dense<0.000000e+00> : vector<256x128xf32>
    %64 = tpu.matmul %61, %63, %cst_30 {dimension_numbers = #tpu.dot_dimension_numbers<[1], [0], [0], [1], [0, 0, 1, 1], [], []>} : vector<256x128xbf16>, vector<128x128xbf16>, vector<256x128xf32> -> vector<256x128xf32>
    %65 = arith.addf %58, %64 : vector<256x128xf32>
    %c0_31 = arith.constant 0 : index
    %c0_32 = arith.constant 0 : index
    %66 = vector.load %arg3[%c0_31, %c0_32] : memref<1x128xf32, #tpu.memory_space<vmem>>, vector<1x128xf32>
    %67 = vector.broadcast %66 : vector<1x128xf32> to vector<256x128xf32>
    %68 = arith.addf %65, %67 : vector<256x128xf32>
    %cst_33 = arith.constant 0.000000e+00 : f32
    %69 = vector.broadcast %cst_33 : f32 to vector<256x128xf32>
    %70 = arith.maximumf %68, %69 : vector<256x128xf32>
    %cst_34 = arith.constant 0.000000e+00 : f32
    %71 = vector.broadcast %cst_34 : f32 to vector<18x18x128xf32>
    %c0_35 = arith.constant 0 : index
    %c0_36 = arith.constant 0 : index
    %c0_37 = arith.constant 0 : index
    %72 = vector.load %arg7[%c0_35, %c0_36, %c0_37] : memref<18x18x128xf32, #tpu.memory_space<vmem>>, vector<18x18x128xf32>
    tpu.vector_store %arg7[%c0_35, %c0_36, %c0_37], %71 {strides = array<i32>} : memref<18x18x128xf32, #tpu.memory_space<vmem>>, vector<18x18x128xf32>,
    %73 = vector.shape_cast %70 : vector<256x128xf32> to vector<16x16x128xf32>
    %c1_38 = arith.constant 1 : index
    %c1_39 = arith.constant 1 : index
    %c0_40 = arith.constant 0 : index
    %74 = vector.load %arg7[%c1_38, %c1_39, %c0_40] : memref<18x18x128xf32, #tpu.memory_space<vmem>>, vector<16x16x128xf32>
    tpu.vector_store %arg7[%c1_38, %c1_39, %c0_40], %73 {strides = array<i32>} : memref<18x18x128xf32, #tpu.memory_space<vmem>>, vector<16x16x128xf32>,
    %c0_41 = arith.constant 0 : index
    %c0_42 = arith.constant 0 : index
    %c0_43 = arith.constant 0 : index
    %75 = vector.load %arg7[%c0_41, %c0_42, %c0_43] : memref<18x18x128xf32, #tpu.memory_space<vmem>>, vector<18x18x128xf32>
    %cst_44 = arith.constant 0.000000e+00 : f32
    %76 = vector.broadcast %cst_44 : f32 to vector<256x128xf32>
    %77 = vector.extract_strided_slice %75 {offsets = [0, 0, 0], sizes = [16, 16, 128], strides = [1, 1, 1]} : vector<18x18x128xf32> to vector<16x16x128xf32>
    %78 = vector.shape_cast %77 : vector<16x16x128xf32> to vector<256x128xf32>
    %79 = arith.truncf %78 : vector<256x128xf32> to vector<256x128xbf16>
    %c0_45 = arith.constant 0 : index
    %c0_46 = arith.constant 0 : index
    %c0_47 = arith.constant 0 : index
    %80 = vector.load %arg4[%c0_45, %c0_46, %c0_47] : memref<9x128x128xbf16, #tpu.memory_space<vmem>>, vector<1x128x128xbf16>
    %81 = vector.shape_cast %80 : vector<1x128x128xbf16> to vector<128x128xbf16>
    %cst_48 = arith.constant dense<0.000000e+00> : vector<256x128xf32>
    %82 = tpu.matmul %79, %81, %cst_48 {dimension_numbers = #tpu.dot_dimension_numbers<[1], [0], [0], [1], [0, 0, 1, 1], [], []>} : vector<256x128xbf16>, vector<128x128xbf16>, vector<256x128xf32> -> vector<256x128xf32>
    %83 = arith.addf %76, %82 : vector<256x128xf32>
    %84 = vector.extract_strided_slice %75 {offsets = [0, 1, 0], sizes = [16, 16, 128], strides = [1, 1, 1]} : vector<18x18x128xf32> to vector<16x16x128xf32>
    %85 = vector.shape_cast %84 : vector<16x16x128xf32> to vector<256x128xf32>
    %86 = arith.truncf %85 : vector<256x128xf32> to vector<256x128xbf16>
    %c1_49 = arith.constant 1 : index
    %c0_50 = arith.constant 0 : index
    %c0_51 = arith.constant 0 : index
    %87 = vector.load %arg4[%c1_49, %c0_50, %c0_51] : memref<9x128x128xbf16, #tpu.memory_space<vmem>>, vector<1x128x128xbf16>
    %88 = vector.shape_cast %87 : vector<1x128x128xbf16> to vector<128x128xbf16>
    %cst_52 = arith.constant dense<0.000000e+00> : vector<256x128xf32>
    %89 = tpu.matmul %86, %88, %cst_52 {dimension_numbers = #tpu.dot_dimension_numbers<[1], [0], [0], [1], [0, 0, 1, 1], [], []>} : vector<256x128xbf16>, vector<128x128xbf16>, vector<256x128xf32> -> vector<256x128xf32>
    %90 = arith.addf %83, %89 : vector<256x128xf32>
    %91 = vector.extract_strided_slice %75 {offsets = [0, 2, 0], sizes = [16, 16, 128], strides = [1, 1, 1]} : vector<18x18x128xf32> to vector<16x16x128xf32>
    %92 = vector.shape_cast %91 : vector<16x16x128xf32> to vector<256x128xf32>
    %93 = arith.truncf %92 : vector<256x128xf32> to vector<256x128xbf16>
    %c2_53 = arith.constant 2 : index
    %c0_54 = arith.constant 0 : index
    %c0_55 = arith.constant 0 : index
    %94 = vector.load %arg4[%c2_53, %c0_54, %c0_55] : memref<9x128x128xbf16, #tpu.memory_space<vmem>>, vector<1x128x128xbf16>
    %95 = vector.shape_cast %94 : vector<1x128x128xbf16> to vector<128x128xbf16>
    %cst_56 = arith.constant dense<0.000000e+00> : vector<256x128xf32>
    %96 = tpu.matmul %93, %95, %cst_56 {dimension_numbers = #tpu.dot_dimension_numbers<[1], [0], [0], [1], [0, 0, 1, 1], [], []>} : vector<256x128xbf16>, vector<128x128xbf16>, vector<256x128xf32> -> vector<256x128xf32>
    %97 = arith.addf %90, %96 : vector<256x128xf32>
    %98 = vector.extract_strided_slice %75 {offsets = [1, 0, 0], sizes = [16, 16, 128], strides = [1, 1, 1]} : vector<18x18x128xf32> to vector<16x16x128xf32>
    %99 = vector.shape_cast %98 : vector<16x16x128xf32> to vector<256x128xf32>
    %100 = arith.truncf %99 : vector<256x128xf32> to vector<256x128xbf16>
    %c3_57 = arith.constant 3 : index
    %c0_58 = arith.constant 0 : index
    %c0_59 = arith.constant 0 : index
    %101 = vector.load %arg4[%c3_57, %c0_58, %c0_59] : memref<9x128x128xbf16, #tpu.memory_space<vmem>>, vector<1x128x128xbf16>
    %102 = vector.shape_cast %101 : vector<1x128x128xbf16> to vector<128x128xbf16>
    %cst_60 = arith.constant dense<0.000000e+00> : vector<256x128xf32>
    %103 = tpu.matmul %100, %102, %cst_60 {dimension_numbers = #tpu.dot_dimension_numbers<[1], [0], [0], [1], [0, 0, 1, 1], [], []>} : vector<256x128xbf16>, vector<128x128xbf16>, vector<256x128xf32> -> vector<256x128xf32>
    %104 = arith.addf %97, %103 : vector<256x128xf32>
    %105 = vector.extract_strided_slice %75 {offsets = [1, 1, 0], sizes = [16, 16, 128], strides = [1, 1, 1]} : vector<18x18x128xf32> to vector<16x16x128xf32>
    %106 = vector.shape_cast %105 : vector<16x16x128xf32> to vector<256x128xf32>
    %107 = arith.truncf %106 : vector<256x128xf32> to vector<256x128xbf16>
    %c4_61 = arith.constant 4 : index
    %c0_62 = arith.constant 0 : index
    %c0_63 = arith.constant 0 : index
    %108 = vector.load %arg4[%c4_61, %c0_62, %c0_63] : memref<9x128x128xbf16, #tpu.memory_space<vmem>>, vector<1x128x128xbf16>
    %109 = vector.shape_cast %108 : vector<1x128x128xbf16> to vector<128x128xbf16>
    %cst_64 = arith.constant dense<0.000000e+00> : vector<256x128xf32>
    %110 = tpu.matmul %107, %109, %cst_64 {dimension_numbers = #tpu.dot_dimension_numbers<[1], [0], [0], [1], [0, 0, 1, 1], [], []>} : vector<256x128xbf16>, vector<128x128xbf16>, vector<256x128xf32> -> vector<256x128xf32>
    %111 = arith.addf %104, %110 : vector<256x128xf32>
    %112 = vector.extract_strided_slice %75 {offsets = [1, 2, 0], sizes = [16, 16, 128], strides = [1, 1, 1]} : vector<18x18x128xf32> to vector<16x16x128xf32>
    %113 = vector.shape_cast %112 : vector<16x16x128xf32> to vector<256x128xf32>
    %114 = arith.truncf %113 : vector<256x128xf32> to vector<256x128xbf16>
    %c5_65 = arith.constant 5 : index
    %c0_66 = arith.constant 0 : index
    %c0_67 = arith.constant 0 : index
    %115 = vector.load %arg4[%c5_65, %c0_66, %c0_67] : memref<9x128x128xbf16, #tpu.memory_space<vmem>>, vector<1x128x128xbf16>
    %116 = vector.shape_cast %115 : vector<1x128x128xbf16> to vector<128x128xbf16>
    %cst_68 = arith.constant dense<0.000000e+00> : vector<256x128xf32>
    %117 = tpu.matmul %114, %116, %cst_68 {dimension_numbers = #tpu.dot_dimension_numbers<[1], [0], [0], [1], [0, 0, 1, 1], [], []>} : vector<256x128xbf16>, vector<128x128xbf16>, vector<256x128xf32> -> vector<256x128xf32>
    %118 = arith.addf %111, %117 : vector<256x128xf32>
    %119 = vector.extract_strided_slice %75 {offsets = [2, 0, 0], sizes = [16, 16, 128], strides = [1, 1, 1]} : vector<18x18x128xf32> to vector<16x16x128xf32>
    %120 = vector.shape_cast %119 : vector<16x16x128xf32> to vector<256x128xf32>
    %121 = arith.truncf %120 : vector<256x128xf32> to vector<256x128xbf16>
    %c6_69 = arith.constant 6 : index
    %c0_70 = arith.constant 0 : index
    %c0_71 = arith.constant 0 : index
    %122 = vector.load %arg4[%c6_69, %c0_70, %c0_71] : memref<9x128x128xbf16, #tpu.memory_space<vmem>>, vector<1x128x128xbf16>
    %123 = vector.shape_cast %122 : vector<1x128x128xbf16> to vector<128x128xbf16>
    %cst_72 = arith.constant dense<0.000000e+00> : vector<256x128xf32>
    %124 = tpu.matmul %121, %123, %cst_72 {dimension_numbers = #tpu.dot_dimension_numbers<[1], [0], [0], [1], [0, 0, 1, 1], [], []>} : vector<256x128xbf16>, vector<128x128xbf16>, vector<256x128xf32> -> vector<256x128xf32>
    %125 = arith.addf %118, %124 : vector<256x128xf32>
    %126 = vector.extract_strided_slice %75 {offsets = [2, 1, 0], sizes = [16, 16, 128], strides = [1, 1, 1]} : vector<18x18x128xf32> to vector<16x16x128xf32>
    %127 = vector.shape_cast %126 : vector<16x16x128xf32> to vector<256x128xf32>
    %128 = arith.truncf %127 : vector<256x128xf32> to vector<256x128xbf16>
    %c7_73 = arith.constant 7 : index
    %c0_74 = arith.constant 0 : index
    %c0_75 = arith.constant 0 : index
    %129 = vector.load %arg4[%c7_73, %c0_74, %c0_75] : memref<9x128x128xbf16, #tpu.memory_space<vmem>>, vector<1x128x128xbf16>
    %130 = vector.shape_cast %129 : vector<1x128x128xbf16> to vector<128x128xbf16>
    %cst_76 = arith.constant dense<0.000000e+00> : vector<256x128xf32>
    %131 = tpu.matmul %128, %130, %cst_76 {dimension_numbers = #tpu.dot_dimension_numbers<[1], [0], [0], [1], [0, 0, 1, 1], [], []>} : vector<256x128xbf16>, vector<128x128xbf16>, vector<256x128xf32> -> vector<256x128xf32>
    %132 = arith.addf %125, %131 : vector<256x128xf32>
    %133 = vector.extract_strided_slice %75 {offsets = [2, 2, 0], sizes = [16, 16, 128], strides = [1, 1, 1]} : vector<18x18x128xf32> to vector<16x16x128xf32>
    %134 = vector.shape_cast %133 : vector<16x16x128xf32> to vector<256x128xf32>
    %135 = arith.truncf %134 : vector<256x128xf32> to vector<256x128xbf16>
    %c8_77 = arith.constant 8 : index
    %c0_78 = arith.constant 0 : index
    %c0_79 = arith.constant 0 : index
    %136 = vector.load %arg4[%c8_77, %c0_78, %c0_79] : memref<9x128x128xbf16, #tpu.memory_space<vmem>>, vector<1x128x128xbf16>
    %137 = vector.shape_cast %136 : vector<1x128x128xbf16> to vector<128x128xbf16>
    %cst_80 = arith.constant dense<0.000000e+00> : vector<256x128xf32>
    %138 = tpu.matmul %135, %137, %cst_80 {dimension_numbers = #tpu.dot_dimension_numbers<[1], [0], [0], [1], [0, 0, 1, 1], [], []>} : vector<256x128xbf16>, vector<128x128xbf16>, vector<256x128xf32> -> vector<256x128xf32>
    %139 = arith.addf %132, %138 : vector<256x128xf32>
    %c0_81 = arith.constant 0 : index
    %c0_82 = arith.constant 0 : index
    %140 = vector.load %arg5[%c0_81, %c0_82] : memref<1x128xf32, #tpu.memory_space<vmem>>, vector<1x128xf32>
    %141 = vector.broadcast %140 : vector<1x128xf32> to vector<256x128xf32>
    %142 = arith.addf %139, %141 : vector<256x128xf32>
    %143 = vector.extract_strided_slice %1 {offsets = [1, 1, 0], sizes = [16, 16, 128], strides = [1, 1, 1]} : vector<18x18x128xf32> to vector<16x16x128xf32>
    %144 = vector.shape_cast %143 : vector<16x16x128xf32> to vector<256x128xf32>
    %145 = arith.addf %142, %144 : vector<256x128xf32>
    %cst_83 = arith.constant 0.000000e+00 : f32
    %146 = vector.broadcast %cst_83 : f32 to vector<256x128xf32>
    %147 = arith.maximumf %145, %146 : vector<256x128xf32>
    %148 = vector.shape_cast %147 : vector<256x128xf32> to vector<16x16x128xf32>
    %c0_84 = arith.constant 0 : index
    %c0_85 = arith.constant 0 : index
    %c0_86 = arith.constant 0 : index
    %c0_87 = arith.constant 0 : index
    %149 = vector.load %arg6[%c0_84, %c0_85, %c0_86, %c0_87] : memref<1x16x16x128xf32, #tpu.memory_space<vmem>>, vector<1x16x16x128xf32>
    %150 = vector.shape_cast %149 : vector<1x16x16x128xf32> to vector<16x16x128xf32>
    %151 = vector.shape_cast %148 : vector<16x16x128xf32> to vector<1x16x16x128xf32>
    tpu.vector_store %arg6[%c0_84, %c0_85, %c0_86, %c0_87], %151 {strides = array<i32>} : memref<1x16x16x128xf32, #tpu.memory_space<vmem>>, vector<1x16x16x128xf32>,
    return
  }
  func.func @transform_0(%arg0: i32) -> (i32, i32, i32, i32) {
    %c0_i32 = arith.constant 0 : i32
    %c0_i32_0 = arith.constant 0 : i32
    %c0_i32_1 = arith.constant 0 : i32
    %c0_i32_2 = arith.constant 0 : i32
    return %arg0, %c0_i32, %c0_i32_0, %c0_i32_1 : i32, i32, i32, i32
  }
  func.func @transform_1(%arg0: i32) -> (i32, i32, i32) {
    %c0_i32 = arith.constant 0 : i32
    %c0_i32_0 = arith.constant 0 : i32
    %c0_i32_1 = arith.constant 0 : i32
    %c0_i32_2 = arith.constant 0 : i32
    return %c0_i32, %c0_i32_0, %c0_i32_1 : i32, i32, i32
  }
  func.func @transform_2(%arg0: i32) -> (i32, i32) {
    %c0_i32 = arith.constant 0 : i32
    %c0_i32_0 = arith.constant 0 : i32
    %c0_i32_1 = arith.constant 0 : i32
    return %c0_i32, %c0_i32_0 : i32, i32
  }
  func.func @transform_3(%arg0: i32) -> (i32, i32, i32) {
    %c0_i32 = arith.constant 0 : i32
    %c0_i32_0 = arith.constant 0 : i32
    %c0_i32_1 = arith.constant 0 : i32
    %c0_i32_2 = arith.constant 0 : i32
    return %c0_i32, %c0_i32_0, %c0_i32_1 : i32, i32, i32
  }
  func.func @transform_4(%arg0: i32) -> (i32, i32) {
    %c0_i32 = arith.constant 0 : i32
    %c0_i32_0 = arith.constant 0 : i32
    %c0_i32_1 = arith.constant 0 : i32
    return %c0_i32, %c0_i32_0 : i32, i32
  }
  func.func @transform_5(%arg0: i32) -> (i32, i32, i32, i32) {
    %c0_i32 = arith.constant 0 : i32
    %c0_i32_0 = arith.constant 0 : i32
    %c0_i32_1 = arith.constant 0 : i32
    %c0_i32_2 = arith.constant 0 : i32
    return %arg0, %c0_i32, %c0_i32_0, %c0_i32_1 : i32, i32, i32, i32
  }
}

</mosaic_0001>

<bundles_post_ra>
// kernel: basic_block_forward.1
= control target key start
LH: loop header
LB: loop body
LE: loop exit
PB: predicated region body
PF: predicated region fallthrough
CT: control target
= control target key end

     0   :  { %s8334_s18 = smov 0   ;;  %s10214_s0 = inlined_call_operand.vmem [shape: f32[2,18,18,128], index: 0, kind: input, shape index: {}]   ;;  %s10215_s1 = inlined_call_operand.vmem [shape: bf16[9,128,128], index: 1, kind: input, shape index: {}]   ;;  %s10216_s2 = inlined_call_operand.vmem [shape: f32[1,128], index: 2, kind: input, shape index: {}]   ;;  %s10217_s3 = inlined_call_operand.vmem [shape: bf16[9,128,128], index: 3, kind: input, shape index: {}]   ;;  %s10218_s4 = inlined_call_operand.vmem [shape: f32[1,128], index: 4, kind: input, shape index: {}]   ;;  %s10219_s5 = inlined_call_operand.vmem [shape: f32[2,16,16,128], index: 5, kind: output, shape index: {}]  }
   0x1 LB: > { %s5918_s19 = sadd.s32 4294967295, %s8300_s18   ;;  %p5922_p0 = scmp.ge.s32.totalorder %s8300_s18, 1  ;;  %s8300_s18 = sphi %s8334_s18, %s15_s18  }
   0x2   : > { %p187_p1 = scmp.lt.s32.totalorder %s8300_s18, 3 }
   0x4   : > { %p188_p2 = pnand %p5922_p0, %p187_p1 }
   0x6   : > { %191 = sbr.rel (%p188_p2) target bundleno = 1582 (0x62e), region = 40 }
   0xd   : > { %v8149_v0 = vld [vmem:[%s10215_s1 + $0x40] sm:$0xff]   ;;  %p215_p3 = scmp.lt.s32.totalorder %s5918_s19, 1  ;;  %v8150_v1 = vld [vmem:[%s10215_s1 + $0x48] sm:$0xff]   ;;  %v8151_v2 = vld [vmem:[%s10215_s1 + $0x50] sm:$0xff]   ;;  %vm360_vm0 = vcmask 1046528   ;;  %vm924_vm1 = vcmask 1045504  }
   0xe   : > { %6763 = vmatprep.subr.bf16.mxu0 %v8149_v0  ;;  %v8152_v3 = vld [vmem:[%s10215_s1 + $0x58] sm:$0xff]   ;;  %v8153_v14 = vld [vmem:[%s10215_s1 + $0x60] sm:$0xff]   ;;  %v8154_v24 = vld [vmem:[%s10215_s1 + $0x68] sm:$0xff]  }
   0xf   : > { %s10419_s19 = smov (!%p215_p3, %s5918_s19), 1  ;;  %6764 = vmatpush3.bf16.msra.mxu0 %v8149_v0  ;;  %v8155_v28 = vld [vmem:[%s10215_s1 + $0x70] sm:$0xff]   ;;  %v8156_v39 = vld [vmem:[%s10215_s1 + $0x78] sm:$0xff]   ;;  %v8157_v60 = vld [vmem:[%s10215_s1] sm:$0xff]  }
  0x10   : > { %6765 = vmatprep.subr.bf16.mxu0 %v8150_v1  ;;  %s8139_s26 = smul.u32 432, %s10419_s19  ;;  %v8159_v41 = vld [vmem:[%s10215_s1 + $0x10] sm:$0xff]   ;;  %s6330_s22 = sshll.u32 %s10419_s19, 8 }
  0x11   : > { %s10117_s24 = scalar_lea.vmem %s10219_s5, %s6330_s22 }
  0x12   : > { %s8357_s29 = scalar_lea.vmem %s10214_s0, %s8139_s26 }
  0x13   : > { %6766 = vmatpush3.bf16.msra.mxu0 %v8150_v1  ;;  %v8363_v4 = vld [vmem:[%s8357_s29] sm:$0xff]  ;;  %v8366_v5 = vld [vmem:[%s8357_s29 + $0x8] sm:$0xff]  ;;  %v8369_v6 = vld [vmem:[%s8357_s29 + $0x10] sm:$0x3] }
  0x14   : > { %6767 = vmatprep.subr.bf16.mxu0 %v8151_v2  ;;  %v361_v7 = vrot.slane %v8363_v4, 1  ;;  %v362_v8 = vrot.slane %v8366_v5, 1  ;;  %v364_v9 = vrot.slane %v8369_v6, 1  ;;  %v8375_v10 = vld [vmem:[%s8357_s29 + $0x18] sm:$0xff]  ;;  %v8380_v13 = vld [vmem:[%s8357_s29 + $0x20] sm:$0xff]  ;;  %v8386_v16 = vld [vmem:[%s8357_s29 + $0x30] sm:$0xff] }
  0x15   : > { %v8389_v17 = vld [vmem:[%s8357_s29 + $0x38] sm:$0xff]  ;;  %v8395_v19 = vpack.c.bf16 %v8380_v13, %v8375_v10  ;;  %v8402_v21 = vld [vmem:[%s8357_s29 + $0x48] sm:$0xff]  ;;  %v8405_v22 = vld [vmem:[%s8357_s29 + $0x50] sm:$0xff]  ;;  %v366_v29 = vrot.slane %v8375_v10, 1  ;;  %v367_v31 = vrot.slane %v8380_v13, 1  ;;  %v371_v46 = vrot.slane %v8386_v16, 1 }
  0x16   : > { %v363_v11 = vsel %vm360_vm0, %v361_v7, %v362_v8  ;;  %v365_v12 = vsel %vm360_vm0, %v362_v8, %v364_v9  ;;  %v8399_v20 = vpack.c.bf16 %v8389_v17, %v8386_v16  ;;  %v8409_v23 = vpack.c.bf16 %v8405_v22, %v8402_v21  ;;  %v8415_v25 = vld [vmem:[%s8357_s29 + $0x28] sm:$0x3]  ;;  %v8418_v26 = vld [vmem:[%s8357_s29 + $0x60] sm:$0xff]  ;;  %v8437_v34 = vld [vmem:[%s8357_s29 + $0x78] sm:$0xff] }
  0x17   : > { %6768 = vmatpush3.bf16.msra.mxu0 %v8151_v2  ;;  %v473_v15 = vpack.c.bf16 %v365_v12, %v363_v11  ;;  %v8421_v27 = vld [vmem:[%s8357_s29 + $0x68] sm:$0xff]  ;;  %v369_v32 = vrot.slane %v8415_v25, 1  ;;  %v8434_v33 = vld [vmem:[%s8357_s29 + $0x40] sm:$0x3]  ;;  %v8444_v37 = vld [vmem:[%s8357_s29 + $0x90] sm:$0xff]  ;;  %v372_v47 = vrot.slane %v8389_v17, 1  ;;  %v8473_v50 = vsel %vm360_vm0, %v366_v29, %v367_v31 }
  0x18   : > { %6769 = vmatprep.subr.bf16.mxu0 %v8152_v3  ;;  %v8429_v30 = vpack.c.bf16 %v8421_v27, %v8418_v26  ;;  %v8440_v35 = vld [vmem:[%s8357_s29 + $0x80] sm:$0xff]  ;;  %v8447_v38 = vld [vmem:[%s8357_s29 + $0x98] sm:$0xff]  ;;  %v374_v48 = vrot.slane %v8434_v33, 1  ;;  %v8470_v49 = vld [vmem:[%s8357_s29 + $0x70] sm:$0x3]  ;;  %10277 = vst [vmem:[#allocation6_spill] sm:$0xff] %v8473_v50 }
  0x19   : > { %6779 = vmatprep.mubr.bf16.mxu0 %v473_v15  ;;  %v8455_v42 = vld [vmem:[%s8357_s29 + $0x58] sm:$0x3]  ;;  %v8459_v43 = vpack.c.bf16 %v8440_v35, %v8437_v34  ;;  %v8463_v44 = vpack.c.bf16 %v8447_v38, %v8444_v37  ;;  %v8476_v51 = vsel %vm360_vm0, %v367_v31, %v369_v32  ;;  %v376_v52 = vrot.slane %v8402_v21, 1  ;;  %v8481_v54 = vld [vmem:[%s8357_s29 + $0xa8] sm:$0xff]  ;;  %v8484_v55 = vld [vmem:[%s8357_s29 + $0xb0] sm:$0xff] }
  0x1a   : > { %10274 = vst [vmem:[#allocation3_spill] sm:$0xff] %v8429_v30  ;;  %10278 = vst [vmem:[#allocation7_spill] sm:$0xff] %v8476_v51  ;;  %v377_v53 = vrot.slane %v8405_v22, 1  ;;  %v379_v56 = vrot.slane %v8455_v42, 1  ;;  %v8489_v58 = vld [vmem:[%s8357_s29 + $0xc0] sm:$0xff]  ;;  %v8492_v59 = vld [vmem:[%s8357_s29 + $0xc8] sm:$0xff]  ;;  %v8508_v0 = vpack.c.bf16 %v8484_v55, %v8481_v54  ;;  %v8516_v2 = vpack.c.bf16 %v8476_v51, %v8473_v50 }
  0x1b   : > { %6770 = vmatpush3.bf16.msra.mxu0 %v8152_v3  ;;  %10275 = vst [vmem:[#allocation4_spill] sm:$0xff] %v8459_v43  ;;  %10276 = vst [vmem:[#allocation5_spill] sm:$0xff] %v8463_v44  ;;  %v8498_v61 = vld [vmem:[%s8357_s29 + $0x88] sm:$0x3]  ;;  %v8501_v62 = vld [vmem:[%s8357_s29 + $0xa0] sm:$0x3]  ;;  %v8512_v1 = vpack.c.bf16 %v8492_v59, %v8489_v58  ;;  %v8527_v11 = vsel %vm360_vm0, %v371_v46, %v372_v47  ;;  %v8530_v12 = vsel %vm360_vm0, %v372_v47, %v374_v48 }
  0x1c   : > { %6771 = vmatprep.subr.bf16.mxu0 %v8153_v14  ;;  %v8504_v63 = vld [vmem:[%s8357_s29 + $0xb8] sm:$0x3]  ;;  %10279 = vst [vmem:[#allocation8_spill] sm:$0xff] %v8508_v0  ;;  %10281 = vst [vmem:[#allocation10_spill] sm:$0xff] %v8516_v2  ;;  %v382_v3 = vrot.slane %v8421_v27, 1  ;;  %v384_v7 = vrot.slane %v8470_v49, 1  ;;  %v8565_v40 = vpack.c.bf16 %v8530_v12, %v8527_v11  ;;  %v8601_v57 = vsel %vm360_vm0, %v376_v52, %v377_v53 }
  0x1d   : > { %10280 = vst [vmem:[#allocation9_spill] sm:$0xff] %v8512_v1  ;;  %v8521_v8 = vld [vmem:[%s8357_s29 + $0xd8] sm:$0xff]  ;;  %v8524_v9 = vld [vmem:[%s8357_s29 + $0xe0] sm:$0xff]  ;;  %10282 = vst [vmem:[#allocation11_spill] sm:$0xff] %v8527_v11  ;;  %v8604_v18 = vsel %vm360_vm0, %v377_v53, %v379_v56  ;;  %v10290_v52 = vrot.slane %v8418_v26, 1  ;;  %v935_v30 = vrot.slane %v8386_v16, 2 }
  0x1e   : > { %10283 = vst [vmem:[#allocation12_spill] sm:$0xff] %v8530_v12  ;;  %v8543_v32 = vld [vmem:[%s8357_s29 + $0xd0] sm:$0x3]  ;;  %v8547_v46 = vpack.c.bf16 %v8524_v9, %v8521_v8  ;;  %v8158_v48 = vld [vmem:[%s10215_s1 + $0x8] sm:$0xff]   ;;  %10286 = vst [vmem:[#allocation15_spill] sm:$0xff] %v8565_v40  ;;  %v8627_v56 = vsel %vm360_vm0, %v382_v3, %v384_v7 }
  0x1f   : > { %6772 = vmatpush3.bf16.msra.mxu0 %v8153_v14  ;;  %v386_v14 = vrot.slane %v8437_v34, 1  ;;  %v8561_v45 = vld [vmem:[%s8357_s29 + $0xe8] sm:$0x3]  ;;  %v8572_v29 = vld [vmem:[%s8357_s29 + $0x100] sm:$0x3]  ;;  %v8590_v36 = vld [vmem:[%s8357_s29 + $0x138] sm:$0xff]  ;;  %v8624_v53 = vsel %vm360_vm0, %v10290_v52, %v382_v3  ;;  %v8647_v3 = vpack.c.bf16 %v8604_v18, %v8601_v57 }
  0x20   : > { %6773 = vmatprep.subr.bf16.mxu0 %v8154_v24  ;;  %10284 = vst [vmem:[#allocation13_spill] sm:$0xff] %v8547_v46  ;;  %v8575_v15 = vld [vmem:[%s8357_s29 + $0x108] sm:$0xff]  ;;  %v8584_v51 = vld [vmem:[%s8357_s29 + $0x120] sm:$0xff]  ;;  %10288 = vst [vmem:[#allocation17_spill] sm:$0xff] %v8601_v57  ;;  %v10303_v57 = vrot.slane %v8498_v61, 1 }
  0x21   : > { %v8587_v31 = vld [vmem:[%s8357_s29 + $0x128] sm:$0xff]  ;;  %v8593_v12 = vld [vmem:[%s8357_s29 + $0x140] sm:$0xff]  ;;  %10289 = vst [vmem:[#allocation18_spill] sm:$0xff] %v8604_v18  ;;  %v8612_v46 = vld [vmem:[%s8357_s29 + $0x118] sm:$0x3] }
  0x22   : > { %10291 = vst [vmem:[#allocation19_spill] sm:$0xff] %v8624_v53  ;;  %10292 = vst [vmem:[#allocation20_spill] sm:$0xff] %v8627_v56  ;;  %v8635_v0 = vld [vmem:[%s8357_s29 + $0x170] sm:$0xff]  ;;  %v8643_v52 = vpack.c.bf16 %v8593_v12, %v8590_v36  ;;  %v8160_v18 = vld [vmem:[%s10215_s1 + $0x18] sm:$0xff]  }
  0x23   : > { %6774 = vmatpush3.bf16.msra.mxu0 %v8154_v24  ;;  %v8535_v24 = vld [vmem:[%s8357_s29 + $0xf0] sm:$0xff]  ;;  %v8729_v16 = vld [vmem:[%s8357_s29 + $0x148] sm:$0x3] }
  0x24   : > { %6775 = vmatprep.subr.bf16.mxu0 %v8155_v28  ;;  %10294 = vst [vmem:[#allocation22_spill] sm:$0xff] %v8643_v52  ;;  %v8650_v7 = vld [vmem:[%s8357_s29 + $0x130] sm:$0x3]  ;;  %v10297_v52 = vrot.slane %v8440_v35, 1 }
  0x27   : > { %6776 = vmatpush3.bf16.msra.mxu0 %v8155_v28  ;;  %v8538_v28 = vld [vmem:[%s8357_s29 + $0xf8] sm:$0xff] }
  0x28   : > { %6777 = vmatprep.subr.bf16.mxu0 %v8156_v39  ;;  %v8551_v47 = vpack.c.bf16 %v8538_v28, %v8535_v24 }
  0x2a   : > { %10285 = vst [vmem:[#allocation14_spill] sm:$0xff] %v8551_v47  ;;  %v8631_v47 = vld [vmem:[%s8357_s29 + $0x168] sm:$0xff] }
  0x2b   : > { %6778 = vmatpush3.bf16.msra.mxu0 %v8156_v39  ;;  %v8578_v39 = vld [vmem:[%s8357_s29 + $0x110] sm:$0xff]  ;;  %v8658_v1 = vpack.c.bf16 %v8635_v0, %v8631_v47 }
  0x2c   : > { %6811 = vmatprep.subr.bf16.mxu0 %v8157_v60  ;;  %v8597_v50 = vpack.c.bf16 %v8578_v39, %v8575_v15 }
  0x2d   : > { %10296 = vst [vmem:[#allocation24_spill] sm:$0xff] %v8658_v1  ;;  %v925_v1 = vrot.slane %v8363_v4, 2 }
  0x2e   : > { %10287 = vst [vmem:[#allocation16_spill] sm:$0xff] %v8597_v50  ;;  %6780 = vmatmul.mubr.bf16.vlgmr.msra.gmra.mrb[0].mxu0 %v8516_v2  ;;  %v8615_v50 = vld [vmem:[%s8357_s29 + $0x150] sm:$0xff]  ;;  %v8618_v2 = vld [vmem:[%s8357_s29 + $0x158] sm:$0xff] }
  0x2f   : > { %6812 = vmatpush3.bf16.msra.mxu0 %v8157_v60  ;;  %6783 = vmatprep.mubr.bf16.mxu0 %v8565_v40  ;;  %v8639_v60 = vpack.c.bf16 %v8587_v31, %v8584_v51  ;;  %v8654_v11 = vpack.c.bf16 %v8618_v2, %v8615_v50  ;;  %v8662_v40 = vpack.c.bf16 %v8627_v56, %v8624_v53  ;;  %v10299_v56 = vrot.slane %v8380_v13, 2 }
  0x30   : > { %6813 = vmatprep.subr.bf16.mxu0 %v8158_v48  ;;  %v10300_v53 = vrot.slane %v8375_v10, 2  ;;  %v926_v10 = vrot.slane %v8366_v5, 2  ;;  %v10308_v13 = vrot.slane %v8444_v37, 1 }
  0x31   : > { %10293 = vst [vmem:[#allocation21_spill] sm:$0xff] %v8639_v60  ;;  %10295 = vst [vmem:[#allocation23_spill] sm:$0xff] %v8654_v11  ;;  %v8667_v60 = vsel %vm360_vm0, %v386_v14, %v10297_v52  ;;  %v10301_v14 = vrot.slane %v8415_v25, 2  ;;  %v10302_v52 = vmov %v10299_v56  ;;  %v10307_v25 = vrot.slane %v8447_v38, 1 }
  0x32   : > { %10298 = vst [vmem:[#allocation25_spill] sm:$0xff] %v8667_v60  ;;  %v932_v44 = vsel %vm924_vm1, %v10300_v53, %v10299_v56 }
  0x33   : > { %6814 = vmatpush3.bf16.msra.mxu0 %v8158_v48  ;;  %v934_v43 = vsel %vm924_vm1, %v10302_v52, %v10301_v14  ;;  %v10304_v48 = vrot.slane %v8440_v35, 1  ;;  %v8701_v56 = vsel %vm360_vm0, %v10308_v13, %v10307_v25  ;;  %v10310_v14 = vrot.slane %v8501_v62, 1 }
  0x34   : > { %6815 = vmatprep.subr.bf16.mxu0 %v8159_v41  ;;  %v8694_v53 = vpack.c.bf16 %v934_v43, %v932_v44  ;;  %10309 = vst [vmem:[#allocation28_spill] sm:$0xff] %v8701_v56  ;;  %v8715_v44 = vsel %vm924_vm1, %v925_v1, %v926_v10  ;;  %v943_v43 = vrot.slane %v8455_v42, 2  ;;  %v8162_v42 = vld [vmem:[%s10215_s1 + $0x28] sm:$0xff]   ;;  %v948_v1 = vrot.slane %v8470_v49, 2 }
  0x35   : > { %v8690_v11 = vsel %vm360_vm0, %v10304_v48, %v10303_v57  ;;  %v10311_v57 = vmov %v10307_v25  ;;  %v10313_v25 = vrot.slane %v8369_v6, 2  ;;  %v938_v6 = vrot.slane %v8434_v33, 2 }
  0x36   : > { %10305 = vst [vmem:[#allocation26_spill] sm:$0xff] %v8690_v11  ;;  %10306 = vst [vmem:[#allocation27_spill] sm:$0xff] %v8694_v53  ;;  %v8708_v52 = vsel %vm360_vm0, %v10311_v57, %v10310_v14  ;;  %6784 = vmatmul.mubr.bf16.gmra.mrb[4].mxu0 %v8647_v3  ;;  %v936_v53 = vrot.slane %v8389_v17, 2  ;;  %v8726_v14 = vpack.c.bf16 %v8690_v11, %v8667_v60  ;;  %v8161_v17 = vld [vmem:[%s10215_s1 + $0x20] sm:$0xff]   ;;  %v945_v48 = vrot.slane %v8418_v26, 2 }
  0x37   : > { %10312 = vst [vmem:[#allocation29_spill] sm:$0xff] %v8708_v52  ;;  %v8720_v13 = vsel %vm924_vm1, %v926_v10, %v10313_v25  ;;  %6787 = vmatprep.mubr.bf16.mxu0 %v8662_v40  ;;  %6816 = vmatpush3.bf16.msra.mxu0 %v8159_v41  ;;  %v940_v25 = vrot.slane %v8402_v21, 2  ;;  %v941_v41 = vrot.slane %v8405_v22, 2  ;;  %v8744_v57 = vpack.c.bf16 %v8708_v52, %v8701_v56 }
  0x38   : > { %6817 = vmatprep.subr.bf16.mxu0 %v8160_v18  ;;  %v937_v10 = vsel %vm924_vm1, %v935_v30, %v936_v53  ;;  %v939_v33 = vsel %vm924_vm1, %v936_v53, %v938_v6  ;;  %v946_v22 = vrot.slane %v8421_v27, 2  ;;  %v950_v53 = vrot.slane %v8437_v34, 2 }
  0x39   : > { %v8749_v11 = vpack.c.bf16 %v939_v33, %v937_v10  ;;  %v942_v30 = vsel %vm924_vm1, %v940_v25, %v941_v41  ;;  %v944_v21 = vsel %vm924_vm1, %v941_v41, %v943_v43  ;;  %v951_v26 = vrot.slane %v8440_v35, 2 }
  0x3a   : > { %v8757_v52 = vpack.c.bf16 %v944_v21, %v942_v30  ;;  %v10314_v6 = vrot.slane %v8484_v55, 1  ;;  %v10315_v10 = vrot.slane %v8481_v54, 1  ;;  %v947_v27 = vsel %vm924_vm1, %v945_v48, %v946_v22 }
  0x3b   : > { %6818 = vmatpush3.bf16.msra.mxu0 %v8160_v18  ;;  %v953_v25 = vrot.slane %v8498_v61, 2  ;;  %v10317_v49 = vrot.slane %v8504_v63, 1  ;;  %v10320_v41 = vrot.slane %v8492_v59, 1  ;;  %v10321_v33 = vrot.slane %v8489_v58, 1 }
  0x3c   : > { %v8767_v43 = vsel %vm360_vm0, %v10315_v10, %v10314_v6  ;;  %6819 = vmatprep.subr.bf16.mxu0 %v8161_v17  ;;  %v10318_v34 = vmov %v10314_v6  ;;  %v949_v21 = vsel %vm924_vm1, %v946_v22, %v948_v1  ;;  %v952_v48 = vsel %vm924_vm1, %v950_v53, %v951_v26 }
  0x3d   : > { %10316 = vst [vmem:[#allocation30_spill] sm:$0xff] %v8767_v43  ;;  %v8777_v35 = vsel %vm360_vm0, %v10318_v34, %v10317_v49  ;;  %v8784_v30 = vsel %vm360_vm0, %v10321_v33, %v10320_v41  ;;  %v8789_v61 = vpack.c.bf16 %v949_v21, %v947_v27  ;;  %v954_v6 = vsel %vm924_vm1, %v951_v26, %v953_v25  ;;  %v8163_v34 = vld [vmem:[%s10215_s1 + $0x30] sm:$0xff]   ;;  %v8164_v33 = vld [vmem:[%s10215_s1 + $0x38] sm:$0xff]  }
  0x3e   : > { %10319 = vst [vmem:[#allocation31_spill] sm:$0xff] %v8777_v35  ;;  %10322 = vst [vmem:[#allocation32_spill] sm:$0xff] %v8784_v30  ;;  %6788 = vmatmul.mubr.bf16.gmra.mrb[8].mxu0 %v8726_v14  ;;  %v955_v10 = vrot.slane %v8444_v37, 2  ;;  %v956_v49 = vrot.slane %v8447_v38, 2  ;;  %v8798_v1 = vpack.c.bf16 %v954_v6, %v952_v48  ;;  %v958_v22 = vrot.slane %v8501_v62, 2 }
  0x3f   : > { %6791 = vmatprep.mubr.bf16.mxu0 %v8744_v57  ;;  %6820 = vmatpush3.bf16.msra.mxu0 %v8161_v17  ;;  %v960_v53 = vrot.slane %v8481_v54, 2  ;;  %v961_v27 = vrot.slane %v8484_v55, 2  ;;  %v10323_v26 = vrot.slane %v8543_v32, 1  ;;  %v10324_v37 = vmov %v10320_v41 }
  0x40   : > { %6821 = vmatprep.subr.bf16.mxu0 %v8162_v42  ;;  %v957_v25 = vsel %vm924_vm1, %v955_v10, %v956_v49  ;;  %v963_v41 = vrot.slane %v8504_v63, 2  ;;  %v959_v62 = vsel %vm924_vm1, %v956_v49, %v958_v22  ;;  %v8817_v55 = vpack.c.bf16 %v8777_v35, %v8767_v43 }
  0x41   : > { %v8808_v38 = vsel %vm360_vm0, %v10324_v37, %v10323_v26  ;;  %v962_v54 = vsel %vm924_vm1, %v960_v53, %v961_v27  ;;  %v8822_v21 = vpack.c.bf16 %v959_v62, %v957_v25  ;;  %v10326_v10 = vrot.slane %v8524_v9, 1  ;;  %v8854_v62 = vld [vmem:[%s10215_s1 + $0x80] sm:$0xff]  }
  0x42   : > { %10325 = vst [vmem:[#allocation33_spill] sm:$0xff] %v8808_v38  ;;  %v964_v48 = vsel %vm924_vm1, %v961_v27, %v963_v41  ;;  %v8827_v6 = vpack.c.bf16 %v8808_v38, %v8784_v30  ;;  %v10327_v49 = vrot.slane %v8521_v8, 1  ;;  %v432_v53 = vrot.slane %v8618_v2, 1 }
  0x43   : > { %6822 = vmatpush3.bf16.msra.mxu0 %v8162_v42  ;;  %v8829_v63 = vpack.c.bf16 %v964_v48, %v962_v54  ;;  %v965_v27 = vrot.slane %v8489_v58, 2  ;;  %v966_v26 = vrot.slane %v8492_v59, 2  ;;  %v968_v42 = vrot.slane %v8543_v32, 2 }
  0x44   : > { %6823 = vmatprep.subr.bf16.mxu0 %v8163_v34  ;;  %v8836_v22 = vsel %vm360_vm0, %v10327_v49, %v10326_v10  ;;  %v10329_v37 = vrot.slane %v8561_v45, 1  ;;  %v10330_v25 = vmov %v10326_v10  ;;  %v970_v58 = vrot.slane %v8521_v8, 2 }
  0x45   : > { %10328 = vst [vmem:[#allocation34_spill] sm:$0xff] %v8836_v22  ;;  %v971_v59 = vrot.slane %v8524_v9, 2  ;;  %v973_v32 = vrot.slane %v8561_v45, 2  ;;  %v10332_v54 = vrot.slane %v8538_v28, 1  ;;  %v10333_v48 = vrot.slane %v8535_v24, 1 }
  0x46   : > { %6792 = vmatmul.mubr.bf16.gmra.mrb[12].mxu0 %v8817_v55  ;;  %v8849_v41 = vsel %vm360_vm0, %v10330_v25, %v10329_v37  ;;  %v967_v8 = vsel %vm924_vm1, %v965_v27, %v966_v26  ;;  %v969_v9 = vsel %vm924_vm1, %v966_v26, %v968_v42  ;;  %v8876_v45 = vld [vmem:[%s8357_s29 + $0x160] sm:$0x3]  ;;  %v10338_v27 = vrot.slane %v8578_v39, 1 }
  0x47   : > { %6795 = vmatprep.mubr.bf16.mxu0 %v8827_v6  ;;  %10331 = vst [vmem:[#allocation35_spill] sm:$0xff] %v8849_v41  ;;  %6824 = vmatpush3.bf16.msra.mxu0 %v8163_v34  ;;  %v8864_v10 = vsel %vm360_vm0, %v10333_v48, %v10332_v54  ;;  %v10335_v34 = vrot.slane %v8572_v29, 1  ;;  %v10336_v49 = vmov %v10332_v54  ;;  %v8878_v25 = vpack.c.bf16 %v969_v9, %v967_v8 }
  0x48   : > { %10334 = vst [vmem:[#allocation36_spill] sm:$0xff] %v8864_v10  ;;  %6825 = vmatprep.subr.bf16.mxu0 %v8164_v33  ;;  %v972_v17 = vsel %vm924_vm1, %v970_v58, %v971_v59  ;;  %v974_v54 = vsel %vm924_vm1, %v971_v59, %v973_v32  ;;  %v8884_v48 = vpack.c.bf16 %v8849_v41, %v8836_v22  ;;  %v10339_v26 = vrot.slane %v8575_v15, 1 }
  0x49   : > { %v8871_v37 = vsel %vm360_vm0, %v10336_v49, %v10335_v34  ;;  %v8886_v18 = vpack.c.bf16 %v974_v54, %v972_v17  ;;  %v10341_v58 = vrot.slane %v8612_v46, 1  ;;  %v10342_v59 = vmov %v10338_v27 }
  0x4a   : > { %10337 = vst [vmem:[#allocation37_spill] sm:$0xff] %v8871_v37  ;;  %v8890_v34 = vpack.c.bf16 %v8871_v37, %v8864_v10  ;;  %v8898_v42 = vsel %vm360_vm0, %v10339_v26, %v10338_v27  ;;  %v975_v32 = vrot.slane %v8535_v24, 2  ;;  %v976_v49 = vrot.slane %v8538_v28, 2 }
  0x4b   : > { %6826 = vmatpush3.bf16.msra.mxu0 %v8164_v33  ;;  %10340 = vst [vmem:[#allocation38_spill] sm:$0xff] %v8898_v42  ;;  %v8905_v17 = vsel %vm360_vm0, %v10342_v59, %v10341_v58  ;;  %v434_v33 = vrot.slane %v8876_v45, 1  ;;  %v978_v8 = vrot.slane %v8572_v29, 2  ;;  %v436_v9 = vrot.slane %v8631_v47, 1 }
  0x4c   : > { %6859 = vmatprep.subr.bf16.mxu0 %v8854_v62  ;;  %10343 = vst [vmem:[#allocation39_spill] sm:$0xff] %v8905_v17  ;;  %v980_v54 = vrot.slane %v8575_v15, 2  ;;  %v981_v27 = vrot.slane %v8578_v39, 2  ;;  %v983_v26 = vrot.slane %v8612_v46, 2  ;;  %v10344_v58 = vrot.slane %v8587_v31, 1 }
  0x4d   : > { %v10345_v59 = vrot.slane %v8584_v51, 1  ;;  %v10347_v28 = vrot.slane %v8650_v7, 1  ;;  %v977_v15 = vsel %vm924_vm1, %v975_v32, %v976_v49  ;;  %v979_v39 = vsel %vm924_vm1, %v976_v49, %v978_v8 }
  0x4e   : > { %6796 = vmatmul.mubr.bf16.gmra.mrb[16].mxu0 %v8884_v48  ;;  %v10348_v29 = vmov %v10344_v58  ;;  %v8933_v37 = vpack.c.bf16 %v979_v39, %v977_v15  ;;  %v982_v46 = vsel %vm924_vm1, %v980_v54, %v981_v27  ;;  %v984_v22 = vsel %vm924_vm1, %v981_v27, %v983_v26 }
  0x4f   : > { %6799 = vmatprep.mubr.bf16.mxu0 %v8890_v34  ;;  %v8922_v24 = vsel %vm360_vm0, %v10345_v59, %v10344_v58  ;;  %v8929_v41 = vsel %vm360_vm0, %v10348_v29, %v10347_v28  ;;  %v8939_v58 = vpack.c.bf16 %v8905_v17, %v8898_v42  ;;  %v273_v59 = vld [vmem:[%s8357_s29 + $0x178] sm:$0x3]  ;;  %v8942_v10 = vpack.c.bf16 %v984_v22, %v982_v46 }
  0x50   : > { %10346 = vst [vmem:[#allocation40_spill] sm:$0xff] %v8922_v24  ;;  %10349 = vst [vmem:[#allocation41_spill] sm:$0xff] %v8929_v41  ;;  %v8946_v28 = vpack.c.bf16 %v8929_v41, %v8922_v24  ;;  %v10350_v32 = vrot.slane %v8593_v12, 1  ;;  %v10351_v49 = vrot.slane %v8590_v36, 1  ;;  %v10353_v54 = vrot.slane %v8729_v16, 1 }
  0x51   : > { %v437_v22 = vrot.slane %v8635_v0, 1  ;;  %v985_v29 = vrot.slane %v8584_v51, 2  ;;  %v986_v15 = vrot.slane %v8587_v31, 2  ;;  %v988_v39 = vrot.slane %v8650_v7, 2 }
  0x52   : > { %v8953_v8 = vsel %vm360_vm0, %v10351_v49, %v10350_v32  ;;  %v10354_v27 = vmov %v10350_v32  ;;  %v439_v46 = vrot.slane %v273_v59, 1  ;;  %v990_v32 = vrot.slane %v8590_v36, 2 }
  0x53   : > { %10352 = vst [vmem:[#allocation42_spill] sm:$0xff] %v8953_v8  ;;  %v8960_v26 = vsel %vm360_vm0, %v10354_v27, %v10353_v54  ;;  %v991_v49 = vrot.slane %v8593_v12, 2  ;;  %v993_v54 = vrot.slane %v8729_v16, 2  ;;  %v10356_v27 = vrot.slane %v8615_v50, 1 }
  0x54   : > { %10355 = vst [vmem:[#allocation43_spill] sm:$0xff] %v8960_v26  ;;  %v8977_v51 = vsel %vm360_vm0, %v432_v53, %v434_v33  ;;  %v987_v31 = vsel %vm924_vm1, %v985_v29, %v986_v15  ;;  %v989_v7 = vsel %vm924_vm1, %v986_v15, %v988_v39  ;;  %v8987_v16 = vpack.c.bf16 %v8960_v26, %v8953_v8  ;;  %v10376_v26 = vld [vmem:[#allocation10_spill] sm:$0xff]  ;;  %v10377_v8 = vld [vmem:[#allocation15_spill] sm:$0xff] }
  0x55   : > { %v8974_v17 = vsel %vm360_vm0, %v10356_v27, %v432_v53  ;;  %10358 = vst [vmem:[#allocation45_spill] sm:$0xff] %v8977_v51  ;;  %v8981_v41 = vpack.c.bf16 %v989_v7, %v987_v31  ;;  %v992_v36 = vsel %vm924_vm1, %v990_v32, %v991_v49  ;;  %v994_v12 = vsel %vm924_vm1, %v991_v49, %v993_v54 }
  0x56   : > { %6800 = vmatmul.mubr.bf16.gmra.mrb[20].mxu0 %v8939_v58  ;;  %10357 = vst [vmem:[#allocation44_spill] sm:$0xff] %v8974_v17  ;;  %v8989_v42 = vpack.c.bf16 %v994_v12, %v992_v36  ;;  %v8993_v53 = vpack.c.bf16 %v8977_v51, %v8974_v17  ;;  %v8997_v33 = vsel %vm360_vm0, %v436_v9, %v437_v22  ;;  %v995_v29 = vrot.slane %v8615_v50, 2  ;;  %v10363_v36 = vld [vmem:[#allocation4_spill] sm:$0xff]  ;;  %v8171_v12 = vld [vmem:[%s10215_s1 + $0xb0] sm:$0xff]   ;;  %v8190_v51 = vld [vmem:[%s10215_s1 + $0x148] sm:$0xff]  }
  0x57   : > { %6803 = vmatprep.mubr.bf16.mxu0 %v8946_v28  ;;  %10359 = vst [vmem:[#allocation46_spill] sm:$0xff] %v8997_v33  ;;  %v996_v15 = vrot.slane %v8618_v2, 2  ;;  %v998_v39 = vrot.slane %v8876_v45, 2  ;;  %v9004_v32 = vsel %vm360_vm0, %v437_v22, %v439_v46  ;;  %v1000_v49 = vrot.slane %v8631_v47, 2  ;;  %v8166_v47 = vld [vmem:[%s10215_s1 + $0x88] sm:$0xff]   ;;  %v10362_v46 = vld [vmem:[#allocation3_spill] sm:$0xff] }
  0x58   : > { %10360 = vst [vmem:[#allocation47_spill] sm:$0xff] %v9004_v32  ;;  %v1001_v54 = vrot.slane %v8635_v0, 2  ;;  %v1003_v27 = vrot.slane %v273_v59, 2  ;;  %v9016_v45 = vpack.c.bf16 %v9004_v32, %v8997_v33  ;;  %v10361_v0 = vpack.c.bf16 %v8366_v5, %v8363_v4  ;;  %v8167_v59 = vld [vmem:[%s10215_s1 + $0x90] sm:$0xff]   ;;  %v8168_v4 = vld [vmem:[%s10215_s1 + $0x98] sm:$0xff]   ;;  %v8169_v5 = vld [vmem:[%s10215_s1 + $0xa0] sm:$0xff]  }
  0x59   : > { %v997_v31 = vsel %vm924_vm1, %v995_v29, %v996_v15  ;;  %v999_v9 = vsel %vm924_vm1, %v996_v15, %v998_v39  ;;  %v10364_v29 = vld [vmem:[#allocation5_spill] sm:$0xff]  ;;  %v8172_v15 = vld [vmem:[%s10215_s1 + $0xb8] sm:$0xff]  }
  0x5a   : > { %v9010_v7 = vpack.c.bf16 %v999_v9, %v997_v31  ;;  %v1002_v50 = vsel %vm924_vm1, %v1000_v49, %v1001_v54  ;;  %v1004_v2 = vsel %vm924_vm1, %v1001_v54, %v1003_v27  ;;  %v10365_v39 = vld [vmem:[#allocation8_spill] sm:$0xff]  ;;  %v8173_v49 = vld [vmem:[%s10215_s1 + $0xc0] sm:$0xff]   ;;  %v10368_v31 = vld [vmem:[#allocation14_spill] sm:$0xff] }
  0x5b   : > { %v9018_v22 = vpack.c.bf16 %v1004_v2, %v1002_v50  ;;  %v10366_v54 = vld [vmem:[#allocation9_spill] sm:$0xff]  ;;  %v10369_v9 = vld [vmem:[#allocation16_spill] sm:$0xff]  ;;  %v10371_v2 = vld [vmem:[#allocation22_spill] sm:$0xff] }
  0x5c   : > { %v10367_v27 = vld [vmem:[#allocation13_spill] sm:$0xff] }
  0x5d   : > { %v10370_v50 = vld [vmem:[#allocation21_spill] sm:$0xff] }
  0x5e   : > { %6804 = vmatmul.mubr.bf16.gmra.mrb[24].mxu0 %v8987_v16 }
  0x5f   : > { %6807 = vmatprep.mubr.bf16.mxu0 %v8993_v53 }
  0x66   : > { %6808 = vmatmul.mubr.bf16.gmra.mrb[28].mxu0 %v9016_v45 }
  0x67   : > { %6827 = vmatprep.mubr.bf16.mxu0 %v10361_v0  ;;  %v10372_v0 = vld [vmem:[#allocation23_spill] sm:$0xff] }
  0x6e   : > { %6828 = vmatmul.mubr.bf16.vlgmr.msra.gmra.mrb[0].mxu0 %v8395_v19 }
  0x6f   : > { %6860 = vmatpush3.bf16.msra.mxu0 %v8854_v62  ;;  %6831 = vmatprep.mubr.bf16.mxu0 %v8399_v20  ;;  %v8170_v62 = vld [vmem:[%s10215_s1 + $0xa8] sm:$0xff]  }
  0x70   : > { %6861 = vmatprep.subr.bf16.mxu0 %v8166_v47 }
  0x73   : > { %6862 = vmatpush3.bf16.msra.mxu0 %v8166_v47  ;;  %v10373_v47 = vld [vmem:[#allocation24_spill] sm:$0xff] }
  0x74   : > { %6863 = vmatprep.subr.bf16.mxu0 %v8167_v59 }
  0x76   : > { %6832 = vmatmul.mubr.bf16.gmra.mrb[4].mxu0 %v8409_v23 }
  0x77   : > { %6835 = vmatprep.mubr.bf16.mxu0 %v10362_v46  ;;  %6864 = vmatpush3.bf16.msra.mxu0 %v8167_v59  ;;  %v10374_v59 = vpack.c.bf16 %v8720_v13, %v8715_v44  ;;  %v8176_v44 = vld [vmem:[%s10215_s1 + $0xd8] sm:$0xff]   ;;  %v8177_v13 = vld [vmem:[%s10215_s1 + $0xe0] sm:$0xff]  }
  0x78   : > { %6865 = vmatprep.subr.bf16.mxu0 %v8168_v4 }
  0x7b   : > { %6866 = vmatpush3.bf16.msra.mxu0 %v8168_v4  ;;  %v8174_v4 = vld [vmem:[%s10215_s1 + $0xc8] sm:$0xff]  }
  0x7c   : > { %6867 = vmatprep.subr.bf16.mxu0 %v8169_v5 }
  0x7e   : > { %6836 = vmatmul.mubr.bf16.gmra.mrb[8].mxu0 %v10363_v36 }
  0x7f   : > { %6839 = vmatprep.mubr.bf16.mxu0 %v10364_v29  ;;  %6868 = vmatpush3.bf16.msra.mxu0 %v8169_v5  ;;  %v10375_v5 = vld [vmem:[#allocation27_spill] sm:$0xff] }
  0x80   : > { %6869 = vmatprep.subr.bf16.mxu0 %v8170_v62 }
  0x83   : > { %6870 = vmatpush3.bf16.msra.mxu0 %v8170_v62  ;;  %v8175_v62 = vld [vmem:[%s10215_s1 + $0xd0] sm:$0xff]  }
  0x84   : > { %6871 = vmatprep.subr.bf16.mxu0 %v8171_v12 }
  0x86   : > { %6840 = vmatmul.mubr.bf16.gmra.mrb[12].mxu0 %v10365_v39 }
  0x87   : > { %6843 = vmatprep.mubr.bf16.mxu0 %v10366_v54  ;;  %6872 = vmatpush3.bf16.msra.mxu0 %v8171_v12  ;;  %v8178_v12 = vld [vmem:[%s10215_s1 + $0xe8] sm:$0xff]  }
  0x88   : > { %6873 = vmatprep.subr.bf16.mxu0 %v8172_v15 }
  0x8b   : > { %6874 = vmatpush3.bf16.msra.mxu0 %v8172_v15  ;;  %v8179_v15 = vld [vmem:[%s10215_s1 + $0xf0] sm:$0xff]  }
  0x8c   : > { %6907 = vmatprep.subr.bf16.mxu0 %v8173_v49 }
  0x8e   : > { %6844 = vmatmul.mubr.bf16.gmra.mrb[16].mxu0 %v10367_v27 }
  0x8f   : > { %6847 = vmatprep.mubr.bf16.mxu0 %v10368_v31 }
  0x96   : > { %6848 = vmatmul.mubr.bf16.gmra.mrb[20].mxu0 %v10369_v9 }
  0x97   : > { %6851 = vmatprep.mubr.bf16.mxu0 %v10370_v50 }
  0x9e   : > { %6852 = vmatmul.mubr.bf16.gmra.mrb[24].mxu0 %v10371_v2 }
  0x9f   : > { %6855 = vmatprep.mubr.bf16.mxu0 %v10372_v0 }
  0xa6   : > { %6856 = vmatmul.mubr.bf16.gmra.mrb[28].mxu0 %v10373_v47 }
  0xa7   : > { %6875 = vmatprep.mubr.bf16.mxu0 %v10374_v59  ;;  %v8181_v59 = vld [vmem:[%s10215_s1 + $0x100] sm:$0xff]  }
  0xae   : > { %6876 = vmatmul.mubr.bf16.vlgmr.msra.gmra.mrb[0].mxu0 %v10375_v5 }
  0xaf   : > { %6908 = vmatpush3.bf16.msra.mxu0 %v8173_v49  ;;  %6879 = vmatprep.mubr.bf16.mxu0 %v8749_v11  ;;  %v8180_v49 = vld [vmem:[%s10215_s1 + $0xf8] sm:$0xff]  }
  0xb0   : > { %6909 = vmatprep.subr.bf16.mxu0 %v8174_v4 }
  0xb3   : > { %6910 = vmatpush3.bf16.msra.mxu0 %v8174_v4  ;;  %v8182_v4 = vld [vmem:[%s10215_s1 + $0x108] sm:$0xff]  }
  0xb4   : > { %6911 = vmatprep.subr.bf16.mxu0 %v8175_v62 }
  0xb6   : > { %6880 = vmatmul.mubr.bf16.gmra.mrb[4].mxu0 %v8757_v52 }
  0xb7   : > { %6883 = vmatprep.mubr.bf16.mxu0 %v8789_v61  ;;  %6912 = vmatpush3.bf16.msra.mxu0 %v8175_v62  ;;  %v8183_v62 = vld [vmem:[%s10215_s1 + $0x110] sm:$0xff]  }
  0xb8   : > { %6913 = vmatprep.subr.bf16.mxu0 %v8176_v44 }
  0xbb   : > { %6914 = vmatpush3.bf16.msra.mxu0 %v8176_v44  ;;  %v8185_v44 = vld [vmem:[%s10215_s1 + $0x120] sm:$0xff]  }
  0xbc   : > { %6915 = vmatprep.subr.bf16.mxu0 %v8177_v13 }
  0xbe   : > { %6884 = vmatmul.mubr.bf16.gmra.mrb[8].mxu0 %v8798_v1 }
  0xbf   : > { %6887 = vmatprep.mubr.bf16.mxu0 %v8822_v21  ;;  %6916 = vmatpush3.bf16.msra.mxu0 %v8177_v13  ;;  %v8186_v13 = vld [vmem:[%s10215_s1 + $0x128] sm:$0xff]  }
  0xc0   : > { %6917 = vmatprep.subr.bf16.mxu0 %v8178_v12 }
  0xc3   : > { %6918 = vmatpush3.bf16.msra.mxu0 %v8178_v12  ;;  %v8187_v12 = vld [vmem:[%s10215_s1 + $0x130] sm:$0xff]  }
  0xc4   : > { %6919 = vmatprep.subr.bf16.mxu0 %v8179_v15 }
  0xc6   : > { %6888 = vmatmul.mubr.bf16.gmra.mrb[12].mxu0 %v8829_v63 }
  0xc7   : > { %6891 = vmatprep.mubr.bf16.mxu0 %v8878_v25  ;;  %6920 = vmatpush3.bf16.msra.mxu0 %v8179_v15  ;;  %v8188_v15 = vld [vmem:[%s10215_s1 + $0x138] sm:$0xff]  }
  0xc8   : > { %6921 = vmatprep.subr.bf16.mxu0 %v8180_v49 }
  0xcb   : > { %6922 = vmatpush3.bf16.msra.mxu0 %v8180_v49  ;;  %v8189_v49 = vld [vmem:[%s10215_s1 + $0x140] sm:$0xff]  }
  0xcc   : > { %6955 = vmatprep.subr.bf16.mxu0 %v8181_v59 }
  0xce   : > { %6892 = vmatmul.mubr.bf16.gmra.mrb[16].mxu0 %v8886_v18 }
  0xcf   : > { %6895 = vmatprep.mubr.bf16.mxu0 %v8933_v37 }
  0xd6   : > { %6896 = vmatmul.mubr.bf16.gmra.mrb[20].mxu0 %v8942_v10 }
  0xd7   : > { %6899 = vmatprep.mubr.bf16.mxu0 %v8981_v41 }
  0xde   : > { %6900 = vmatmul.mubr.bf16.gmra.mrb[24].mxu0 %v8989_v42 }
  0xdf   : > { %6903 = vmatprep.mubr.bf16.mxu0 %v9010_v7 }
  0xe6   : > { %6904 = vmatmul.mubr.bf16.gmra.mrb[28].mxu0 %v9018_v22 }
  0xe7   : > { %6923 = vmatprep.mubr.bf16.mxu0 %v8395_v19  ;;  %v8184_v19 = vld [vmem:[%s10215_s1 + $0x118] sm:$0xff]  }
  0xee   : > { %6924 = vmatmul.mubr.bf16.vlgmr.msra.gmra.mrb[0].mxu0 %v8399_v20 }
  0xef   : > { %6956 = vmatpush3.bf16.msra.mxu0 %v8181_v59  ;;  %6927 = vmatprep.mubr.bf16.mxu0 %v8409_v23  ;;  %v274_v59 = vld [vmem:[%s8357_s29 + $0x180] sm:$0xff] }
  0xf0   : > { %6957 = vmatprep.subr.bf16.mxu0 %v8182_v4 }
  0xf3   : > { %6958 = vmatpush3.bf16.msra.mxu0 %v8182_v4  ;;  %v275_v4 = vld [vmem:[%s8357_s29 + $0x188] sm:$0xff] }
  0xf4   : > { %6959 = vmatprep.subr.bf16.mxu0 %v8183_v62  ;;  %v9150_v32 = vpack.c.bf16 %v275_v4, %v274_v59 }
  0xf6   : > { %6928 = vmatmul.mubr.bf16.gmra.mrb[4].mxu0 %v10362_v46 }
  0xf7   : > { %6931 = vmatprep.mubr.bf16.mxu0 %v10363_v36  ;;  %6960 = vmatpush3.bf16.msra.mxu0 %v8183_v62  ;;  %v1839_v62 = vrot.slane %v274_v59, 2 }
  0xf8   : > { %6961 = vmatprep.subr.bf16.mxu0 %v8184_v19 }
  0xfb   : > { %6962 = vmatpush3.bf16.msra.mxu0 %v8184_v19  ;;  %v1840_v19 = vrot.slane %v275_v4, 2 }
  0xfc   : > { %6963 = vmatprep.subr.bf16.mxu0 %v8185_v44 }
  0xfe   : > { %6932 = vmatmul.mubr.bf16.gmra.mrb[8].mxu0 %v10364_v29 }
  0xff   : > { %6935 = vmatprep.mubr.bf16.mxu0 %v10365_v39  ;;  %6964 = vmatpush3.bf16.msra.mxu0 %v8185_v44  ;;  %v276_v44 = vld [vmem:[%s8357_s29 + $0x190] sm:$0x3] }
 0x100   : > { %6965 = vmatprep.subr.bf16.mxu0 %v8186_v13 }
 0x103   : > { %6966 = vmatpush3.bf16.msra.mxu0 %v8186_v13  ;;  %v1841_v13 = vsel %vm924_vm1, %v1839_v62, %v1840_v19  ;;  %v8191_v62 = vld [vmem:[%s10215_s1 + $0x150] sm:$0xff]  }
 0x104   : > { %6967 = vmatprep.subr.bf16.mxu0 %v8187_v12 }
 0x106   : > { %6936 = vmatmul.mubr.bf16.gmra.mrb[12].mxu0 %v10366_v54 }
 0x107   : > { %6939 = vmatprep.mubr.bf16.mxu0 %v10367_v27  ;;  %6968 = vmatpush3.bf16.msra.mxu0 %v8187_v12  ;;  %v1842_v12 = vrot.slane %v276_v44, 2 }
 0x108   : > { %6969 = vmatprep.subr.bf16.mxu0 %v8188_v15 }
 0x10b   : > { %6970 = vmatpush3.bf16.msra.mxu0 %v8188_v15  ;;  %v1843_v15 = vsel %vm924_vm1, %v1840_v19, %v1842_v12  ;;  %v8195_v19 = vld [vmem:[%s10215_s1 + $0x170] sm:$0xff]   ;;  %v8197_v12 = vld [vmem:[%s10215_s1 + $0x180] sm:$0xff]  }
 0x10c   : > { %7003 = vmatprep.subr.bf16.mxu0 %v8189_v49  ;;  %v9152_v33 = vpack.c.bf16 %v1843_v15, %v1841_v13  ;;  %v8196_v13 = vld [vmem:[%s10215_s1 + $0x178] sm:$0xff]   ;;  %v1573_v15 = vrot.slane %v274_v59, 1  ;;  %v8198_v59 = vld [vmem:[%s10215_s1 + $0x188] sm:$0xff]  }
 0x10e   : > { %6940 = vmatmul.mubr.bf16.gmra.mrb[16].mxu0 %v10368_v31 }
 0x10f   : > { %6943 = vmatprep.mubr.bf16.mxu0 %v10369_v9 }
 0x116   : > { %6944 = vmatmul.mubr.bf16.gmra.mrb[20].mxu0 %v10370_v50 }
 0x117   : > { %6947 = vmatprep.mubr.bf16.mxu0 %v10371_v2 }
 0x11e   : > { %6948 = vmatmul.mubr.bf16.gmra.mrb[24].mxu0 %v10372_v0 }
 0x11f   : > { %6951 = vmatprep.mubr.bf16.mxu0 %v10373_v47 }
 0x126   : > { %6952 = vmatmul.mubr.bf16.gmra.mrb[28].mxu0 %v9150_v32 }
 0x127   : > { %6971 = vmatprep.mubr.bf16.mxu0 %v10376_v26  ;;  %v8192_v26 = vld [vmem:[%s10215_s1 + $0x158] sm:$0xff]  }
 0x12e   : > { %6972 = vmatmul.mubr.bf16.vlgmr.msra.gmra.mrb[0].mxu0 %v10377_v8 }
 0x12f   : > { %7004 = vmatpush3.bf16.msra.mxu0 %v8189_v49  ;;  %6975 = vmatprep.mubr.bf16.mxu0 %v8647_v3  ;;  %v8193_v49 = vld [vmem:[%s10215_s1 + $0x160] sm:$0xff]  }
 0x130   : > { %7005 = vmatprep.subr.bf16.mxu0 %v8190_v51 }
 0x133   : > { %7006 = vmatpush3.bf16.msra.mxu0 %v8190_v51  ;;  %v8194_v51 = vld [vmem:[%s10215_s1 + $0x168] sm:$0xff]  }
 0x134   : > { %7007 = vmatprep.subr.bf16.mxu0 %v8191_v62 }
 0x136   : > { %6976 = vmatmul.mubr.bf16.gmra.mrb[4].mxu0 %v8662_v40 }
 0x137   : > { %6979 = vmatprep.mubr.bf16.mxu0 %v8726_v14  ;;  %7008 = vmatpush3.bf16.msra.mxu0 %v8191_v62  ;;  %v1574_v62 = vrot.slane %v275_v4, 1  ;;  %v8199_v4 = vld [vmem:[%s10215_s1 + $0x190] sm:$0xff]  }
 0x138   : > { %7009 = vmatprep.subr.bf16.mxu0 %v8192_v26 }
 0x13b   : > { %7010 = vmatpush3.bf16.msra.mxu0 %v8192_v26  ;;  %v1576_v26 = vrot.slane %v276_v44, 1  ;;  %v8201_v44 = vld [vmem:[%s10215_s1 + $0x1a0] sm:$0xff]  }
 0x13c   : > { %7011 = vmatprep.subr.bf16.mxu0 %v8193_v49 }
 0x13e   : > { %6980 = vmatmul.mubr.bf16.gmra.mrb[8].mxu0 %v8744_v57 }
 0x13f   : > { %6983 = vmatprep.mubr.bf16.mxu0 %v8817_v55  ;;  %7012 = vmatpush3.bf16.msra.mxu0 %v8193_v49  ;;  %v9195_v49 = vsel %vm360_vm0, %v1573_v15, %v1574_v62  ;;  %v8204_v15 = vld [vmem:[%s10215_s1 + $0x1b8] sm:$0xff]  }
 0x140   : > { %7013 = vmatprep.subr.bf16.mxu0 %v8194_v51  ;;  %10378 = vst [vmem:[#allocation3_spill] sm:$0xff] %v9195_v49 }
 0x143   : > { %7014 = vmatpush3.bf16.msra.mxu0 %v8194_v51  ;;  %v9198_v51 = vsel %vm360_vm0, %v1574_v62, %v1576_v26  ;;  %v8205_v62 = vld [vmem:[%s10215_s1 + $0x1c0] sm:$0xff]   ;;  %v8206_v26 = vld [vmem:[%s10215_s1 + $0x1c8] sm:$0xff]  }
 0x144   : > { %7015 = vmatprep.subr.bf16.mxu0 %v8195_v19  ;;  %10379 = vst [vmem:[#allocation4_spill] sm:$0xff] %v9198_v51 }
 0x146   : > { %6984 = vmatmul.mubr.bf16.gmra.mrb[12].mxu0 %v8827_v6 }
 0x147   : > { %6987 = vmatprep.mubr.bf16.mxu0 %v8884_v48  ;;  %7016 = vmatpush3.bf16.msra.mxu0 %v8195_v19  ;;  %v9202_v19 = vpack.c.bf16 %v9198_v51, %v9195_v49 }
 0x148   : > { %7017 = vmatprep.subr.bf16.mxu0 %v8196_v13 }
 0x14b   : > { %7018 = vmatpush3.bf16.msra.mxu0 %v8196_v13  ;;  %v8202_v13 = vld [vmem:[%s10215_s1 + $0x1a8] sm:$0xff]  }
 0x14c   : > { %7051 = vmatprep.subr.bf16.mxu0 %v8197_v12 }
 0x14e   : > { %6988 = vmatmul.mubr.bf16.gmra.mrb[16].mxu0 %v8890_v34 }
 0x14f   : > { %6991 = vmatprep.mubr.bf16.mxu0 %v8939_v58 }
 0x156   : > { %6992 = vmatmul.mubr.bf16.gmra.mrb[20].mxu0 %v8946_v28 }
 0x157   : > { %6995 = vmatprep.mubr.bf16.mxu0 %v8987_v16 }
 0x15e   : > { %6996 = vmatmul.mubr.bf16.gmra.mrb[24].mxu0 %v8993_v53 }
 0x15f   : > { %6999 = vmatprep.mubr.bf16.mxu0 %v9016_v45 }
 0x166   : > { %7000 = vmatmul.mubr.bf16.gmra.mrb[28].mxu0 %v9202_v19 }
 0x167   : > { %7019 = vmatprep.mubr.bf16.mxu0 %v10375_v5  ;;  %v8200_v5 = vld [vmem:[%s10215_s1 + $0x198] sm:$0xff]  }
 0x16e   : > { %7020 = vmatmul.mubr.bf16.vlgmr.msra.gmra.mrb[0].mxu0 %v8749_v11 }
 0x16f   : > { %7052 = vmatpush3.bf16.msra.mxu0 %v8197_v12  ;;  %7023 = vmatprep.mubr.bf16.mxu0 %v8757_v52  ;;  %v8203_v12 = vld [vmem:[%s10215_s1 + $0x1b0] sm:$0xff]  }
 0x170   : > { %7053 = vmatprep.subr.bf16.mxu0 %v8198_v59 }
 0x173   : > { %7054 = vmatpush3.bf16.msra.mxu0 %v8198_v59  ;;  %v8207_v59 = vld [vmem:[%s10215_s1 + $0x1d0] sm:$0xff]  }
 0x174   : > { %7055 = vmatprep.subr.bf16.mxu0 %v8199_v4 }
 0x176   : > { %7024 = vmatmul.mubr.bf16.gmra.mrb[4].mxu0 %v8789_v61 }
 0x177   : > { %7027 = vmatprep.mubr.bf16.mxu0 %v8798_v1  ;;  %7056 = vmatpush3.bf16.msra.mxu0 %v8199_v4 }
 0x178   : > { %7057 = vmatprep.subr.bf16.mxu0 %v8200_v5 }
 0x17b   : > { %7058 = vmatpush3.bf16.msra.mxu0 %v8200_v5  ;;  %v279_v5 = vld [vmem:[%s8357_s29 + $0x1a8] sm:$0x3] }
 0x17c   : > { %7059 = vmatprep.subr.bf16.mxu0 %v8201_v44 }
 0x17e   : > { %7028 = vmatmul.mubr.bf16.gmra.mrb[8].mxu0 %v8822_v21 }
 0x17f   : > { %7031 = vmatprep.mubr.bf16.mxu0 %v8829_v63  ;;  %7060 = vmatpush3.bf16.msra.mxu0 %v8201_v44 }
 0x180   : > { %7061 = vmatprep.subr.bf16.mxu0 %v8202_v13 }
 0x183   : > { %7062 = vmatpush3.bf16.msra.mxu0 %v8202_v13  ;;  %v8223_v13 = vld [vmem:[%s10217_s3 + $0x50] sm:$0xff]  }
 0x184   : > { %7063 = vmatprep.subr.bf16.mxu0 %v8203_v12 }
 0x186   : > { %7032 = vmatmul.mubr.bf16.gmra.mrb[12].mxu0 %v8878_v25 }
 0x187   : > { %7035 = vmatprep.mubr.bf16.mxu0 %v8886_v18  ;;  %7064 = vmatpush3.bf16.msra.mxu0 %v8203_v12  ;;  %v8214_v12 = vld [vmem:[%s10215_s1 + $0x208] sm:$0xff]  }
 0x188   : > { %7065 = vmatprep.subr.bf16.mxu0 %v8204_v15 }
 0x18b   : > { %7066 = vmatpush3.bf16.msra.mxu0 %v8204_v15  ;;  %v8216_v15 = vld [vmem:[%s10215_s1 + $0x218] sm:$0xff]  }
 0x18c   : > { %7099 = vmatprep.subr.bf16.mxu0 %v8205_v62 }
 0x18e   : > { %7036 = vmatmul.mubr.bf16.gmra.mrb[16].mxu0 %v8933_v37 }
 0x18f   : > { %7039 = vmatprep.mubr.bf16.mxu0 %v8942_v10 }
 0x196   : > { %7040 = vmatmul.mubr.bf16.gmra.mrb[20].mxu0 %v8981_v41 }
 0x197   : > { %7043 = vmatprep.mubr.bf16.mxu0 %v8989_v42 }
 0x19e   : > { %7044 = vmatmul.mubr.bf16.gmra.mrb[24].mxu0 %v9010_v7 }
 0x19f   : > { %7047 = vmatprep.mubr.bf16.mxu0 %v9018_v22 }
 0x1a6   : > { %7048 = vmatmul.mubr.bf16.gmra.mrb[28].mxu0 %v9152_v33 }
 0x1a7   : > { %7067 = vmatprep.mubr.bf16.mxu0 %v8399_v20  ;;  %v8208_v20 = vld [vmem:[%s10215_s1 + $0x1d8] sm:$0xff]  }
 0x1ae   : > { %7068 = vmatmul.mubr.bf16.vlgmr.msra.gmra.mrb[0].mxu0 %v8409_v23  ;;  %v8209_v23 = vld [vmem:[%s10215_s1 + $0x1e0] sm:$0xff]  }
 0x1af   : > { %7100 = vmatpush3.bf16.msra.mxu0 %v8205_v62  ;;  %7071 = vmatprep.mubr.bf16.mxu0 %v10362_v46  ;;  %v8210_v46 = vld [vmem:[%s10215_s1 + $0x1e8] sm:$0xff]   ;;  %v2370_v62 = vrot.slane %v279_v5, 1 }
 0x1b0   : > { %7101 = vmatprep.subr.bf16.mxu0 %v8206_v26 }
 0x1b3   : > { %7102 = vmatpush3.bf16.msra.mxu0 %v8206_v26 }
 0x1b4   : > { %7103 = vmatprep.subr.bf16.mxu0 %v8207_v59 }
 0x1b6   : > { %7072 = vmatmul.mubr.bf16.gmra.mrb[4].mxu0 %v10363_v36  ;;  %v8211_v36 = vld [vmem:[%s10215_s1 + $0x1f0] sm:$0xff]  }
 0x1b7   : > { %7075 = vmatprep.mubr.bf16.mxu0 %v10364_v29  ;;  %7104 = vmatpush3.bf16.msra.mxu0 %v8207_v59  ;;  %v8212_v29 = vld [vmem:[%s10215_s1 + $0x1f8] sm:$0xff]  }
 0x1b8   : > { %7105 = vmatprep.subr.bf16.mxu0 %v8208_v20 }
 0x1bb   : > { %7106 = vmatpush3.bf16.msra.mxu0 %v8208_v20 }
 0x1bc   : > { %7107 = vmatprep.subr.bf16.mxu0 %v8209_v23 }
 0x1be   : > { %7076 = vmatmul.mubr.bf16.gmra.mrb[8].mxu0 %v10365_v39  ;;  %v8213_v39 = vld [vmem:[%s10215_s1 + $0x200] sm:$0xff]  }
 0x1bf   : > { %7079 = vmatprep.mubr.bf16.mxu0 %v10366_v54  ;;  %7108 = vmatpush3.bf16.msra.mxu0 %v8209_v23  ;;  %v9283_v54 = vld [vmem:[%s8357_s29 + $0x198] sm:$0xff] }
 0x1c0   : > { %7109 = vmatprep.subr.bf16.mxu0 %v8210_v46 }
 0x1c3   : > { %7110 = vmatpush3.bf16.msra.mxu0 %v8210_v46 }
 0x1c4   : > { %7111 = vmatprep.subr.bf16.mxu0 %v8211_v36 }
 0x1c6   : > { %7080 = vmatmul.mubr.bf16.gmra.mrb[12].mxu0 %v10367_v27  ;;  %v9286_v27 = vld [vmem:[%s8357_s29 + $0x1a0] sm:$0xff] }
 0x1c7   : > { %7083 = vmatprep.mubr.bf16.mxu0 %v10368_v31  ;;  %7112 = vmatpush3.bf16.msra.mxu0 %v8211_v36  ;;  %v2633_v31 = vrot.slane %v9283_v54, 2  ;;  %v2634_v4 = vrot.slane %v9286_v27, 2 }
 0x1c8   : > { %7113 = vmatprep.subr.bf16.mxu0 %v8212_v29 }
 0x1cb   : > { %7114 = vmatpush3.bf16.msra.mxu0 %v8212_v29 }
 0x1cc   : > { %7147 = vmatprep.subr.bf16.mxu0 %v8213_v39 }
 0x1ce   : > { %7084 = vmatmul.mubr.bf16.gmra.mrb[16].mxu0 %v10369_v9  ;;  %v9294_v9 = vsel %vm924_vm1, %v2633_v31, %v2634_v4 }
 0x1cf   : > { %7087 = vmatprep.mubr.bf16.mxu0 %v10370_v50  ;;  %v2636_v50 = vrot.slane %v279_v5, 2 }
 0x1d6   : > { %7088 = vmatmul.mubr.bf16.gmra.mrb[20].mxu0 %v10371_v2  ;;  %v9297_v2 = vsel %vm924_vm1, %v2634_v4, %v2636_v50 }
 0x1d7   : > { %7091 = vmatprep.mubr.bf16.mxu0 %v10372_v0  ;;  %v2105_v0 = vpack.c.bf16 %v9286_v27, %v9283_v54  ;;  %v2640_v44 = vpack.c.bf16 %v9297_v2, %v9294_v9 }
 0x1de   : > { %7092 = vmatmul.mubr.bf16.gmra.mrb[24].mxu0 %v10373_v47  ;;  %v8221_v47 = vld [vmem:[%s10217_s3 + $0x40] sm:$0xff]  }
 0x1df   : > { %7095 = vmatprep.mubr.bf16.mxu0 %v9150_v32  ;;  %v8222_v32 = vld [vmem:[%s10217_s3 + $0x48] sm:$0xff]   ;;  %7195 = vmatprep.subr.bf16.mxu1 %v8221_v47 }
 0x1e0   : > { %7196 = vmatpush3.bf16.msra.mxu1 %v8221_v47 }
 0x1e1   : > { %7197 = vmatprep.subr.bf16.mxu1 %v8222_v32 }
 0x1e4   : > { %7198 = vmatpush3.bf16.msra.mxu1 %v8222_v32 }
 0x1e5   : > { %7199 = vmatprep.subr.bf16.mxu1 %v8223_v13 }
 0x1e6   : > { %7096 = vmatmul.mubr.bf16.gmra.mrb[28].mxu0 %v2105_v0 }
 0x1e7   : > { %7115 = vmatprep.mubr.bf16.mxu0 %v10377_v8  ;;  %v8215_v8 = vld [vmem:[%s10215_s1 + $0x210] sm:$0xff]  }
 0x1e8   : > { %7200 = vmatpush3.bf16.msra.mxu1 %v8223_v13 }
 0x1ee   : > { %7116 = vmatmul.mubr.bf16.vlgmr.msra.gmra.mrb[0].mxu0 %v8647_v3  ;;  %v8218_v3 = vld [vmem:[%s10215_s1 + $0x228] sm:$0xff]  }
 0x1ef   : > { %7148 = vmatpush3.bf16.msra.mxu0 %v8213_v39  ;;  %7119 = vmatprep.mubr.bf16.mxu0 %v8662_v40  ;;  %v8217_v40 = vld [vmem:[%s10215_s1 + $0x220] sm:$0xff]  }
 0x1f0   : > { %7149 = vmatprep.subr.bf16.mxu0 %v8214_v12 }
 0x1f3   : > { %7150 = vmatpush3.bf16.msra.mxu0 %v8214_v12 }
 0x1f4   : > { %7151 = vmatprep.subr.bf16.mxu0 %v8215_v8 }
 0x1f6   : > { %7120 = vmatmul.mubr.bf16.gmra.mrb[4].mxu0 %v8726_v14  ;;  %v8219_v14 = vld [vmem:[%s10215_s1 + $0x230] sm:$0xff]  }
 0x1f7   : > { %7123 = vmatprep.mubr.bf16.mxu0 %v8744_v57  ;;  %7152 = vmatpush3.bf16.msra.mxu0 %v8215_v8  ;;  %v8220_v57 = vld [vmem:[%s10215_s1 + $0x238] sm:$0xff]  }
 0x1f8   : > { %7153 = vmatprep.subr.bf16.mxu0 %v8216_v15 }
 0x1fb   : > { %7154 = vmatpush3.bf16.msra.mxu0 %v8216_v15 }
 0x1fc   : > { %7155 = vmatprep.subr.bf16.mxu0 %v8217_v40 }
 0x1fe   : > { %7124 = vmatmul.mubr.bf16.gmra.mrb[8].mxu0 %v8817_v55  ;;  %v2367_v55 = vrot.slane %v9283_v54, 1 }
 0x1ff   : > { %7127 = vmatprep.mubr.bf16.mxu0 %v8827_v6  ;;  %7156 = vmatpush3.bf16.msra.mxu0 %v8217_v40  ;;  %v2368_v6 = vrot.slane %v9286_v27, 1 }
 0x200   : > { %7157 = vmatprep.subr.bf16.mxu0 %v8218_v3 }
 0x203   : > { %7158 = vmatpush3.bf16.msra.mxu0 %v8218_v3 }
 0x204   : > { %7159 = vmatprep.subr.bf16.mxu0 %v8219_v14 }
 0x206   : > { %7128 = vmatmul.mubr.bf16.gmra.mrb[12].mxu0 %v8884_v48  ;;  %v2369_v48 = vsel %vm360_vm0, %v2367_v55, %v2368_v6 }
 0x207   : > { %7131 = vmatprep.mubr.bf16.mxu0 %v8890_v34  ;;  %7160 = vmatpush3.bf16.msra.mxu0 %v8219_v14  ;;  %v2371_v34 = vsel %vm360_vm0, %v2368_v6, %v2370_v62 }
 0x208   : > { %7161 = vmatprep.subr.bf16.mxu0 %v8220_v57 }
 0x20b   : > { %7162 = vmatpush3.bf16.msra.mxu0 %v8220_v57 }
 0x20e   : > { %7132 = vmatmul.mubr.bf16.gmra.mrb[16].mxu0 %v8939_v58  ;;  %v2374_v58 = vpack.c.bf16 %v2371_v34, %v2369_v48 }
 0x20f   : > { %7135 = vmatprep.mubr.bf16.mxu0 %v8946_v28  ;;  %v9398_v28 = vld [vmem:[%s10216_s2] ss:$0 sm:$0xff] }
 0x216   : > { %7136 = vmatmul.mubr.bf16.gmra.mrb[20].mxu0 %v8987_v16 }
 0x217   : > { %7139 = vmatprep.mubr.bf16.mxu0 %v8993_v53 }
 0x21e   : > { %7140 = vmatmul.mubr.bf16.gmra.mrb[24].mxu0 %v9016_v45 }
 0x21f   : > { %7143 = vmatprep.mubr.bf16.mxu0 %v9202_v19 }
 0x226   : > { %7144 = vmatmul.mubr.bf16.gmra.mrb[28].mxu0 %v2374_v58 }
 0x227   : > { %7163 = vmatprep.mubr.bf16.mxu0 %v8749_v11  ;;  %v8224_v11 = vld [vmem:[%s10217_s3 + $0x58] sm:$0xff]  }
 0x228   : > { %7201 = vmatprep.subr.bf16.mxu1 %v8224_v11 }
 0x229   : > { %7202 = vmatpush3.bf16.msra.mxu1 %v8224_v11 }
 0x22e   : > { %7164 = vmatmul.mubr.bf16.vlgmr.msra.gmra.mrb[0].mxu0 %v8757_v52  ;;  %v8225_v52 = vld [vmem:[%s10217_s3 + $0x60] sm:$0xff]  }
 0x22f   : > { %7167 = vmatprep.mubr.bf16.mxu0 %v8789_v61  ;;  %7203 = vmatprep.subr.bf16.mxu1 %v8225_v52  ;;  %v8226_v61 = vld [vmem:[%s10217_s3 + $0x68] sm:$0xff]  }
 0x230   : > { %7204 = vmatpush3.bf16.msra.mxu1 %v8225_v52 }
 0x231   : > { %7205 = vmatprep.subr.bf16.mxu1 %v8226_v61 }
 0x234   : > { %7206 = vmatpush3.bf16.msra.mxu1 %v8226_v61 }
 0x236   : > { %7168 = vmatmul.mubr.bf16.gmra.mrb[4].mxu0 %v8798_v1  ;;  %v8227_v1 = vld [vmem:[%s10217_s3 + $0x70] sm:$0xff]  }
 0x237   : > { %7171 = vmatprep.mubr.bf16.mxu0 %v8822_v21  ;;  %7207 = vmatprep.subr.bf16.mxu1 %v8227_v1 }
 0x238   : > { %7208 = vmatpush3.bf16.msra.mxu1 %v8227_v1 }
 0x23e   : > { %7172 = vmatmul.mubr.bf16.gmra.mrb[8].mxu0 %v8829_v63  ;;  %v8228_v63 = vld [vmem:[%s10217_s3 + $0x78] sm:$0xff]  }
 0x23f   : > { %7175 = vmatprep.mubr.bf16.mxu0 %v8878_v25  ;;  %7209 = vmatprep.subr.bf16.mxu1 %v8228_v63 }
 0x240   : > { %7210 = vmatpush3.bf16.msra.mxu1 %v8228_v63 }
 0x246   : > { %7176 = vmatmul.mubr.bf16.gmra.mrb[12].mxu0 %v8886_v18  ;;  %v8302_v18 = vmov 0.0  }
 0x247   : > { %7179 = vmatprep.mubr.bf16.mxu0 %v8933_v37  ;;  %2976 = vst [vmem:[#allocation2 + $0x30] sm:$0xff] %v8302_v18  ;;  %2977 = vst [vmem:[#allocation2 + $0x38] sm:$0xff] %v8302_v18 }
 0x248   : > { %2970 = vst [vmem:[#allocation2] sm:$0xff] %v8302_v18  ;;  %2972 = vst [vmem:[#allocation2 + $0x10] sm:$0x3] %v8302_v18 }
 0x249   : > { %2973 = vst [vmem:[#allocation2 + $0x18] sm:$0xff] %v8302_v18  ;;  %2974 = vst [vmem:[#allocation2 + $0x20] sm:$0xff] %v8302_v18 }
 0x24a   : > { %2975 = vst [vmem:[#allocation2 + $0x28] sm:$0x3] %v8302_v18  ;;  %2978 = vst [vmem:[#allocation2 + $0x40] sm:$0x3] %v8302_v18 }
 0x24b   : > { %2979 = vst [vmem:[#allocation2 + $0x48] sm:$0xff] %v8302_v18  ;;  %2980 = vst [vmem:[#allocation2 + $0x50] sm:$0xff] %v8302_v18 }
 0x24c   : > { %2981 = vst [vmem:[#allocation2 + $0x58] sm:$0x3] %v8302_v18  ;;  %2982 = vst [vmem:[#allocation2 + $0x60] sm:$0xff] %v8302_v18 }
 0x24d   : > { %2983 = vst [vmem:[#allocation2 + $0x68] sm:$0xff] %v8302_v18  ;;  %2984 = vst [vmem:[#allocation2 + $0x70] sm:$0x3] %v8302_v18 }
 0x24e   : > { %7180 = vmatmul.mubr.bf16.gmra.mrb[16].mxu0 %v8942_v10  ;;  %2985 = vst [vmem:[#allocation2 + $0x78] sm:$0xff] %v8302_v18  ;;  %2986 = vst [vmem:[#allocation2 + $0x80] sm:$0xff] %v8302_v18 }
 0x24f   : > { %7183 = vmatprep.mubr.bf16.mxu0 %v8981_v41  ;;  %2987 = vst [vmem:[#allocation2 + $0x88] sm:$0x3] %v8302_v18  ;;  %2988 = vst [vmem:[#allocation2 + $0x90] sm:$0xff] %v8302_v18  ;;  %v9382_v21 = vld [vmem:[#allocation2 + $0x10] sm:$0x3]  ;;  %v3191_v41 = vrot.slane %v8302_v18, 1 }
 0x250   : > { %2989 = vst [vmem:[#allocation2 + $0x98] sm:$0xff] %v8302_v18  ;;  %2990 = vst [vmem:[#allocation2 + $0xa0] sm:$0x3] %v8302_v18  ;;  %v3194_v10 = vrot.slane %v9382_v21, 1 }
 0x251   : > { %2991 = vst [vmem:[#allocation2 + $0xa8] sm:$0xff] %v8302_v18  ;;  %2992 = vst [vmem:[#allocation2 + $0xb0] sm:$0xff] %v8302_v18 }
 0x252   : > { %2993 = vst [vmem:[#allocation2 + $0xb8] sm:$0x3] %v8302_v18  ;;  %2994 = vst [vmem:[#allocation2 + $0xc0] sm:$0xff] %v8302_v18  ;;  %v3195_v37 = vsel %vm360_vm0, %v3191_v41, %v3194_v10 }
 0x253   : > { %2995 = vst [vmem:[#allocation2 + $0xc8] sm:$0xff] %v8302_v18  ;;  %2996 = vst [vmem:[#allocation2 + $0xd0] sm:$0x3] %v8302_v18  ;;  %v3303_v25 = vpack.c.bf16 %v3195_v37, %v3191_v41 }
 0x254   : > { %2997 = vst [vmem:[#allocation2 + $0xd8] sm:$0xff] %v8302_v18  ;;  %2998 = vst [vmem:[#allocation2 + $0xe0] sm:$0xff] %v8302_v18 }
 0x255   : > { %2999 = vst [vmem:[#allocation2 + $0xe8] sm:$0x3] %v8302_v18  ;;  %3000 = vst [vmem:[#allocation2 + $0xf0] sm:$0xff] %v8302_v18  ;;  %7211 = vmatprep.mubr.bf16.mxu1 %v3303_v25 }
 0x256   : > { %7184 = vmatmul.mubr.bf16.gmra.mrb[20].mxu0 %v8989_v42  ;;  %3001 = vst [vmem:[#allocation2 + $0xf8] sm:$0xff] %v8302_v18  ;;  %3002 = vst [vmem:[#allocation2 + $0x100] sm:$0x3] %v8302_v18  ;;  %v9392_v42 = vld [vmem:[%s10217_s3] sm:$0xff]  }
 0x257   : > { %7187 = vmatprep.mubr.bf16.mxu0 %v9010_v7  ;;  %3003 = vst [vmem:[#allocation2 + $0x108] sm:$0xff] %v8302_v18  ;;  %3004 = vst [vmem:[#allocation2 + $0x110] sm:$0xff] %v8302_v18  ;;  %7243 = vmatprep.subr.bf16.mxu1 %v9392_v42 }
 0x258   : > { %3005 = vst [vmem:[#allocation2 + $0x118] sm:$0x3] %v8302_v18  ;;  %3006 = vst [vmem:[#allocation2 + $0x120] sm:$0xff] %v8302_v18 }
 0x259   : > { %3007 = vst [vmem:[#allocation2 + $0x128] sm:$0xff] %v8302_v18  ;;  %3008 = vst [vmem:[#allocation2 + $0x130] sm:$0x3] %v8302_v18 }
 0x25a   : > { %3009 = vst [vmem:[#allocation2 + $0x138] sm:$0xff] %v8302_v18  ;;  %3010 = vst [vmem:[#allocation2 + $0x140] sm:$0xff] %v8302_v18 }
 0x25b   : > { %3011 = vst [vmem:[#allocation2 + $0x148] sm:$0x3] %v8302_v18  ;;  %3012 = vst [vmem:[#allocation2 + $0x150] sm:$0xff] %v8302_v18 }
 0x25c   : > { %3013 = vst [vmem:[#allocation2 + $0x158] sm:$0xff] %v8302_v18  ;;  %3014 = vst [vmem:[#allocation2 + $0x160] sm:$0x3] %v8302_v18 }
 0x25d   : > { %3015 = vst [vmem:[#allocation2 + $0x168] sm:$0xff] %v8302_v18  ;;  %3016 = vst [vmem:[#allocation2 + $0x170] sm:$0xff] %v8302_v18 }
 0x25e   : > { %7188 = vmatmul.mubr.bf16.gmra.mrb[24].mxu0 %v9018_v22  ;;  %3017 = vst [vmem:[#allocation2 + $0x178] sm:$0x3] %v8302_v18  ;;  %3018 = vst [vmem:[#allocation2 + $0x180] sm:$0xff] %v8302_v18 }
 0x25f   : > { %7191 = vmatprep.mubr.bf16.mxu0 %v9152_v33  ;;  %3019 = vst [vmem:[#allocation2 + $0x188] sm:$0xff] %v8302_v18  ;;  %3020 = vst [vmem:[#allocation2 + $0x190] sm:$0x3] %v8302_v18 }
 0x260   : > { %3023 = vst [vmem:[#allocation2 + $0x1a8] sm:$0x3] %v8302_v18 }
 0x266   : > { %7192 = vmatmul.mubr.bf16.gmra.mrb[28].mxu0 %v2640_v44 }
 0x301   : > { %v7165_v16 = vpop.f32.mrb[0].mxu0 }
 0x302   : > { %v2908_v53 = vadd.f32 %v7165_v16, %v9398_v28  ;;  %v2740_v33 = vpop.f32.mrb[1].mxu0 }
 0x303   : > { %v2906_v7 = vadd.f32 %v9398_v28, %v2740_v33  ;;  %v7166_v45 = vpop.f32.mrb[2].mxu0 }
 0x304   : > { %v2940_v22 = vmax.f32 %v2908_v53, 0.0  ;;  %v2909_v19 = vadd.f32 %v7166_v45, %v9398_v28  ;;  %v2743_v26 = vpop.f32.mrb[3].mxu0 }
 0x305   : > { %v2938_v59 = vmax.f32 %v2906_v7, 0.0  ;;  %v2907_v20 = vadd.f32 %v9398_v28, %v2743_v26  ;;  %v8230_v7 = vld [vmem:[%s10217_s3 + $0x8] sm:$0xff]  }
 0x306   : > { %3027 = vst [vmem:[#allocation2 + $0x31] sm:$0xff] %v2940_v22  ;;  %v2941_v23 = vmax.f32 %v2909_v19, 0.0 }
 0x307   : > { %3025 = vst [vmem:[#allocation2 + $0x19] sm:$0xff] %v2938_v59  ;;  %v2939_v46 = vmax.f32 %v2907_v20, 0.0 }
 0x308   : > { %3028 = vst [vmem:[#allocation2 + $0x39] sm:$0xff] %v2941_v23 }
 0x309   : > { %3026 = vst [vmem:[#allocation2 + $0x21] sm:$0xff] %v2939_v46  ;;  %v7169_v36 = vpop.f32.mrb[4].mxu0 }
 0x30a   : > { %v2912_v29 = vadd.f32 %v7169_v36, %v9398_v28  ;;  %v2756_v39 = vpop.f32.mrb[5].mxu0 }
 0x30b   : > { %v2910_v54 = vadd.f32 %v9398_v28, %v2756_v39  ;;  %v7170_v27 = vpop.f32.mrb[6].mxu0 }
 0x30c   : > { %v2944_v31 = vmax.f32 %v2912_v29, 0.0  ;;  %v2913_v4 = vadd.f32 %v7170_v27, %v9398_v28  ;;  %v2759_v5 = vpop.f32.mrb[7].mxu0 }
 0x30d   : > { %v2942_v9 = vmax.f32 %v2910_v54, 0.0  ;;  %v2911_v50 = vadd.f32 %v9398_v28, %v2759_v5  ;;  %v9408_v2 = vld [vmem:[#allocation2 + $0x30] sm:$0xff] }
 0x30e   : > { %3031 = vst [vmem:[#allocation2 + $0x61] sm:$0xff] %v2944_v31  ;;  %v2945_v0 = vmax.f32 %v2913_v4, 0.0  ;;  %v3060_v44 = vld [vmem:[#allocation2 + $0x18] sm:$0xff]  ;;  %v3201_v12 = vrot.slane %v9408_v2, 1  ;;  %v3764_v45 = vrot.slane %v9408_v2, 2 }
 0x30f   : > { %3029 = vst [vmem:[#allocation2 + $0x49] sm:$0xff] %v2942_v9  ;;  %v2943_v47 = vmax.f32 %v2911_v50, 0.0  ;;  %v9410_v32 = vld [vmem:[#allocation2 + $0x38] sm:$0xff]  ;;  %v9412_v13 = vld [vmem:[#allocation2 + $0x40] sm:$0x3]  ;;  %v3196_v40 = vrot.slane %v3060_v44, 1 }
 0x310   : > { %3032 = vst [vmem:[#allocation2 + $0x69] sm:$0xff] %v2945_v0  ;;  %v3061_v8 = vld [vmem:[#allocation2 + $0x20] sm:$0xff]  ;;  %v3062_v15 = vld [vmem:[#allocation2 + $0x28] sm:$0x3]  ;;  %v3202_v3 = vrot.slane %v9410_v32, 1  ;;  %v3204_v14 = vrot.slane %v9412_v13, 1  ;;  %v9419_v57 = vpack.c.bf16 %v9410_v32, %v9408_v2 }
 0x311   : > { %3030 = vst [vmem:[#allocation2 + $0x51] sm:$0xff] %v2943_v47  ;;  %v7173_v55 = vpop.f32.mrb[8].mxu0  ;;  %v3197_v6 = vrot.slane %v3061_v8, 1  ;;  %v3199_v62 = vrot.slane %v3062_v15, 1  ;;  %v3760_v48 = vrot.slane %v3061_v8, 2  ;;  %v3762_v34 = vrot.slane %v3062_v15, 2 }
 0x312   : > { %v2916_v58 = vadd.f32 %v7173_v55, %v9398_v28  ;;  %v2772_v11 = vpop.f32.mrb[9].mxu0  ;;  %v3203_v52 = vsel %vm360_vm0, %v3201_v12, %v3202_v3  ;;  %v3205_v18 = vsel %vm360_vm0, %v3202_v3, %v3204_v14  ;;  %v9424_v61 = vpack.c.bf16 %v3061_v8, %v3060_v44 }
 0x313   : > { %v2914_v1 = vadd.f32 %v9398_v28, %v2772_v11  ;;  %v7174_v63 = vpop.f32.mrb[10].mxu0  ;;  %v3198_v41 = vsel %vm360_vm0, %v3196_v40, %v3197_v6  ;;  %v3200_v10 = vsel %vm360_vm0, %v3197_v6, %v3199_v62  ;;  %v3759_v37 = vrot.slane %v3060_v44, 2 }
 0x314   : > { %v2948_v25 = vmax.f32 %v2916_v58, 0.0  ;;  %v2917_v16 = vadd.f32 %v7174_v63, %v9398_v28  ;;  %v2775_v53 = vpop.f32.mrb[11].mxu0  ;;  %v9430_v33 = vpack.c.bf16 %v3200_v10, %v3198_v41  ;;  %v9437_v26 = vpack.c.bf16 %v3205_v18, %v3203_v52  ;;  %v8232_v10 = vld [vmem:[%s10217_s3 + $0x18] sm:$0xff]  }
 0x315   : > { %v2946_v22 = vmax.f32 %v2914_v1, 0.0  ;;  %v2915_v19 = vadd.f32 %v9398_v28, %v2775_v53  ;;  %v9439_v59 = vld [vmem:[#allocation2 + $0x60] sm:$0xff]  ;;  %v3761_v20 = vsel %vm924_vm1, %v3759_v37, %v3760_v48  ;;  %v3763_v29 = vsel %vm924_vm1, %v3760_v48, %v3762_v34 }
 0x316   : > { %3035 = vst [vmem:[#allocation2 + $0x91] sm:$0xff] %v2948_v25  ;;  %v2949_v23 = vmax.f32 %v2917_v16, 0.0  ;;  %7212 = vmatmul.mubr.bf16.vlgmr.msra.gmra.mrb[0].mxu1 %v9430_v33  ;;  %v9443_v46 = vld [vmem:[#allocation2 + $0x48] sm:$0xff]  ;;  %v3211_v36 = vrot.slane %v9439_v59, 1  ;;  %v3765_v39 = vrot.slane %v9410_v32, 2  ;;  %v9455_v5 = vpack.c.bf16 %v3763_v29, %v3761_v20 }
 0x317   : > { %3033 = vst [vmem:[#allocation2 + $0x79] sm:$0xff] %v2946_v22  ;;  %v2947_v54 = vmax.f32 %v2915_v19, 0.0  ;;  %7215 = vmatprep.mubr.bf16.mxu1 %v9437_v26  ;;  %7244 = vmatpush3.bf16.msra.mxu1 %v9392_v42  ;;  %v3206_v27 = vrot.slane %v9443_v46, 1  ;;  %v9451_v31 = vld [vmem:[#allocation2 + $0x68] sm:$0xff]  ;;  %v9453_v4 = vld [vmem:[#allocation2 + $0x70] sm:$0x3] }
 0x318   : > { %v3767_v9 = vrot.slane %v9412_v13, 2  ;;  %3036 = vst [vmem:[#allocation2 + $0x99] sm:$0xff] %v2949_v23  ;;  %v3067_v50 = vld [vmem:[#allocation2 + $0x50] sm:$0xff]  ;;  %v3068_v2 = vld [vmem:[#allocation2 + $0x58] sm:$0x3]  ;;  %7245 = vmatprep.subr.bf16.mxu1 %v8230_v7  ;;  %v3212_v0 = vrot.slane %v9451_v31, 1  ;;  %v9465_v47 = vpack.c.bf16 %v9451_v31, %v9439_v59  ;;  %v3766_v32 = vsel %vm924_vm1, %v3764_v45, %v3765_v39 }
 0x319   : > { %v3214_v44 = vrot.slane %v9453_v4, 1  ;;  %v8231_v42 = vld [vmem:[%s10217_s3 + $0x10] sm:$0xff]   ;;  %3034 = vst [vmem:[#allocation2 + $0x81] sm:$0xff] %v2947_v54  ;;  %v7177_v13 = vpop.f32.mrb[12].mxu0  ;;  %v3207_v12 = vrot.slane %v3067_v50, 1  ;;  %v3209_v8 = vrot.slane %v3068_v2, 1  ;;  %v9469_v15 = vpack.c.bf16 %v3067_v50, %v9443_v46 }
 0x31a   : > { %v3768_v40 = vsel %vm924_vm1, %v3765_v39, %v3767_v9  ;;  %v2920_v3 = vadd.f32 %v7177_v13, %v9398_v28  ;;  %v2788_v14 = vpop.f32.mrb[13].mxu0  ;;  %v3213_v55 = vsel %vm360_vm0, %v3211_v36, %v3212_v0  ;;  %v3769_v37 = vrot.slane %v9443_v46, 2 }
 0x31b   : > { %v3215_v6 = vsel %vm360_vm0, %v3212_v0, %v3214_v44  ;;  %v9475_v62 = vpack.c.bf16 %v3768_v40, %v3766_v32  ;;  %v2918_v48 = vadd.f32 %v9398_v28, %v2788_v14  ;;  %v7178_v34 = vpop.f32.mrb[14].mxu0  ;;  %v3208_v58 = vsel %vm360_vm0, %v3206_v27, %v3207_v12  ;;  %7246 = vmatpush3.bf16.msra.mxu1 %v8230_v7  ;;  %v8233_v0 = vld [vmem:[%s10217_s3 + $0x20] sm:$0xff]  }
 0x31c   : > { %v3210_v11 = vsel %vm360_vm0, %v3207_v12, %v3209_v8  ;;  %v9480_v52 = vpack.c.bf16 %v3215_v6, %v3213_v55  ;;  %v2952_v18 = vmax.f32 %v2920_v3, 0.0  ;;  %v2921_v1 = vadd.f32 %v7178_v34, %v9398_v28  ;;  %v2791_v63 = vpop.f32.mrb[15].mxu0  ;;  %7247 = vmatprep.subr.bf16.mxu1 %v8231_v42 }
 0x31d   : > { %v9483_v41 = vpack.c.bf16 %v3210_v11, %v3208_v58  ;;  %v2950_v25 = vmax.f32 %v2918_v48, 0.0  ;;  %v2919_v16 = vadd.f32 %v9398_v28, %v2791_v63  ;;  %v9490_v53 = vld [vmem:[#allocation2 + $0x90] sm:$0xff]  ;;  %v3770_v45 = vrot.slane %v3067_v50, 2 }
 0x31e   : > { %v3772_v7 = vrot.slane %v3068_v2, 2  ;;  %3039 = vst [vmem:[#allocation2 + $0xc1] sm:$0xff] %v2952_v18  ;;  %v2953_v22 = vmax.f32 %v2921_v1, 0.0  ;;  %v9493_v19 = vld [vmem:[#allocation2 + $0x78] sm:$0xff]  ;;  %v3221_v20 = vrot.slane %v9490_v53, 1  ;;  %v3774_v23 = vrot.slane %v9439_v59, 2 }
 0x31f   : > { %7216 = vmatmul.mubr.bf16.gmra.mrb[4].mxu1 %v9483_v41  ;;  %v3775_v36 = vrot.slane %v9451_v31, 2  ;;  %3037 = vst [vmem:[#allocation2 + $0xa9] sm:$0xff] %v2950_v25  ;;  %v2951_v46 = vmax.f32 %v2919_v16, 0.0  ;;  %v3216_v29 = vrot.slane %v9493_v19, 1  ;;  %v9500_v39 = vld [vmem:[#allocation2 + $0x98] sm:$0xff]  ;;  %v3771_v27 = vsel %vm924_vm1, %v3769_v37, %v3770_v45 }
 0x320   : > { %7219 = vmatprep.mubr.bf16.mxu1 %v9480_v52  ;;  %v9502_v54 = vld [vmem:[#allocation2 + $0xa0] sm:$0x3]  ;;  %7248 = vmatpush3.bf16.msra.mxu1 %v8231_v42  ;;  %v3773_v9 = vsel %vm924_vm1, %v3770_v45, %v3772_v7  ;;  %3040 = vst [vmem:[#allocation2 + $0xc9] sm:$0xff] %v2953_v22  ;;  %v9508_v59 = vld [vmem:[#allocation2 + $0x88] sm:$0x3]  ;;  %v3222_v31 = vrot.slane %v9500_v39, 1  ;;  %v9517_v44 = vpack.c.bf16 %v9500_v39, %v9490_v53 }
 0x321   : > { %v9506_v50 = vld [vmem:[#allocation2 + $0x80] sm:$0xff]  ;;  %v3224_v2 = vrot.slane %v9502_v54, 1  ;;  %7249 = vmatprep.subr.bf16.mxu1 %v8232_v10  ;;  %v9519_v42 = vpack.c.bf16 %v3773_v9, %v3771_v27  ;;  %3038 = vst [vmem:[#allocation2 + $0xb1] sm:$0xff] %v2951_v46  ;;  %v7181_v32 = vpop.f32.mrb[16].mxu0  ;;  %v3219_v12 = vrot.slane %v9508_v59, 1  ;;  %v3776_v40 = vsel %vm924_vm1, %v3774_v23, %v3775_v36 }
 0x322   : > { %v3217_v13 = vrot.slane %v9506_v50, 1  ;;  %v9525_v8 = vpack.c.bf16 %v9506_v50, %v9493_v19  ;;  %v2924_v3 = vadd.f32 %v7181_v32, %v9398_v28  ;;  %v2804_v14 = vpop.f32.mrb[17].mxu0  ;;  %v3223_v55 = vsel %vm360_vm0, %v3221_v20, %v3222_v31 }
 0x323   : > { %v3225_v6 = vsel %vm360_vm0, %v3222_v31, %v3224_v2  ;;  %v3777_v48 = vrot.slane %v9453_v4, 2  ;;  %v2922_v34 = vadd.f32 %v9398_v28, %v2804_v14  ;;  %v7182_v58 = vpop.f32.mrb[18].mxu0  ;;  %v8234_v4 = vld [vmem:[%s10217_s3 + $0x28] sm:$0xff]   ;;  %v3780_v9 = vrot.slane %v9506_v50, 2 }
 0x324   : > { %v3218_v11 = vsel %vm360_vm0, %v3216_v29, %v3217_v13  ;;  %v3220_v18 = vsel %vm360_vm0, %v3217_v13, %v3219_v12  ;;  %v9535_v1 = vpack.c.bf16 %v3225_v6, %v3223_v55  ;;  %7250 = vmatpush3.bf16.msra.mxu1 %v8232_v10  ;;  %v2956_v63 = vmax.f32 %v2924_v3, 0.0  ;;  %v2807_v25 = vpop.f32.mrb[19].mxu0  ;;  %v8235_v3 = vld [vmem:[%s10217_s3 + $0x30] sm:$0xff]  }
 0x325   : > { %v2925_v37 = vadd.f32 %v7182_v58, %v9398_v28  ;;  %v9538_v16 = vpack.c.bf16 %v3220_v18, %v3218_v11  ;;  %7251 = vmatprep.subr.bf16.mxu1 %v8233_v0  ;;  %v3778_v45 = vsel %vm924_vm1, %v3775_v36, %v3777_v48  ;;  %v2954_v7 = vmax.f32 %v2922_v34, 0.0  ;;  %v9545_v20 = vld [vmem:[#allocation2 + $0xc0] sm:$0xff] }
 0x326   : > { %v2923_v22 = vadd.f32 %v9398_v28, %v2807_v25  ;;  %v9547_v23 = vpack.c.bf16 %v3778_v45, %v3776_v40  ;;  %v3779_v10 = vrot.slane %v9493_v19, 2  ;;  %3043 = vst [vmem:[#allocation2 + $0xf1] sm:$0xff] %v2956_v63  ;;  %v9551_v29 = vld [vmem:[#allocation2 + $0xa8] sm:$0xff]  ;;  %v3231_v27 = vrot.slane %v9545_v20, 1 }
 0x327   : > { %v2957_v46 = vmax.f32 %v2925_v37, 0.0  ;;  %7220 = vmatmul.mubr.bf16.gmra.mrb[8].mxu1 %v9538_v16  ;;  %v3782_v36 = vrot.slane %v9508_v59, 2  ;;  %3041 = vst [vmem:[#allocation2 + $0xd9] sm:$0xff] %v2954_v7  ;;  %v3226_v2 = vrot.slane %v9551_v29, 1  ;;  %v9558_v32 = vld [vmem:[#allocation2 + $0xc8] sm:$0xff]  ;;  %v3784_v13 = vrot.slane %v9490_v53, 2 }
 0x328   : > { %v2955_v31 = vmax.f32 %v2923_v22, 0.0  ;;  %7223 = vmatprep.mubr.bf16.mxu1 %v9535_v1  ;;  %v9560_v19 = vld [vmem:[#allocation2 + $0xd0] sm:$0x3]  ;;  %7252 = vmatpush3.bf16.msra.mxu1 %v8233_v0  ;;  %v9565_v40 = vld [vmem:[#allocation2 + $0xb8] sm:$0x3]  ;;  %v3232_v50 = vrot.slane %v9558_v32, 1  ;;  %v9574_v14 = vpack.c.bf16 %v9558_v32, %v9545_v20  ;;  %v3781_v53 = vsel %vm924_vm1, %v3779_v10, %v3780_v9 }
 0x329   : > { %3044 = vst [vmem:[#allocation2 + $0xf9] sm:$0xff] %v2957_v46  ;;  %v9563_v12 = vld [vmem:[#allocation2 + $0xb0] sm:$0xff]  ;;  %v3234_v59 = vrot.slane %v9560_v19, 1  ;;  %7253 = vmatprep.subr.bf16.mxu1 %v8234_v4  ;;  %v7185_v0 = vpop.f32.mrb[20].mxu0  ;;  %v3229_v6 = vrot.slane %v9565_v40, 1  ;;  %v3783_v34 = vsel %vm924_vm1, %v3780_v9, %v3782_v36 }
 0x32a   : > { %3042 = vst [vmem:[#allocation2 + $0xe1] sm:$0xff] %v2955_v31  ;;  %v3227_v55 = vrot.slane %v9563_v12, 1  ;;  %v9581_v48 = vpack.c.bf16 %v9563_v12, %v9551_v29  ;;  %v2928_v58 = vadd.f32 %v7185_v0, %v9398_v28  ;;  %v2820_v11 = vpop.f32.mrb[21].mxu0  ;;  %v3233_v18 = vsel %vm360_vm0, %v3231_v27, %v3232_v50  ;;  %v8236_v27 = vld [vmem:[%s10217_s3 + $0x38] sm:$0xff]  }
 0x32b   : > { %v3235_v63 = vsel %vm360_vm0, %v3232_v50, %v3234_v59  ;;  %v9587_v37 = vpack.c.bf16 %v3783_v34, %v3781_v53  ;;  %v2926_v25 = vadd.f32 %v9398_v28, %v2820_v11  ;;  %v7186_v45 = vpop.f32.mrb[22].mxu0  ;;  %v3785_v50 = vrot.slane %v9500_v39, 2 }
 0x32c   : > { %v3228_v7 = vsel %vm360_vm0, %v3226_v2, %v3227_v55  ;;  %v3230_v22 = vsel %vm360_vm0, %v3227_v55, %v3229_v6  ;;  %v9592_v10 = vpack.c.bf16 %v3235_v63, %v3233_v18  ;;  %7254 = vmatpush3.bf16.msra.mxu1 %v8234_v4  ;;  %v2960_v46 = vmax.f32 %v2928_v58, 0.0  ;;  %v2823_v36 = vpop.f32.mrb[23].mxu0 }
 0x32d   : > { %v2929_v9 = vadd.f32 %v7186_v45, %v9398_v28  ;;  %v9595_v31 = vpack.c.bf16 %v3230_v22, %v3228_v7  ;;  %7255 = vmatprep.subr.bf16.mxu1 %v8235_v3  ;;  %v2958_v59 = vmax.f32 %v2926_v25, 0.0  ;;  %v2927_v2 = vadd.f32 %v9398_v28, %v2823_v36  ;;  %v9602_v53 = vld [vmem:[#allocation2 + $0xf0] sm:$0xff]  ;;  %v9629_v22 = vld [vmem:[%s10217_s3 + $0x80] sm:$0xff]  }
 0x32e   : > { %v3787_v4 = vrot.slane %v9502_v54, 2  ;;  %v3789_v0 = vrot.slane %v9551_v29, 2  ;;  %3047 = vst [vmem:[#allocation2 + $0x121] sm:$0xff] %v2960_v46  ;;  %v9607_v6 = vld [vmem:[#allocation2 + $0xd8] sm:$0xff]  ;;  %v3241_v34 = vrot.slane %v9602_v53, 1  ;;  %v3786_v58 = vsel %vm924_vm1, %v3784_v13, %v3785_v50 }
 0x32f   : > { %v2961_v55 = vmax.f32 %v2929_v9, 0.0  ;;  %7224 = vmatmul.mubr.bf16.gmra.mrb[12].mxu1 %v9595_v31  ;;  %v3790_v39 = vrot.slane %v9563_v12, 2  ;;  %3045 = vst [vmem:[#allocation2 + $0x109] sm:$0xff] %v2958_v59  ;;  %v2959_v11 = vmax.f32 %v2927_v2, 0.0  ;;  %v3236_v54 = vrot.slane %v9607_v6, 1 }
 0x330   : > { %7227 = vmatprep.mubr.bf16.mxu1 %v9592_v10  ;;  %v9614_v18 = vld [vmem:[#allocation2 + $0xf8] sm:$0xff]  ;;  %v9616_v29 = vld [vmem:[#allocation2 + $0x100] sm:$0x3]  ;;  %7256 = vmatpush3.bf16.msra.mxu1 %v8235_v3  ;;  %v3788_v63 = vsel %vm924_vm1, %v3785_v50, %v3787_v4  ;;  %v3792_v25 = vrot.slane %v9565_v40, 2 }
 0x331   : > { %3048 = vst [vmem:[#allocation2 + $0x129] sm:$0xff] %v2961_v55  ;;  %v9620_v45 = vld [vmem:[#allocation2 + $0xe0] sm:$0xff]  ;;  %v9622_v13 = vld [vmem:[#allocation2 + $0xe8] sm:$0x3]  ;;  %v3242_v12 = vrot.slane %v9614_v18, 1  ;;  %v3244_v7 = vrot.slane %v9616_v29, 1  ;;  %7257 = vmatprep.subr.bf16.mxu1 %v8236_v27  ;;  %v9633_v3 = vpack.c.bf16 %v9614_v18, %v9602_v53  ;;  %v9635_v40 = vpack.c.bf16 %v3788_v63, %v3786_v58 }
 0x332   : > { %3046 = vst [vmem:[#allocation2 + $0x111] sm:$0xff] %v2959_v11  ;;  %v7189_v46 = vpop.f32.mrb[24].mxu0  ;;  %v3237_v9 = vrot.slane %v9620_v45, 1  ;;  %v3239_v36 = vrot.slane %v9622_v13, 1  ;;  %v9641_v50 = vpack.c.bf16 %v9620_v45, %v9607_v6  ;;  %v3791_v59 = vsel %vm924_vm1, %v3789_v0, %v3790_v39 }
 0x333   : > { %v2932_v2 = vadd.f32 %v7189_v46, %v9398_v28  ;;  %v2836_v4 = vpop.f32.mrb[25].mxu0  ;;  %v3243_v55 = vsel %vm360_vm0, %v3241_v34, %v3242_v12  ;;  %v3245_v58 = vsel %vm360_vm0, %v3242_v12, %v3244_v7  ;;  %v3793_v11 = vsel %vm924_vm1, %v3790_v39, %v3792_v25 }
 0x334   : > { %v2930_v63 = vadd.f32 %v9398_v28, %v2836_v4  ;;  %v7190_v51 = vpop.f32.mrb[26].mxu0  ;;  %v3238_v49 = vsel %vm360_vm0, %v3236_v54, %v3237_v9  ;;  %v3240_v17 = vsel %vm360_vm0, %v3237_v9, %v3239_v36  ;;  %v9651_v24 = vpack.c.bf16 %v3245_v58, %v3243_v55  ;;  %7258 = vmatpush3.bf16.msra.mxu1 %v8236_v27 }
 0x335   : > { %v2964_v0 = vmax.f32 %v2932_v2, 0.0  ;;  %v2933_v46 = vadd.f32 %v7190_v51, %v9398_v28  ;;  %v2839_v35 = vpop.f32.mrb[27].mxu0  ;;  %v9654_v38 = vpack.c.bf16 %v3240_v17, %v3238_v49  ;;  %7291 = vmatprep.subr.bf16.mxu1 %v9629_v22  ;;  %v9657_v34 = vpack.c.bf16 %v3793_v11, %v3791_v59  ;;  %v9660_v12 = vld [vmem:[#allocation2 + $0x120] sm:$0xff] }
 0x336   : > { %10380 = vst [vmem:[#allocation5_spill] sm:$0xff] %v9651_v24  ;;  %v2962_v39 = vmax.f32 %v2930_v63, 0.0  ;;  %v2931_v25 = vadd.f32 %v9398_v28, %v2839_v35  ;;  %v3794_v54 = vrot.slane %v9545_v20, 2  ;;  %v3795_v7 = vrot.slane %v9558_v32, 2  ;;  %v9665_v51 = vld [vmem:[#allocation2 + $0x108] sm:$0xff] }
 0x337   : > { %3051 = vst [vmem:[#allocation2 + $0x151] sm:$0xff] %v2964_v0  ;;  %v2965_v27 = vmax.f32 %v2933_v46, 0.0  ;;  %7228 = vmatmul.mubr.bf16.gmra.mrb[16].mxu1 %v9654_v38  ;;  %v3251_v17 = vrot.slane %v9660_v12, 1  ;;  %v3797_v49 = vrot.slane %v9560_v19, 2  ;;  %v3799_v9 = vrot.slane %v9607_v6, 2 }
 0x338   : > { %3049 = vst [vmem:[#allocation2 + $0x139] sm:$0xff] %v2962_v39  ;;  %v2963_v35 = vmax.f32 %v2931_v25, 0.0  ;;  %7231 = vmatprep.mubr.bf16.mxu1 %v9651_v24  ;;  %v3246_v20 = vrot.slane %v9665_v51, 1  ;;  %v9672_v36 = vld [vmem:[#allocation2 + $0x128] sm:$0xff]  ;;  %v9674_v32 = vld [vmem:[#allocation2 + $0x130] sm:$0x3]  ;;  %v3796_v59 = vsel %vm924_vm1, %v3794_v54, %v3795_v7 }
 0x339   : > { %v3800_v2 = vrot.slane %v9620_v45, 2  ;;  %3052 = vst [vmem:[#allocation2 + $0x159] sm:$0xff] %v2965_v27  ;;  %v9678_v4 = vld [vmem:[#allocation2 + $0x110] sm:$0xff]  ;;  %v9680_v19 = vld [vmem:[#allocation2 + $0x118] sm:$0x3]  ;;  %v3252_v6 = vrot.slane %v9672_v36, 1  ;;  %v9686_v58 = vpack.c.bf16 %v9672_v36, %v9660_v12  ;;  %v3798_v11 = vsel %vm924_vm1, %v3795_v7, %v3797_v49 }
 0x33a   : > { %v3254_v55 = vrot.slane %v9674_v32, 1  ;;  %3050 = vst [vmem:[#allocation2 + $0x141] sm:$0xff] %v2963_v35  ;;  %v7193_v63 = vpop.f32.mrb[28].mxu0  ;;  %v3247_v0 = vrot.slane %v9678_v4, 1  ;;  %v3249_v45 = vrot.slane %v9680_v19, 1  ;;  %v9693_v46 = vpack.c.bf16 %v9678_v4, %v9665_v51 }
 0x33b   : > { %v9695_v39 = vpack.c.bf16 %v3798_v11, %v3796_v59  ;;  %v2936_v25 = vadd.f32 %v7193_v63, %v9398_v28  ;;  %v2852_v54 = vpop.f32.mrb[29].mxu0  ;;  %v3253_v27 = vsel %vm360_vm0, %v3251_v17, %v3252_v6  ;;  %v3801_v7 = vsel %vm924_vm1, %v3799_v9, %v3800_v2 }
 0x33c   : > { %v3255_v43 = vsel %vm360_vm0, %v3252_v6, %v3254_v55  ;;  %v2934_v49 = vadd.f32 %v9398_v28, %v2852_v54  ;;  %v7194_v35 = vpop.f32.mrb[30].mxu0  ;;  %v3248_v30 = vsel %vm360_vm0, %v3246_v20, %v3247_v0  ;;  %v3250_v60 = vsel %vm360_vm0, %v3247_v0, %v3249_v45 }
 0x33d   : > { %v9704_v56 = vpack.c.bf16 %v3255_v43, %v3253_v27  ;;  %v2968_v59 = vmax.f32 %v2936_v25, 0.0  ;;  %v2937_v11 = vadd.f32 %v7194_v35, %v9398_v28  ;;  %v2855_v63 = vpop.f32.mrb[31].mxu0  ;;  %v9707_v24 = vpack.c.bf16 %v3250_v60, %v3248_v30 }
 0x33e   : > { %v3802_v17 = vrot.slane %v9622_v13, 2  ;;  %v2966_v6 = vmax.f32 %v2934_v49, 0.0  ;;  %v2935_v9 = vadd.f32 %v9398_v28, %v2855_v63  ;;  %v9711_v55 = vld [vmem:[#allocation2 + $0x150] sm:$0xff]  ;;  %v3804_v54 = vrot.slane %v9602_v53, 2 }
 0x33f   : > { %10381 = vst [vmem:[#allocation8_spill] sm:$0xff] %v9704_v56  ;;  %10382 = vst [vmem:[#allocation9_spill] sm:$0xff] %v9707_v24  ;;  %v3805_v20 = vrot.slane %v9614_v18, 2  ;;  %v2969_v43 = vmax.f32 %v2937_v11, 0.0  ;;  %7232 = vmatmul.mubr.bf16.gmra.mrb[20].mxu1 %v9707_v24  ;;  %v3096_v0 = vld [vmem:[#allocation2 + $0x138] sm:$0xff]  ;;  %v3261_v45 = vrot.slane %v9711_v55, 1 }
 0x340   : > { %3055 = vst [vmem:[#allocation2 + $0x181] sm:$0xff] %v2968_v59  ;;  %v3803_v60 = vsel %vm924_vm1, %v3800_v2, %v3802_v17  ;;  %v3807_v30 = vrot.slane %v9616_v29, 2  ;;  %3053 = vst [vmem:[#allocation2 + $0x169] sm:$0xff] %v2966_v6  ;;  %v2967_v13 = vmax.f32 %v2935_v9, 0.0  ;;  %7235 = vmatprep.mubr.bf16.mxu1 %v9704_v56  ;;  %v3256_v28 = vrot.slane %v3096_v0, 1  ;;  %v3100_v25 = vld [vmem:[#allocation2 + $0x158] sm:$0xff] }
 0x341   : > { %v3101_v53 = vld [vmem:[#allocation2 + $0x160] sm:$0x3]  ;;  %v9720_v27 = vpack.c.bf16 %v3803_v60, %v3801_v7  ;;  %v3806_v18 = vsel %vm924_vm1, %v3804_v54, %v3805_v20  ;;  %3056 = vst [vmem:[#allocation2 + $0x189] sm:$0xff] %v2969_v43  ;;  %v3098_v35 = vld [vmem:[#allocation2 + $0x148] sm:$0x3]  ;;  %v3262_v59 = vrot.slane %v3100_v25, 1  ;;  %v9724_v2 = vpack.c.bf16 %v3100_v25, %v9711_v55 }
 0x342   : > { %v3097_v49 = vld [vmem:[#allocation2 + $0x140] sm:$0xff]  ;;  %v3264_v11 = vrot.slane %v3101_v53, 1  ;;  %v3808_v29 = vsel %vm924_vm1, %v3805_v20, %v3807_v30  ;;  %3054 = vst [vmem:[#allocation2 + $0x171] sm:$0xff] %v2967_v13  ;;  %v3259_v17 = vrot.slane %v3098_v35, 1  ;;  %v3809_v43 = vrot.slane %v9665_v51, 2 }
 0x343   : > { %v3257_v63 = vrot.slane %v3097_v49, 1  ;;  %v9727_v6 = vpack.c.bf16 %v3097_v49, %v3096_v0  ;;  %v9729_v9 = vpack.c.bf16 %v3808_v29, %v3806_v18  ;;  %v3263_v7 = vsel %vm360_vm0, %v3261_v45, %v3262_v59 }
 0x344   : > { %v3265_v54 = vsel %vm360_vm0, %v3262_v59, %v3264_v11  ;;  %v3810_v60 = vrot.slane %v9678_v4, 2  ;;  %v3812_v30 = vrot.slane %v9680_v19, 2  ;;  %v3814_v45 = vrot.slane %v9660_v12, 2 }
 0x345   : > { %v3258_v56 = vsel %vm360_vm0, %v3256_v28, %v3257_v63  ;;  %v3260_v24 = vsel %vm360_vm0, %v3257_v63, %v3259_v17  ;;  %v9737_v20 = vpack.c.bf16 %v3265_v54, %v3263_v7  ;;  %v3815_v59 = vrot.slane %v9672_v36, 2 }
 0x346   : > { %v9740_v13 = vpack.c.bf16 %v3260_v24, %v3258_v56  ;;  %v3811_v18 = vsel %vm924_vm1, %v3809_v43, %v3810_v60  ;;  %v3813_v51 = vsel %vm924_vm1, %v3810_v60, %v3812_v30  ;;  %v3817_v4 = vrot.slane %v9674_v32, 2 }
 0x347   : > { %v3819_v11 = vrot.slane %v3096_v0, 2  ;;  %v3820_v28 = vrot.slane %v3097_v49, 2  ;;  %v3102_v29 = vld [vmem:[#allocation2 + $0x168] sm:$0xff]  ;;  %v9748_v63 = vpack.c.bf16 %v3813_v51, %v3811_v18  ;;  %v3816_v56 = vsel %vm924_vm1, %v3814_v45, %v3815_v59 }
 0x348   : > { %7236 = vmatmul.mubr.bf16.gmra.mrb[24].mxu1 %v9740_v13  ;;  %v3822_v24 = vrot.slane %v3098_v35, 2  ;;  %v3824_v19 = vrot.slane %v9711_v55, 2  ;;  %v3266_v12 = vrot.slane %v3102_v29, 1  ;;  %v3818_v36 = vsel %vm924_vm1, %v3815_v59, %v3817_v4  ;;  %v9764_v4 = vld [vmem:[#allocation2 + $0x180] sm:$0xff] }
 0x349   : > { %7239 = vmatprep.mubr.bf16.mxu1 %v9737_v20  ;;  %v3821_v17 = vsel %vm924_vm1, %v3819_v11, %v3820_v28  ;;  %v3825_v32 = vrot.slane %v3100_v25, 2  ;;  %v3103_v0 = vld [vmem:[#allocation2 + $0x170] sm:$0xff]  ;;  %v3104_v49 = vld [vmem:[#allocation2 + $0x178] sm:$0x3]  ;;  %v9755_v7 = vpack.c.bf16 %v3818_v36, %v3816_v56  ;;  %v3827_v43 = vrot.slane %v3101_v53, 2  ;;  %v9766_v11 = vld [vmem:[#allocation2 + $0x188] sm:$0xff] }
 0x34a   : > { %v3823_v54 = vsel %vm924_vm1, %v3820_v28, %v3822_v24  ;;  %v3829_v60 = vrot.slane %v3102_v29, 2  ;;  %v3267_v30 = vrot.slane %v3103_v0, 1  ;;  %v3269_v35 = vrot.slane %v3104_v49, 1 }
 0x34b   : > { %v9758_v18 = vpack.c.bf16 %v3103_v0, %v3102_v29  ;;  %v9760_v55 = vpack.c.bf16 %v3823_v54, %v3821_v17  ;;  %v3826_v45 = vsel %vm924_vm1, %v3824_v19, %v3825_v32  ;;  %v3828_v59 = vsel %vm924_vm1, %v3825_v32, %v3827_v43  ;;  %v9772_v29 = vld [vmem:[#allocation2 + $0x190] sm:$0x3] }
 0x34c   : > { %v3830_v51 = vrot.slane %v3103_v0, 2  ;;  %v3832_v25 = vrot.slane %v3104_v49, 2  ;;  %v3268_v28 = vsel %vm360_vm0, %v3266_v12, %v3267_v30  ;;  %v3270_v53 = vsel %vm360_vm0, %v3267_v30, %v3269_v35  ;;  %v8238_v30 = vld [vmem:[%s10217_s3 + $0x88] sm:$0xff]   ;;  %v8239_v35 = vld [vmem:[%s10217_s3 + $0x90] sm:$0xff]  }
 0x34d   : > { %v9770_v56 = vpack.c.bf16 %v3828_v59, %v3826_v45  ;;  %v9774_v24 = vpack.c.bf16 %v3270_v53, %v3268_v28  ;;  %v4668_v32 = vrot.slane %v9764_v4, 2  ;;  %v4669_v0 = vrot.slane %v9766_v11, 2  ;;  %v8240_v45 = vld [vmem:[%s10217_s3 + $0x98] sm:$0xff]   ;;  %v8242_v59 = vld [vmem:[%s10217_s3 + $0xa8] sm:$0xff]   ;;  %v8245_v28 = vld [vmem:[%s10217_s3 + $0xc0] sm:$0xff]  }
 0x34e   : > { %v3831_v19 = vsel %vm924_vm1, %v3829_v60, %v3830_v51  ;;  %v3833_v36 = vsel %vm924_vm1, %v3830_v51, %v3832_v25  ;;  %v4671_v12 = vrot.slane %v9772_v29, 2  ;;  %v8303_v49 = vmov 0.0|0.0   ;;  %v8243_v51 = vld [vmem:[%s10217_s3 + $0xb0] sm:$0xff]   ;;  %v8244_v25 = vld [vmem:[%s10217_s3 + $0xb8] sm:$0xff]  }
 0x34f   : > { %v9778_v17 = vpack.c.bf16 %v3833_v36, %v3831_v19  ;;  %v4670_v54 = vsel %vm924_vm1, %v4668_v32, %v4669_v0  ;;  %v3757_v53 = vrot.slane %v9382_v21, 2  ;;  %v9827_v19 = vld [vmem:[#allocation2] sm:$0xff]  ;;  %v8246_v21 = vld [vmem:[%s10217_s3 + $0xc8] sm:$0xff]  }
 0x350   : > { %7240 = vmatmul.mubr.bf16.gmra.mrb[28].mxu1 %v9774_v24  ;;  %v4672_v43 = vsel %vm924_vm1, %v4669_v0, %v4671_v12  ;;  %v9830_v36 = vrot.slane %v9827_v19, 2  ;;  %v8247_v12 = vld [vmem:[%s10217_s3 + $0xd0] sm:$0xff]  }
 0x351   : > { %7259 = vmatprep.mubr.bf16.mxu1 %v8303_v49  ;;  %v9787_v60 = vpack.c.bf16 %v4672_v43, %v4670_v54  ;;  %v8248_v54 = vld [vmem:[%s10217_s3 + $0xd8] sm:$0xff]   ;;  %v8249_v43 = vld [vmem:[%s10217_s3 + $0xe0] sm:$0xff]  }
 0x352   : > { %v3758_v32 = vsel %vm924_vm1, %v9830_v36, %v3757_v53  ;;  %v8259_v53 = vld [vmem:[%s10217_s3 + $0x130] sm:$0xff]  }
 0x353   : > { %v3866_v0 = vpack.c.bf16 %v3758_v32, %v9830_v36  ;;  %v8260_v32 = vld [vmem:[%s10217_s3 + $0x138] sm:$0xff]  }
 0x358   : > { %7260 = vmatmul.mubr.bf16.vlgmr.msra.gmra.mrb[0].mxu1 %v9424_v61 }
 0x359   : > { %7263 = vmatprep.mubr.bf16.mxu1 %v9419_v57  ;;  %7292 = vmatpush3.bf16.msra.mxu1 %v9629_v22  ;;  %v8241_v22 = vld [vmem:[%s10217_s3 + $0xa0] sm:$0xff]  }
 0x35a   : > { %7293 = vmatprep.subr.bf16.mxu1 %v8238_v30 }
 0x35d   : > { %7294 = vmatpush3.bf16.msra.mxu1 %v8238_v30  ;;  %v8250_v30 = vld [vmem:[%s10217_s3 + $0xe8] sm:$0xff]  }
 0x35e   : > { %7295 = vmatprep.subr.bf16.mxu1 %v8239_v35 }
 0x360   : > { %7264 = vmatmul.mubr.bf16.gmra.mrb[4].mxu1 %v9469_v15 }
 0x361   : > { %7267 = vmatprep.mubr.bf16.mxu1 %v9465_v47  ;;  %7296 = vmatpush3.bf16.msra.mxu1 %v8239_v35  ;;  %v8251_v35 = vld [vmem:[%s10217_s3 + $0xf0] sm:$0xff]  }
 0x362   : > { %7297 = vmatprep.subr.bf16.mxu1 %v8240_v45 }
 0x365   : > { %7298 = vmatpush3.bf16.msra.mxu1 %v8240_v45  ;;  %v8252_v45 = vld [vmem:[%s10217_s3 + $0xf8] sm:$0xff]  }
 0x366   : > { %7299 = vmatprep.subr.bf16.mxu1 %v8241_v22 }
 0x368   : > { %7268 = vmatmul.mubr.bf16.gmra.mrb[8].mxu1 %v9525_v8 }
 0x369   : > { %7271 = vmatprep.mubr.bf16.mxu1 %v9517_v44  ;;  %7300 = vmatpush3.bf16.msra.mxu1 %v8241_v22  ;;  %v8253_v22 = vld [vmem:[%s10217_s3 + $0x100] sm:$0xff]  }
 0x36a   : > { %7301 = vmatprep.subr.bf16.mxu1 %v8242_v59 }
 0x36d   : > { %7302 = vmatpush3.bf16.msra.mxu1 %v8242_v59  ;;  %v8254_v59 = vld [vmem:[%s10217_s3 + $0x108] sm:$0xff]  }
 0x36e   : > { %7303 = vmatprep.subr.bf16.mxu1 %v8243_v51 }
 0x370   : > { %7272 = vmatmul.mubr.bf16.gmra.mrb[12].mxu1 %v9581_v48 }
 0x371   : > { %7275 = vmatprep.mubr.bf16.mxu1 %v9574_v14  ;;  %7304 = vmatpush3.bf16.msra.mxu1 %v8243_v51  ;;  %v8255_v51 = vld [vmem:[%s10217_s3 + $0x110] sm:$0xff]  }
 0x372   : > { %7305 = vmatprep.subr.bf16.mxu1 %v8244_v25 }
 0x375   : > { %7306 = vmatpush3.bf16.msra.mxu1 %v8244_v25  ;;  %v8257_v25 = vld [vmem:[%s10217_s3 + $0x120] sm:$0xff]  }
 0x376   : > { %7339 = vmatprep.subr.bf16.mxu1 %v8245_v28 }
 0x378   : > { %7276 = vmatmul.mubr.bf16.gmra.mrb[16].mxu1 %v9641_v50 }
 0x379   : > { %7279 = vmatprep.mubr.bf16.mxu1 %v9633_v3 }
 0x380   : > { %7280 = vmatmul.mubr.bf16.gmra.mrb[20].mxu1 %v9693_v46 }
 0x381   : > { %7283 = vmatprep.mubr.bf16.mxu1 %v9686_v58 }
 0x388   : > { %7284 = vmatmul.mubr.bf16.gmra.mrb[24].mxu1 %v9727_v6 }
 0x389   : > { %7287 = vmatprep.mubr.bf16.mxu1 %v9724_v2 }
 0x390   : > { %7288 = vmatmul.mubr.bf16.gmra.mrb[28].mxu1 %v9758_v18 }
 0x391   : > { %7307 = vmatprep.mubr.bf16.mxu1 %v3866_v0  ;;  %v8261_v0 = vld [vmem:[%s10217_s3 + $0x140] sm:$0xff]  }
 0x398   : > { %7308 = vmatmul.mubr.bf16.vlgmr.msra.gmra.mrb[0].mxu1 %v9455_v5 }
 0x399   : > { %7311 = vmatprep.mubr.bf16.mxu1 %v9475_v62  ;;  %7340 = vmatpush3.bf16.msra.mxu1 %v8245_v28  ;;  %v8258_v28 = vld [vmem:[%s10217_s3 + $0x128] sm:$0xff]  }
 0x39a   : > { %7341 = vmatprep.subr.bf16.mxu1 %v8246_v21 }
 0x39d   : > { %7342 = vmatpush3.bf16.msra.mxu1 %v8246_v21  ;;  %v9918_v21 = vpack.c.bf16 %v9766_v11, %v9764_v4 }
 0x39e   : > { %7343 = vmatprep.subr.bf16.mxu1 %v8247_v12 }
 0x3a0   : > { %7312 = vmatmul.mubr.bf16.gmra.mrb[4].mxu1 %v9519_v42 }
 0x3a1   : > { %7315 = vmatprep.mubr.bf16.mxu1 %v9547_v23  ;;  %7344 = vmatpush3.bf16.msra.mxu1 %v8247_v12  ;;  %v8262_v12 = vld [vmem:[%s10217_s3 + $0x148] sm:$0xff]  }
 0x3a2   : > { %7345 = vmatprep.subr.bf16.mxu1 %v8248_v54 }
 0x3a5   : > { %7346 = vmatpush3.bf16.msra.mxu1 %v8248_v54  ;;  %v8263_v54 = vld [vmem:[%s10217_s3 + $0x150] sm:$0xff]  }
 0x3a6   : > { %7347 = vmatprep.subr.bf16.mxu1 %v8249_v43 }
 0x3a8   : > { %7316 = vmatmul.mubr.bf16.gmra.mrb[8].mxu1 %v9587_v37 }
 0x3a9   : > { %7319 = vmatprep.mubr.bf16.mxu1 %v9635_v40  ;;  %7348 = vmatpush3.bf16.msra.mxu1 %v8249_v43  ;;  %v8265_v43 = vld [vmem:[%s10217_s3 + $0x160] sm:$0xff]  }
 0x3aa   : > { %7349 = vmatprep.subr.bf16.mxu1 %v8250_v30 }
 0x3ad   : > { %7350 = vmatpush3.bf16.msra.mxu1 %v8250_v30  ;;  %v8266_v30 = vld [vmem:[%s10217_s3 + $0x168] sm:$0xff]  }
 0x3ae   : > { %7351 = vmatprep.subr.bf16.mxu1 %v8251_v35 }
 0x3b0   : > { %7320 = vmatmul.mubr.bf16.gmra.mrb[12].mxu1 %v9657_v34 }
 0x3b1   : > { %7323 = vmatprep.mubr.bf16.mxu1 %v9695_v39  ;;  %7352 = vmatpush3.bf16.msra.mxu1 %v8251_v35  ;;  %v8267_v35 = vld [vmem:[%s10217_s3 + $0x170] sm:$0xff]  }
 0x3b2   : > { %7353 = vmatprep.subr.bf16.mxu1 %v8252_v45 }
 0x3b5   : > { %7354 = vmatpush3.bf16.msra.mxu1 %v8252_v45  ;;  %v8268_v45 = vld [vmem:[%s10217_s3 + $0x178] sm:$0xff]  }
 0x3b6   : > { %7387 = vmatprep.subr.bf16.mxu1 %v8253_v22 }
 0x3b8   : > { %7324 = vmatmul.mubr.bf16.gmra.mrb[16].mxu1 %v9720_v27 }
 0x3b9   : > { %7327 = vmatprep.mubr.bf16.mxu1 %v9729_v9 }
 0x3c0   : > { %7328 = vmatmul.mubr.bf16.gmra.mrb[20].mxu1 %v9748_v63 }
 0x3c1   : > { %7331 = vmatprep.mubr.bf16.mxu1 %v9755_v7 }
 0x3c8   : > { %7332 = vmatmul.mubr.bf16.gmra.mrb[24].mxu1 %v9760_v55 }
 0x3c9   : > { %7335 = vmatprep.mubr.bf16.mxu1 %v9770_v56 }
 0x3d0   : > { %7336 = vmatmul.mubr.bf16.gmra.mrb[28].mxu1 %v9778_v17 }
 0x3d1   : > { %7355 = vmatprep.mubr.bf16.mxu1 %v9424_v61  ;;  %v8256_v61 = vld [vmem:[%s10217_s3 + $0x118] sm:$0xff]  }
 0x3d8   : > { %7356 = vmatmul.mubr.bf16.vlgmr.msra.gmra.mrb[0].mxu1 %v9419_v57 }
 0x3d9   : > { %7359 = vmatprep.mubr.bf16.mxu1 %v9469_v15  ;;  %7388 = vmatpush3.bf16.msra.mxu1 %v8253_v22  ;;  %v8269_v22 = vld [vmem:[%s10217_s3 + $0x180] sm:$0xff]  }
 0x3da   : > { %7389 = vmatprep.subr.bf16.mxu1 %v8254_v59 }
 0x3dd   : > { %7390 = vmatpush3.bf16.msra.mxu1 %v8254_v59  ;;  %v10383_v59 = vld [vmem:[#allocation5_spill] sm:$0xff] }
 0x3de   : > { %7391 = vmatprep.subr.bf16.mxu1 %v8255_v51 }
 0x3e0   : > { %7360 = vmatmul.mubr.bf16.gmra.mrb[4].mxu1 %v9465_v47 }
 0x3e1   : > { %7363 = vmatprep.mubr.bf16.mxu1 %v9525_v8  ;;  %7392 = vmatpush3.bf16.msra.mxu1 %v8255_v51  ;;  %v10384_v51 = vld [vmem:[#allocation9_spill] sm:$0xff] }
 0x3e2   : > { %7393 = vmatprep.subr.bf16.mxu1 %v8256_v61 }
 0x3e5   : > { %7394 = vmatpush3.bf16.msra.mxu1 %v8256_v61  ;;  %v10385_v61 = vld [vmem:[#allocation8_spill] sm:$0xff] }
 0x3e6   : > { %7395 = vmatprep.subr.bf16.mxu1 %v8257_v25 }
 0x3e8   : > { %7364 = vmatmul.mubr.bf16.gmra.mrb[8].mxu1 %v9517_v44 }
 0x3e9   : > { %7367 = vmatprep.mubr.bf16.mxu1 %v9581_v48  ;;  %7396 = vmatpush3.bf16.msra.mxu1 %v8257_v25  ;;  %v4403_v25 = vrot.slane %v9766_v11, 1  ;;  %v8270_v11 = vld [vmem:[%s10217_s3 + $0x188] sm:$0xff]  }
 0x3ea   : > { %7397 = vmatprep.subr.bf16.mxu1 %v8258_v28 }
 0x3ed   : > { %7398 = vmatpush3.bf16.msra.mxu1 %v8258_v28  ;;  %v4405_v28 = vrot.slane %v9772_v29, 1  ;;  %v8273_v29 = vld [vmem:[%s10217_s3 + $0x1a0] sm:$0xff]  }
 0x3ee   : > { %7399 = vmatprep.subr.bf16.mxu1 %v8259_v53 }
 0x3f0   : > { %7368 = vmatmul.mubr.bf16.gmra.mrb[12].mxu1 %v9574_v14 }
 0x3f1   : > { %7371 = vmatprep.mubr.bf16.mxu1 %v9641_v50  ;;  %7400 = vmatpush3.bf16.msra.mxu1 %v8259_v53  ;;  %v4402_v53 = vrot.slane %v9764_v4, 1  ;;  %v8271_v4 = vld [vmem:[%s10217_s3 + $0x190] sm:$0xff]  }
 0x3f2   : > { %7401 = vmatprep.subr.bf16.mxu1 %v8260_v32 }
 0x3f5   : > { %7402 = vmatpush3.bf16.msra.mxu1 %v8260_v32  ;;  %v4404_v32 = vsel %vm360_vm0, %v4402_v53, %v4403_v25 }
 0x3f6   : > { %7435 = vmatprep.subr.bf16.mxu1 %v8261_v0 }
 0x3f8   : > { %7372 = vmatmul.mubr.bf16.gmra.mrb[16].mxu1 %v9633_v3 }
 0x3f9   : > { %7375 = vmatprep.mubr.bf16.mxu1 %v9693_v46 }
 0x400   : > { %7376 = vmatmul.mubr.bf16.gmra.mrb[20].mxu1 %v9686_v58 }
 0x401   : > { %7379 = vmatprep.mubr.bf16.mxu1 %v9727_v6 }
 0x408   : > { %7380 = vmatmul.mubr.bf16.gmra.mrb[24].mxu1 %v9724_v2 }
 0x409   : > { %7383 = vmatprep.mubr.bf16.mxu1 %v9758_v18 }
 0x410   : > { %7384 = vmatmul.mubr.bf16.gmra.mrb[28].mxu1 %v9918_v21 }
 0x411   : > { %7403 = vmatprep.mubr.bf16.mxu1 %v9430_v33  ;;  %v8264_v33 = vld [vmem:[%s10217_s3 + $0x158] sm:$0xff]  }
 0x418   : > { %7404 = vmatmul.mubr.bf16.vlgmr.msra.gmra.mrb[0].mxu1 %v9437_v26 }
 0x419   : > { %7407 = vmatprep.mubr.bf16.mxu1 %v9483_v41  ;;  %7436 = vmatpush3.bf16.msra.mxu1 %v8261_v0  ;;  %v4406_v0 = vsel %vm360_vm0, %v4403_v25, %v4405_v28 }
 0x41a   : > { %7437 = vmatprep.subr.bf16.mxu1 %v8262_v12 }
 0x41d   : > { %7438 = vmatpush3.bf16.msra.mxu1 %v8262_v12  ;;  %v9965_v12 = vpack.c.bf16 %v4406_v0, %v4404_v32  ;;  %v10391_v32 = vld [vmem:[#allocation17_spill] sm:$0xff] }
 0x41e   : > { %7439 = vmatprep.subr.bf16.mxu1 %v8263_v54 }
 0x420   : > { %7408 = vmatmul.mubr.bf16.gmra.mrb[4].mxu1 %v9480_v52 }
 0x421   : > { %7411 = vmatprep.mubr.bf16.mxu1 %v9538_v16  ;;  %7440 = vmatpush3.bf16.msra.mxu1 %v8263_v54  ;;  %v8274_v54 = vld [vmem:[%s10217_s3 + $0x1a8] sm:$0xff]  }
 0x422   : > { %7441 = vmatprep.subr.bf16.mxu1 %v8264_v33 }
 0x425   : > { %7442 = vmatpush3.bf16.msra.mxu1 %v8264_v33  ;;  %v8275_v33 = vld [vmem:[%s10217_s3 + $0x1b0] sm:$0xff]  }
 0x426   : > { %7443 = vmatprep.subr.bf16.mxu1 %v8265_v43 }
 0x428   : > { %7412 = vmatmul.mubr.bf16.gmra.mrb[8].mxu1 %v9535_v1 }
 0x429   : > { %7415 = vmatprep.mubr.bf16.mxu1 %v9595_v31  ;;  %7444 = vmatpush3.bf16.msra.mxu1 %v8265_v43  ;;  %v8276_v43 = vld [vmem:[%s10217_s3 + $0x1b8] sm:$0xff]  }
 0x42a   : > { %7445 = vmatprep.subr.bf16.mxu1 %v8266_v30 }
 0x42d   : > { %7446 = vmatpush3.bf16.msra.mxu1 %v8266_v30  ;;  %v8277_v30 = vld [vmem:[%s10217_s3 + $0x1c0] sm:$0xff]  }
 0x42e   : > { %7447 = vmatprep.subr.bf16.mxu1 %v8267_v35 }
 0x430   : > { %7416 = vmatmul.mubr.bf16.gmra.mrb[12].mxu1 %v9592_v10 }
 0x431   : > { %7419 = vmatprep.mubr.bf16.mxu1 %v9654_v38  ;;  %7448 = vmatpush3.bf16.msra.mxu1 %v8267_v35  ;;  %v8278_v35 = vld [vmem:[%s10217_s3 + $0x1c8] sm:$0xff]  }
 0x432   : > { %7449 = vmatprep.subr.bf16.mxu1 %v8268_v45 }
 0x435   : > { %7450 = vmatpush3.bf16.msra.mxu1 %v8268_v45  ;;  %v8279_v45 = vld [vmem:[%s10217_s3 + $0x1d0] sm:$0xff]  }
 0x436   : > { %7483 = vmatprep.subr.bf16.mxu1 %v8269_v22 }
 0x438   : > { %7420 = vmatmul.mubr.bf16.gmra.mrb[16].mxu1 %v10383_v59 }
 0x439   : > { %7423 = vmatprep.mubr.bf16.mxu1 %v10384_v51 }
 0x440   : > { %7424 = vmatmul.mubr.bf16.gmra.mrb[20].mxu1 %v10385_v61 }
 0x441   : > { %7427 = vmatprep.mubr.bf16.mxu1 %v9740_v13 }
 0x448   : > { %7428 = vmatmul.mubr.bf16.gmra.mrb[24].mxu1 %v9737_v20 }
 0x449   : > { %7431 = vmatprep.mubr.bf16.mxu1 %v9774_v24 }
 0x450   : > { %7432 = vmatmul.mubr.bf16.gmra.mrb[28].mxu1 %v9965_v12 }
 0x451   : > { %7451 = vmatprep.mubr.bf16.mxu1 %v9455_v5  ;;  %v8272_v5 = vld [vmem:[%s10217_s3 + $0x198] sm:$0xff]  }
 0x458   : > { %7452 = vmatmul.mubr.bf16.vlgmr.msra.gmra.mrb[0].mxu1 %v9475_v62 }
 0x459   : > { %7455 = vmatprep.mubr.bf16.mxu1 %v9519_v42  ;;  %7484 = vmatpush3.bf16.msra.mxu1 %v8269_v22 }
 0x45a   : > { %7485 = vmatprep.subr.bf16.mxu1 %v8270_v11 }
 0x45d   : > { %7486 = vmatpush3.bf16.msra.mxu1 %v8270_v11 }
 0x45e   : > { %7487 = vmatprep.subr.bf16.mxu1 %v8271_v4 }
 0x460   : > { %7456 = vmatmul.mubr.bf16.gmra.mrb[4].mxu1 %v9547_v23 }
 0x461   : > { %7459 = vmatprep.mubr.bf16.mxu1 %v9587_v37  ;;  %7488 = vmatpush3.bf16.msra.mxu1 %v8271_v4  ;;  %v10392_v4 = vld [vmem:[#allocation20_spill] sm:$0xff] }
 0x462   : > { %7489 = vmatprep.subr.bf16.mxu1 %v8272_v5 }
 0x465   : > { %7490 = vmatpush3.bf16.msra.mxu1 %v8272_v5 }
 0x466   : > { %7491 = vmatprep.subr.bf16.mxu1 %v8273_v29 }
 0x468   : > { %7460 = vmatmul.mubr.bf16.gmra.mrb[8].mxu1 %v9635_v40 }
 0x469   : > { %7463 = vmatprep.mubr.bf16.mxu1 %v9657_v34  ;;  %7492 = vmatpush3.bf16.msra.mxu1 %v8273_v29 }
 0x46a   : > { %7493 = vmatprep.subr.bf16.mxu1 %v8274_v54 }
 0x46d   : > { %7494 = vmatpush3.bf16.msra.mxu1 %v8274_v54  ;;  %v10393_v54 = vld [vmem:[#allocation18_spill] sm:$0xff] }
 0x46e   : > { %7495 = vmatprep.subr.bf16.mxu1 %v8275_v33 }
 0x470   : > { %7464 = vmatmul.mubr.bf16.gmra.mrb[12].mxu1 %v9695_v39 }
 0x471   : > { %7467 = vmatprep.mubr.bf16.mxu1 %v9720_v27  ;;  %7496 = vmatpush3.bf16.msra.mxu1 %v8275_v33 }
 0x472   : > { %7497 = vmatprep.subr.bf16.mxu1 %v8276_v43 }
 0x475   : > { %7498 = vmatpush3.bf16.msra.mxu1 %v8276_v43 }
 0x476   : > { %7531 = vmatprep.subr.bf16.mxu1 %v8277_v30 }
 0x478   : > { %7468 = vmatmul.mubr.bf16.gmra.mrb[16].mxu1 %v9729_v9 }
 0x479   : > { %7471 = vmatprep.mubr.bf16.mxu1 %v9748_v63 }
 0x480   : > { %7472 = vmatmul.mubr.bf16.gmra.mrb[20].mxu1 %v9755_v7 }
 0x481   : > { %7475 = vmatprep.mubr.bf16.mxu1 %v9760_v55 }
 0x488   : > { %7476 = vmatmul.mubr.bf16.gmra.mrb[24].mxu1 %v9770_v56 }
 0x489   : > { %7479 = vmatprep.mubr.bf16.mxu1 %v9778_v17 }
 0x490   : > { %7480 = vmatmul.mubr.bf16.gmra.mrb[28].mxu1 %v9787_v60 }
 0x491   : > { %7499 = vmatprep.mubr.bf16.mxu1 %v9419_v57  ;;  %v8280_v57 = vld [vmem:[%s10217_s3 + $0x1d8] sm:$0xff]  }
 0x498   : > { %7500 = vmatmul.mubr.bf16.vlgmr.msra.gmra.mrb[0].mxu1 %v9469_v15  ;;  %v8282_v15 = vld [vmem:[%s10217_s3 + $0x1e8] sm:$0xff]  }
 0x499   : > { %7503 = vmatprep.mubr.bf16.mxu1 %v9465_v47  ;;  %7532 = vmatpush3.bf16.msra.mxu1 %v8277_v30  ;;  %v8281_v47 = vld [vmem:[%s10217_s3 + $0x1e0] sm:$0xff]  }
 0x49a   : > { %7533 = vmatprep.subr.bf16.mxu1 %v8278_v35 }
 0x49d   : > { %7534 = vmatpush3.bf16.msra.mxu1 %v8278_v35 }
 0x49e   : > { %7535 = vmatprep.subr.bf16.mxu1 %v8279_v45 }
 0x4a0   : > { %7504 = vmatmul.mubr.bf16.gmra.mrb[4].mxu1 %v9525_v8  ;;  %v8284_v8 = vld [vmem:[%s10217_s3 + $0x1f8] sm:$0xff]  }
 0x4a1   : > { %7507 = vmatprep.mubr.bf16.mxu1 %v9517_v44  ;;  %7536 = vmatpush3.bf16.msra.mxu1 %v8279_v45  ;;  %v8283_v44 = vld [vmem:[%s10217_s3 + $0x1f0] sm:$0xff]  }
 0x4a2   : > { %7537 = vmatprep.subr.bf16.mxu1 %v8280_v57 }
 0x4a5   : > { %7538 = vmatpush3.bf16.msra.mxu1 %v8280_v57 }
 0x4a6   : > { %7539 = vmatprep.subr.bf16.mxu1 %v8281_v47 }
 0x4a8   : > { %7508 = vmatmul.mubr.bf16.gmra.mrb[8].mxu1 %v9581_v48  ;;  %v8286_v48 = vld [vmem:[%s10217_s3 + $0x208] sm:$0xff]  }
 0x4a9   : > { %7511 = vmatprep.mubr.bf16.mxu1 %v9574_v14  ;;  %7540 = vmatpush3.bf16.msra.mxu1 %v8281_v47  ;;  %v8285_v14 = vld [vmem:[%s10217_s3 + $0x200] sm:$0xff]  }
 0x4aa   : > { %7541 = vmatprep.subr.bf16.mxu1 %v8282_v15 }
 0x4ad   : > { %7542 = vmatpush3.bf16.msra.mxu1 %v8282_v15 }
 0x4ae   : > { %7543 = vmatprep.subr.bf16.mxu1 %v8283_v44 }
 0x4b0   : > { %7512 = vmatmul.mubr.bf16.gmra.mrb[12].mxu1 %v9641_v50 }
 0x4b1   : > { %7515 = vmatprep.mubr.bf16.mxu1 %v9633_v3  ;;  %7544 = vmatpush3.bf16.msra.mxu1 %v8283_v44  ;;  %v8287_v3 = vld [vmem:[%s10217_s3 + $0x210] sm:$0xff]   ;;  %v10394_v44 = vld [vmem:[#allocation28_spill] sm:$0xff] }
 0x4b2   : > { %7545 = vmatprep.subr.bf16.mxu1 %v8284_v8 }
 0x4b5   : > { %7546 = vmatpush3.bf16.msra.mxu1 %v8284_v8 }
 0x4b6   : > { %7579 = vmatprep.subr.bf16.mxu1 %v8285_v14 }
 0x4b8   : > { %7516 = vmatmul.mubr.bf16.gmra.mrb[16].mxu1 %v9693_v46 }
 0x4b9   : > { %7519 = vmatprep.mubr.bf16.mxu1 %v9686_v58 }
 0x4c0   : > { %7520 = vmatmul.mubr.bf16.gmra.mrb[20].mxu1 %v9727_v6 }
 0x4c1   : > { %7523 = vmatprep.mubr.bf16.mxu1 %v9724_v2  ;;  %v10386_v2 = vld [vmem:[#allocation11_spill] sm:$0xff] }
 0x4c8   : > { %7524 = vmatmul.mubr.bf16.gmra.mrb[24].mxu1 %v9758_v18 }
 0x4c9   : > { %7527 = vmatprep.mubr.bf16.mxu1 %v9918_v21 }
 0x4d0   : > { %7528 = vmatmul.mubr.bf16.gmra.mrb[28].mxu1 %v8303_v49 }
 0x4d1   : > { %7547 = vmatprep.mubr.bf16.mxu1 %v9437_v26  ;;  %v8288_v26 = vld [vmem:[%s10217_s3 + $0x218] sm:$0xff]  }
 0x4d8   : > { %7548 = vmatmul.mubr.bf16.vlgmr.msra.gmra.mrb[0].mxu1 %v9483_v41  ;;  %v8290_v41 = vld [vmem:[%s10217_s3 + $0x228] sm:$0xff]  }
 0x4d9   : > { %7551 = vmatprep.mubr.bf16.mxu1 %v9480_v52  ;;  %7580 = vmatpush3.bf16.msra.mxu1 %v8285_v14  ;;  %v8289_v52 = vld [vmem:[%s10217_s3 + $0x220] sm:$0xff]  }
 0x4da   : > { %7581 = vmatprep.subr.bf16.mxu1 %v8286_v48 }
 0x4dd   : > { %7582 = vmatpush3.bf16.msra.mxu1 %v8286_v48 }
 0x4de   : > { %7583 = vmatprep.subr.bf16.mxu1 %v8287_v3 }
 0x4e0   : > { %7552 = vmatmul.mubr.bf16.gmra.mrb[4].mxu1 %v9538_v16  ;;  %v8292_v16 = vld [vmem:[%s10217_s3 + $0x238] sm:$0xff]  }
 0x4e1   : > { %7555 = vmatprep.mubr.bf16.mxu1 %v9535_v1  ;;  %7584 = vmatpush3.bf16.msra.mxu1 %v8287_v3  ;;  %v8291_v1 = vld [vmem:[%s10217_s3 + $0x230] sm:$0xff]   ;;  %v10395_v3 = vld [vmem:[#allocation25_spill] sm:$0xff] }
 0x4e2   : > { %7585 = vmatprep.subr.bf16.mxu1 %v8288_v26 }
 0x4e5   : > { %7586 = vmatpush3.bf16.msra.mxu1 %v8288_v26 }
 0x4e6   : > { %7587 = vmatprep.subr.bf16.mxu1 %v8289_v52 }
 0x4e8   : > { %7556 = vmatmul.mubr.bf16.gmra.mrb[8].mxu1 %v9595_v31  ;;  %v5196_v31 = vrot.slane %v9827_v19, 1 }
 0x4e9   : > { %7559 = vmatprep.mubr.bf16.mxu1 %v9592_v10  ;;  %7588 = vmatpush3.bf16.msra.mxu1 %v8289_v52  ;;  %v3110_v10 = vld [vmem:[#allocation2 + $0x1a8] sm:$0x3] }
 0x4ea   : > { %7589 = vmatprep.subr.bf16.mxu1 %v8290_v41  ;;  %v5199_v50 = vrot.slane %v3110_v10, 1 }
 0x4ed   : > { %7590 = vmatpush3.bf16.msra.mxu1 %v8290_v41 }
 0x4ee   : > { %7591 = vmatprep.subr.bf16.mxu1 %v8291_v1 }
 0x4f0   : > { %7560 = vmatmul.mubr.bf16.gmra.mrb[12].mxu1 %v9654_v38  ;;  %v5200_v38 = vsel %vm360_vm0, %v5196_v31, %v5199_v50 }
 0x4f1   : > { %7563 = vmatprep.mubr.bf16.mxu1 %v10383_v59  ;;  %7592 = vmatpush3.bf16.msra.mxu1 %v8291_v1  ;;  %v5203_v58 = vpack.c.bf16 %v5200_v38, %v5196_v31  ;;  %v10396_v1 = vld [vmem:[#allocation29_spill] sm:$0xff]  ;;  %v10397_v31 = vld [vmem:[#allocation26_spill] sm:$0xff] }
 0x4f2   : > { %7593 = vmatprep.subr.bf16.mxu1 %v8292_v16 }
 0x4f5   : > { %7594 = vmatpush3.bf16.msra.mxu1 %v8292_v16 }
 0x4f8   : > { %7564 = vmatmul.mubr.bf16.gmra.mrb[16].mxu1 %v10384_v51 }
 0x4f9   : > { %7567 = vmatprep.mubr.bf16.mxu1 %v10385_v61  ;;  %v10390_v61 = vld [vmem:[#allocation19_spill] sm:$0xff] }
 0x500   : > { %7568 = vmatmul.mubr.bf16.gmra.mrb[20].mxu1 %v9740_v13  ;;  %v10387_v13 = vld [vmem:[#allocation6_spill] sm:$0xff] }
 0x501   : > { %7571 = vmatprep.mubr.bf16.mxu1 %v9737_v20 }
 0x508   : > { %7572 = vmatmul.mubr.bf16.gmra.mrb[24].mxu1 %v9774_v24 }
 0x509   : > { %7575 = vmatprep.mubr.bf16.mxu1 %v9965_v12 }
 0x510   : > { %7576 = vmatmul.mubr.bf16.gmra.mrb[28].mxu1 %v5203_v58 }
 0x511   : > { %7595 = vmatprep.mubr.bf16.mxu1 %v9475_v62  ;;  %v5465_v62 = vrot.slane %v3110_v10, 2 }
 0x518   : > { %7596 = vmatmul.mubr.bf16.vlgmr.msra.gmra.mrb[0].mxu1 %v9519_v42  ;;  %v5466_v42 = vsel %vm924_vm1, %v9830_v36, %v5465_v62 }
 0x519   : > { %7599 = vmatprep.mubr.bf16.mxu1 %v9547_v23  ;;  %v5469_v23 = vpack.c.bf16 %v5466_v42, %v9830_v36 }
 0x520   : > { %7600 = vmatmul.mubr.bf16.gmra.mrb[4].mxu1 %v9587_v37  ;;  %v10107_v37 = vld [vmem:[%s10218_s4] ss:$0 sm:$0xff] }
 0x521   : > { %7603 = vmatprep.mubr.bf16.mxu1 %v9635_v40 }
 0x528   : > { %7604 = vmatmul.mubr.bf16.gmra.mrb[8].mxu1 %v9657_v34 }
 0x529   : > { %7607 = vmatprep.mubr.bf16.mxu1 %v9695_v39 }
 0x530   : > { %7608 = vmatmul.mubr.bf16.gmra.mrb[12].mxu1 %v9720_v27 }
 0x531   : > { %7611 = vmatprep.mubr.bf16.mxu1 %v9729_v9 }
 0x538   : > { %7612 = vmatmul.mubr.bf16.gmra.mrb[16].mxu1 %v9748_v63 }
 0x539   : > { %7615 = vmatprep.mubr.bf16.mxu1 %v9755_v7 }
 0x540   : > { %7616 = vmatmul.mubr.bf16.gmra.mrb[20].mxu1 %v9760_v55  ;;  %v10388_v55 = vld [vmem:[#allocation12_spill] sm:$0xff] }
 0x541   : > { %7619 = vmatprep.mubr.bf16.mxu1 %v9770_v56 }
 0x548   : > { %7620 = vmatmul.mubr.bf16.gmra.mrb[24].mxu1 %v9778_v17  ;;  %v10389_v17 = vld [vmem:[#allocation7_spill] sm:$0xff] }
 0x549   : > { %7623 = vmatprep.mubr.bf16.mxu1 %v9787_v60 }
 0x550   : > { %7624 = vmatmul.mubr.bf16.gmra.mrb[28].mxu1 %v5469_v23 }
 0x5eb   : > { %v7597_v40 = vpop.f32.mrb[0].mxu1 }
 0x5ec   : > { %v5737_v34 = vadd.f32 %v7597_v40, %v10107_v37  ;;  %v5569_v46 = vpop.f32.mrb[1].mxu1 }
 0x5ed   : > { %v5735_v39 = vadd.f32 %v10107_v37, %v5569_v46  ;;  %v7598_v27 = vpop.f32.mrb[2].mxu1  ;;  %v10398_v46 = vld [vmem:[#allocation32_spill] sm:$0xff] }
 0x5ee   : > { %v5769_v6 = vadd.f32 %v5737_v34, %v10386_v2  ;;  %v5738_v9 = vadd.f32 %v7598_v27, %v10107_v37  ;;  %v5572_v20 = vpop.f32.mrb[3].mxu1 }
 0x5ef   : > { %v5767_v63 = vadd.f32 %v5735_v39, %v10387_v13  ;;  %v5736_v7 = vadd.f32 %v10107_v37, %v5572_v20 }
 0x5f0   : > { %v5801_v18 = vmax.f32 %v5769_v6, 0.0  ;;  %v5770_v56 = vadd.f32 %v5738_v9, %v10388_v55  ;;  %v10399_v6 = vld [vmem:[#allocation30_spill] sm:$0xff]  ;;  %v10401_v55 = vld [vmem:[#allocation31_spill] sm:$0xff] }
 0x5f1   : > { %v5799_v24 = vmax.f32 %v5767_v63, 0.0  ;;  %v5768_v49 = vadd.f32 %v5736_v7, %v10389_v17  ;;  %v10400_v63 = vld [vmem:[#allocation33_spill] sm:$0xff] }
 0x5f2   : > { %5833 = vst [vmem:[%s10117_s24 + $0x10] sm:$0xff] %v5801_v18  ;;  %v5802_v60 = vmax.f32 %v5770_v56, 0.0 }
 0x5f3   : > { %5831 = vst [vmem:[%s10117_s24] sm:$0xff] %v5799_v24  ;;  %v5800_v19 = vmax.f32 %v5768_v49, 0.0  ;;  %v7601_v36 = vpop.f32.mrb[4].mxu1 }
 0x5f4   : > { %5834 = vst [vmem:[%s10117_s24 + $0x18] sm:$0xff] %v5802_v60  ;;  %v5741_v21 = vadd.f32 %v7601_v36, %v10107_v37  ;;  %v5585_v22 = vpop.f32.mrb[5].mxu1 }
 0x5f5   : > { %5832 = vst [vmem:[%s10117_s24 + $0x8] sm:$0xff] %v5800_v19  ;;  %v5739_v59 = vadd.f32 %v10107_v37, %v5585_v22  ;;  %v7602_v51 = vpop.f32.mrb[6].mxu1  ;;  %v10402_v22 = vld [vmem:[#allocation36_spill] sm:$0xff] }
 0x5f6   : > { %v5773_v25 = vadd.f32 %v5741_v21, %v10390_v61  ;;  %v5742_v28 = vadd.f32 %v7602_v51, %v10107_v37  ;;  %v5588_v53 = vpop.f32.mrb[7].mxu1 }
 0x5f7   : > { %v5771_v0 = vadd.f32 %v5739_v59, %v10391_v32  ;;  %v5740_v12 = vadd.f32 %v10107_v37, %v5588_v53 }
 0x5f8   : > { %v5805_v11 = vmax.f32 %v5773_v25, 0.0  ;;  %v5774_v5 = vadd.f32 %v5742_v28, %v10392_v4  ;;  %v10403_v25 = vld [vmem:[#allocation34_spill] sm:$0xff]  ;;  %v10405_v4 = vld [vmem:[#allocation35_spill] sm:$0xff] }
 0x5f9   : > { %v5803_v29 = vmax.f32 %v5771_v0, 0.0  ;;  %v5772_v33 = vadd.f32 %v5740_v12, %v10393_v54  ;;  %v10404_v0 = vld [vmem:[#allocation37_spill] sm:$0xff] }
 0x5fa   : > { %5837 = vst [vmem:[%s10117_s24 + $0x30] sm:$0xff] %v5805_v11  ;;  %v5806_v43 = vmax.f32 %v5774_v5, 0.0 }
 0x5fb   : > { %5835 = vst [vmem:[%s10117_s24 + $0x20] sm:$0xff] %v5803_v29  ;;  %v5804_v30 = vmax.f32 %v5772_v33, 0.0  ;;  %v7605_v35 = vpop.f32.mrb[8].mxu1 }
 0x5fc   : > { %5838 = vst [vmem:[%s10117_s24 + $0x38] sm:$0xff] %v5806_v43  ;;  %v5745_v45 = vadd.f32 %v7605_v35, %v10107_v37  ;;  %v5601_v57 = vpop.f32.mrb[9].mxu1 }
 0x5fd   : > { %5836 = vst [vmem:[%s10117_s24 + $0x28] sm:$0xff] %v5804_v30  ;;  %v5743_v47 = vadd.f32 %v10107_v37, %v5601_v57  ;;  %v7606_v15 = vpop.f32.mrb[10].mxu1  ;;  %v10406_v57 = vld [vmem:[#allocation40_spill] sm:$0xff] }
 0x5fe   : > { %v5777_v8 = vadd.f32 %v5745_v45, %v10394_v44  ;;  %v5746_v14 = vadd.f32 %v7606_v15, %v10107_v37  ;;  %v5604_v48 = vpop.f32.mrb[11].mxu1 }
 0x5ff   : > { %v5775_v26 = vadd.f32 %v5743_v47, %v10395_v3  ;;  %v5744_v52 = vadd.f32 %v10107_v37, %v5604_v48 }
 0x600   : > { %v5809_v41 = vmax.f32 %v5777_v8, 0.0  ;;  %v5778_v16 = vadd.f32 %v5746_v14, %v10396_v1  ;;  %v10407_v8 = vld [vmem:[#allocation38_spill] sm:$0xff]  ;;  %v10409_v1 = vld [vmem:[#allocation39_spill] sm:$0xff] }
 0x601   : > { %v5807_v10 = vmax.f32 %v5775_v26, 0.0  ;;  %v5776_v50 = vadd.f32 %v5744_v52, %v10397_v31  ;;  %v10408_v26 = vld [vmem:[#allocation41_spill] sm:$0xff] }
 0x602   : > { %5841 = vst [vmem:[%s10117_s24 + $0x50] sm:$0xff] %v5809_v41  ;;  %v5810_v38 = vmax.f32 %v5778_v16, 0.0 }
 0x603   : > { %5839 = vst [vmem:[%s10117_s24 + $0x40] sm:$0xff] %v5807_v10  ;;  %v5808_v58 = vmax.f32 %v5776_v50, 0.0  ;;  %v7609_v62 = vpop.f32.mrb[12].mxu1 }
 0x604   : > { %5842 = vst [vmem:[%s10117_s24 + $0x58] sm:$0xff] %v5810_v38  ;;  %v5749_v42 = vadd.f32 %v7609_v62, %v10107_v37  ;;  %v5617_v23 = vpop.f32.mrb[13].mxu1 }
 0x605   : > { %5840 = vst [vmem:[%s10117_s24 + $0x48] sm:$0xff] %v5808_v58  ;;  %v5747_v40 = vadd.f32 %v10107_v37, %v5617_v23  ;;  %v7610_v34 = vpop.f32.mrb[14].mxu1  ;;  %v10410_v23 = vld [vmem:[#allocation44_spill] sm:$0xff] }
 0x606   : > { %v5781_v39 = vadd.f32 %v5749_v42, %v10398_v46  ;;  %v5750_v27 = vadd.f32 %v7610_v34, %v10107_v37  ;;  %v5620_v2 = vpop.f32.mrb[15].mxu1 }
 0x607   : > { %v5779_v9 = vadd.f32 %v5747_v40, %v10399_v6  ;;  %v5748_v20 = vadd.f32 %v10107_v37, %v5620_v2 }
 0x608   : > { %v5813_v13 = vmax.f32 %v5781_v39, 0.0  ;;  %v5782_v7 = vadd.f32 %v5750_v27, %v10400_v63  ;;  %v10411_v39 = vld [vmem:[#allocation42_spill] sm:$0xff]  ;;  %v10413_v63 = vld [vmem:[#allocation43_spill] sm:$0xff] }
 0x609   : > { %v5811_v18 = vmax.f32 %v5779_v9, 0.0  ;;  %v5780_v56 = vadd.f32 %v5748_v20, %v10401_v55  ;;  %v10412_v9 = vld [vmem:[#allocation45_spill] sm:$0xff] }
 0x60a   : > { %5845 = vst [vmem:[%s10117_s24 + $0x70] sm:$0xff] %v5813_v13  ;;  %v5814_v24 = vmax.f32 %v5782_v7, 0.0 }
 0x60b   : > { %5843 = vst [vmem:[%s10117_s24 + $0x60] sm:$0xff] %v5811_v18  ;;  %v5812_v17 = vmax.f32 %v5780_v56, 0.0  ;;  %v7613_v49 = vpop.f32.mrb[16].mxu1 }
 0x60c   : > { %5846 = vst [vmem:[%s10117_s24 + $0x78] sm:$0xff] %v5814_v24  ;;  %v5753_v60 = vadd.f32 %v7613_v49, %v10107_v37  ;;  %v5633_v19 = vpop.f32.mrb[17].mxu1 }
 0x60d   : > { %5844 = vst [vmem:[%s10117_s24 + $0x68] sm:$0xff] %v5812_v17  ;;  %v5751_v36 = vadd.f32 %v10107_v37, %v5633_v19  ;;  %v7614_v21 = vpop.f32.mrb[18].mxu1  ;;  %v10414_v19 = vld [vmem:[#allocation3_spill] sm:$0xff] }
 0x60e   : > { %v5785_v59 = vadd.f32 %v5753_v60, %v10402_v22  ;;  %v5754_v51 = vadd.f32 %v7614_v21, %v10107_v37  ;;  %v5636_v61 = vpop.f32.mrb[19].mxu1 }
 0x60f   : > { %v5783_v28 = vadd.f32 %v5751_v36, %v10403_v25  ;;  %v5752_v53 = vadd.f32 %v10107_v37, %v5636_v61 }
 0x610   : > { %v5817_v32 = vmax.f32 %v5785_v59, 0.0  ;;  %v5786_v12 = vadd.f32 %v5754_v51, %v10404_v0  ;;  %v10415_v59 = vld [vmem:[#allocation46_spill] sm:$0xff]  ;;  %v10417_v0 = vld [vmem:[#allocation47_spill] sm:$0xff] }
 0x611   : > { %v5815_v11 = vmax.f32 %v5783_v28, 0.0  ;;  %v5784_v5 = vadd.f32 %v5752_v53, %v10405_v4  ;;  %v10416_v28 = vld [vmem:[#allocation4_spill] sm:$0xff] }
 0x612   : > { %5849 = vst [vmem:[%s10117_s24 + $0x90] sm:$0xff] %v5817_v32  ;;  %v5818_v29 = vmax.f32 %v5786_v12, 0.0 }
 0x613   : > { %5847 = vst [vmem:[%s10117_s24 + $0x80] sm:$0xff] %v5815_v11  ;;  %v5816_v54 = vmax.f32 %v5784_v5, 0.0  ;;  %v7617_v33 = vpop.f32.mrb[20].mxu1 }
 0x614   : > { %5850 = vst [vmem:[%s10117_s24 + $0x98] sm:$0xff] %v5818_v29  ;;  %v5757_v43 = vadd.f32 %v7617_v33, %v10107_v37  ;;  %v5649_v30 = vpop.f32.mrb[21].mxu1 }
 0x615   : > { %5848 = vst [vmem:[%s10117_s24 + $0x88] sm:$0xff] %v5816_v54  ;;  %v5755_v35 = vadd.f32 %v10107_v37, %v5649_v30  ;;  %v7618_v45 = vpop.f32.mrb[22].mxu1 }
 0x616   : > { %v5789_v47 = vadd.f32 %v5757_v43, %v10406_v57  ;;  %v5758_v15 = vadd.f32 %v7618_v45, %v10107_v37  ;;  %v5652_v44 = vpop.f32.mrb[23].mxu1 }
 0x617   : > { %v5787_v14 = vadd.f32 %v5755_v35, %v10407_v8  ;;  %v5756_v48 = vadd.f32 %v10107_v37, %v5652_v44 }
 0x618   : > { %v5821_v3 = vmax.f32 %v5789_v47, 0.0  ;;  %v5790_v52 = vadd.f32 %v5758_v15, %v10408_v26 }
 0x619   : > { %v5819_v41 = vmax.f32 %v5787_v14, 0.0  ;;  %v5788_v16 = vadd.f32 %v5756_v48, %v10409_v1 }
 0x61a   : > { %5853 = vst [vmem:[%s10117_s24 + $0xb0] sm:$0xff] %v5821_v3  ;;  %v5822_v10 = vmax.f32 %v5790_v52, 0.0 }
 0x61b   : > { %5851 = vst [vmem:[%s10117_s24 + $0xa0] sm:$0xff] %v5819_v41  ;;  %v5820_v31 = vmax.f32 %v5788_v16, 0.0  ;;  %v7621_v50 = vpop.f32.mrb[24].mxu1 }
 0x61c   : > { %5854 = vst [vmem:[%s10117_s24 + $0xb8] sm:$0xff] %v5822_v10  ;;  %v5761_v38 = vadd.f32 %v7621_v50, %v10107_v37  ;;  %v5665_v58 = vpop.f32.mrb[25].mxu1 }
 0x61d   : > { %5852 = vst [vmem:[%s10117_s24 + $0xa8] sm:$0xff] %v5820_v31  ;;  %v5759_v62 = vadd.f32 %v10107_v37, %v5665_v58  ;;  %v7622_v42 = vpop.f32.mrb[26].mxu1 }
 0x61e   : > { %v5793_v40 = vadd.f32 %v5761_v38, %v10410_v23  ;;  %v5762_v34 = vadd.f32 %v7622_v42, %v10107_v37  ;;  %v5668_v46 = vpop.f32.mrb[27].mxu1 }
 0x61f   : > { %v5791_v27 = vadd.f32 %v5759_v62, %v10411_v39  ;;  %v5760_v2 = vadd.f32 %v10107_v37, %v5668_v46 }
 0x620   : > { %v5825_v6 = vmax.f32 %v5793_v40, 0.0  ;;  %v5794_v20 = vadd.f32 %v5762_v34, %v10412_v9 }
 0x621   : > { %v5823_v13 = vmax.f32 %v5791_v27, 0.0  ;;  %v5792_v7 = vadd.f32 %v5760_v2, %v10413_v63 }
 0x622   : > { %5857 = vst [vmem:[%s10117_s24 + $0xd0] sm:$0xff] %v5825_v6  ;;  %v5826_v18 = vmax.f32 %v5794_v20, 0.0 }
 0x623   : > { %5855 = vst [vmem:[%s10117_s24 + $0xc0] sm:$0xff] %v5823_v13  ;;  %v5824_v55 = vmax.f32 %v5792_v7, 0.0  ;;  %v7625_v56 = vpop.f32.mrb[28].mxu1 }
 0x624   : > { %5858 = vst [vmem:[%s10117_s24 + $0xd8] sm:$0xff] %v5826_v18  ;;  %v5765_v24 = vadd.f32 %v7625_v56, %v10107_v37  ;;  %v5681_v17 = vpop.f32.mrb[29].mxu1 }
 0x625   : > { %5856 = vst [vmem:[%s10117_s24 + $0xc8] sm:$0xff] %v5824_v55  ;;  %v5763_v49 = vadd.f32 %v10107_v37, %v5681_v17  ;;  %v7626_v60 = vpop.f32.mrb[30].mxu1 }
 0x626   : > { %v5797_v36 = vadd.f32 %v5765_v24, %v10414_v19  ;;  %v5766_v21 = vadd.f32 %v7626_v60, %v10107_v37  ;;  %v5684_v22 = vpop.f32.mrb[31].mxu1 }
 0x627   : > { %v5795_v51 = vadd.f32 %v5763_v49, %v10415_v59  ;;  %v5764_v61 = vadd.f32 %v10107_v37, %v5684_v22 }
 0x628   : > { %v5829_v25 = vmax.f32 %v5797_v36, 0.0  ;;  %v5798_v53 = vadd.f32 %v5766_v21, %v10416_v28 }
 0x629   : > { %v5827_v32 = vmax.f32 %v5795_v51, 0.0  ;;  %v5796_v12 = vadd.f32 %v5764_v61, %v10417_v0 }
 0x62a   : > { %5861 = vst [vmem:[%s10117_s24 + $0xf0] sm:$0xff] %v5829_v25  ;;  %v5830_v11 = vmax.f32 %v5798_v53, 0.0 }
 0x62b   : > { %5859 = vst [vmem:[%s10117_s24 + $0xe0] sm:$0xff] %v5827_v32  ;;  %v5828_v4 = vmax.f32 %v5796_v12, 0.0 }
 0x62c   : > { %5862 = vst [vmem:[%s10117_s24 + $0xf8] sm:$0xff] %v5830_v11 }
 0x62d   : > { %5860 = vst [vmem:[%s10117_s24 + $0xe8] sm:$0xff] %v5828_v4 }
 0x62e PF: > { %s15_s18 = sadd.s32 1, %s8300_s18  }
 0x62f   : > { %p12_p4 = scmp.ge.s32.totalorder %s15_s18, 4  }
 0x631   :  { %14 = sbr.rel (!%p12_p4) target bundleno = 1 (0x1), region = 87 }

</bundles_post_ra>
